<compile_context>
chip_gen: v5e
topology: v5e:2x2
jax: 0.10.0
libtpu: 0.0.40
codegen_flags: <defaults>
</compile_context>

<pallas_src>
import math

import numpy as np
import jax
import jax.numpy as jnp
from jax import lax
from jax.experimental import pallas as pl
from jax.experimental.pallas import tpu as pltpu


# ---------------------------------------------------------------------------
# NumPy-built structural constants (review: no per-call jnp scatter).
# ---------------------------------------------------------------------------
def _interp_matrix(n_in, n_out):
    """Dense 1-D bilinear interpolation matrix, PyTorch align_corners=True."""
    if n_in == 1:
        return np.ones((n_out, 1), np.float32)
    src = np.arange(n_out, dtype=np.float64) * (n_in - 1) / (n_out - 1)
    i0 = np.clip(np.floor(src).astype(np.int64), 0, n_in - 2)
    w = (src - i0).astype(np.float32)
    m = np.zeros((n_out, n_in), np.float32)
    rows = np.arange(n_out)
    m[rows, i0] += 1.0 - w
    m[rows, i0 + 1] += w
    return m


def _shift_operators(H, W):
    """9 column operators M_t of shape (H*W, H*W) such that
    (x @ M_t)[:, h*W + w] = x[:, (h+ky-1)*W + (w+kx-1)]  (zero outside the image).

    Applying the 3x3 taps as constant matmuls keeps the kernel free of
    lane-collapsing slices / reshapes (MXU FLOPs are free here, XLU is not)."""
    HW = H * W
    ops = np.zeros((9, HW, HW), np.float32)
    for t, (ky, kx) in enumerate((a, b) for a in range(3) for b in range(3)):
        dy, dx = ky - 1, kx - 1
        for h in range(H):
            hi = h + dy
            if hi < 0 or hi >= H:
                continue
            for w in range(W):
                wi = w + dx
                if wi < 0 or wi >= W:
                    continue
                ops[t, hi * W + wi, h * W + w] = 1.0
    return ops


def _upsample_operator(H, W, Ho, Wo):
    """Fused bilinear operator U (H*W, Ho*Wo): U[(h,w),(oh,ow)] = Ry[oh,h]*Rx[ow,w]."""
    ry = _interp_matrix(H, Ho)   # (Ho, H)
    rx = _interp_matrix(W, Wo)   # (Wo, W)
    u = np.einsum("oh,pw->hwop", ry, rx).reshape(H * W, Ho * Wo)
    return np.ascontiguousarray(u, dtype=np.float32)


# ---------------------------------------------------------------------------
# Kernel: one grid step, everything lane-dense, pure 2-D matmuls + elementwise.
# ---------------------------------------------------------------------------
def _feature_block_kernel(x_ref, m_ref, wk_ref, b1_ref, wc_ref, u_ref, b2_ref,
                          o_ref):
    """Fused FeatureBlock (last=False) on (rows = N*channels, cols = spatial).

    x_ref  : (N*Cin, H*W)        input, lane-dense spatial columns
    m_ref  : (9, H*W, H*W)       constant tap shift / zero-pad operators
    wk_ref : (9, N*Cin, N*Cin)   kron(I_N, BN-scaled 3x3 tap weights)
    b1_ref : (N*Cin, 1)          folded BN bias of the 3x3 branch
    wc_ref : (N*Cout, N*Cin)     kron(I_N, BN-scaled 1x1 weights)
    u_ref  : (H*W, Ho*Wo)        fused bilinear upsample operator (Ry (x) Rx)^T
    b2_ref : (N*Cout, 1)         folded BN bias of the 1x1 branch
    o_ref  : (N*Cout, Ho*Wo)     output, 128-multiple lane-dense store
    """
    x = x_ref[...]

    # ---- 3x3 conv (+ folded BN scale): 9 taps, each tap = shift-by-matmul
    #      followed by a tiny channel-mixing matmul; accumulate in f32. -----
    acc = jnp.dot(wk_ref[0],
                  jnp.dot(x, m_ref[0], preferred_element_type=jnp.float32),
                  preferred_element_type=jnp.float32)
    for t in range(1, m_ref.shape[0]):
        xt = jnp.dot(x, m_ref[t], preferred_element_type=jnp.float32)
        acc = acc + jnp.dot(wk_ref[t], xt, preferred_element_type=jnp.float32)
    a = jnp.maximum(acc + b1_ref[...], 0.0)                       # (N*Cin, H*W)

    # ---- 1x1 conv (+ folded BN scale) hoisted to LOW resolution.  Exact:
    #      bilinear interp is per-channel linear; bias/ReLU come after. -----
    c = jnp.dot(wc_ref[...], a, preferred_element_type=jnp.float32)  # (N*Cout, H*W)

    # ---- bilinear upsample (align_corners=True) as ONE lane-dense matmul --
    z = jnp.dot(c, u_ref[...], preferred_element_type=jnp.float32)   # (N*Cout, Ho*Wo)

    # ---- folded BN bias of the 1x1 branch + ReLU, lane-dense store --------
    o_ref[...] = jnp.maximum(z + b2_ref[...], 0.0)


# ---------------------------------------------------------------------------
# Wrapper
# ---------------------------------------------------------------------------
def feature_block_forward(x_nchw, params, scale=2):
    """FeatureBlock forward (last=False).  x_nchw: (N, Cin, H, W) float32."""
    N, Cin, H, W = x_nchw.shape
    Cout = params["w1"].shape[1]
    Ho, Wo = scale * H, scale * W
    HW, HoWo = H * W, Ho * Wo
    NCin, NCout = N * Cin, N * Cout

    # Structural constants, built once with NumPy.
    m_ops = jnp.asarray(_shift_operators(H, W))            # (9, HW, HW)
    u_op = jnp.asarray(_upsample_operator(H, W, Ho, Wo))   # (HW, HoWo)
    # TODO(synk): these operators grow as (H*W)^2; for large spatial sizes
    # switch to H-row tiling with a 1-row halo + separable per-tile interp
    # (also gives v7x's two TensorCores a parallel spatial axis) and set
    # vmem_limit_bytes / pl.Buffered(1) on the invariant operands.

    # Fold inference-mode BN (mean=0, var=1, eps=1e-5) into the conv weights.
    eps = 1e-5
    s1 = params["g1"] / jnp.sqrt(1.0 + eps)                # (Cin,)
    s2 = params["g2"] / jnp.sqrt(1.0 + eps)                # (Cout,)
    eye_n = jnp.eye(N, dtype=jnp.float32)

    # Per-tap 3x3 weights (t, co, ci) with BN scale folded, kron'd with I_N so
    # the batch rides the sublane (row) axis of plain 2-D matmuls.
    w3_t = jnp.transpose(params["w3"], (0, 1, 3, 2)).reshape(9, Cin, Cin)
    w3_t = w3_t * s1[None, :, None]
    wk = jnp.einsum("nm,tij->tnimj", eye_n, w3_t).reshape(9, NCin, NCin)

    w1_t = params["w1"].T * s2[:, None]                    # (Cout, Cin)
    wc = jnp.einsum("nm,ij->nimj", eye_n, w1_t).reshape(NCout, NCin)

    b1 = jnp.tile(params["b1"], N).reshape(NCin, 1).astype(jnp.float32)
    b2 = jnp.tile(params["b2"], N).reshape(NCout, 1).astype(jnp.float32)

    # (N, Cin, H, W) -> (N*Cin, H*W): contiguous reshape, no transpose / pad.
    x2d = x_nchw.astype(jnp.float32).reshape(NCin, HW)

    out2d = pl.pallas_call(
        _feature_block_kernel,
        out_shape=jax.ShapeDtypeStruct((NCout, HoWo), jnp.float32),
        grid=(1,),
        in_specs=[
            pl.BlockSpec((NCin, HW), lambda i: (0, 0)),
            pl.BlockSpec((9, HW, HW), lambda i: (0, 0, 0)),
            pl.BlockSpec((9, NCin, NCin), lambda i: (0, 0, 0)),
            pl.BlockSpec((NCin, 1), lambda i: (0, 0)),
            pl.BlockSpec((NCout, NCin), lambda i: (0, 0)),
            pl.BlockSpec((HW, HoWo), lambda i: (0, 0)),
            pl.BlockSpec((NCout, 1), lambda i: (0, 0)),
        ],
        out_specs=pl.BlockSpec((NCout, HoWo), lambda i: (0, 0)),
        compiler_params=pltpu.CompilerParams(
            dimension_semantics=("arbitrary",)),
    )(x2d, m_ops, wk, b1, wc, u_op, b2)

    # (N*Cout, Ho*Wo) -> (N, Cout, Ho, Wo): pure contiguous reshape (no HBM
    # transpose round-trip, unlike the previous version).
    return out2d.reshape(N, Cout, Ho, Wo)


# ---------------------------------------------------------------------------
# Init + plain-JAX reference (module's exact op order) for the self-check.
# ---------------------------------------------------------------------------
def init_params(key, in_planes, out_planes):
    """Deterministic init mirroring the module's __init__ (kaiming_uniform
    convs, BN gamma ~ N(1, 0.02), beta = 0)."""
    k1, k2, k3, k4 = jax.random.split(key, 4)
    fan3 = in_planes * 3 * 3
    bound3 = math.sqrt(6.0 / fan3)
    w3 = jax.random.uniform(k1, (3, 3, in_planes, in_planes), jnp.float32,
                            -bound3, bound3)                            # HWIO
    fan1 = in_planes
    bound1 = math.sqrt(6.0 / fan1)
    w1 = jax.random.uniform(k2, (in_planes, out_planes), jnp.float32,
                            -bound1, bound1)
    g1 = 1.0 + 0.02 * jax.random.normal(k3, (in_planes,), jnp.float32)
    g2 = 1.0 + 0.02 * jax.random.normal(k4, (out_planes,), jnp.float32)
    return dict(w3=w3, g1=g1, b1=jnp.zeros((in_planes,), jnp.float32),
                w1=w1, g2=g2, b2=jnp.zeros((out_planes,), jnp.float32))


def reference_forward(x_nchw, params, scale=2):
    """Plain-JAX reference following the module's exact op order."""
    eps = 1e-5
    s1 = params["g1"] / jnp.sqrt(1.0 + eps)
    s2 = params["g2"] / jnp.sqrt(1.0 + eps)
    w3f = params["w3"] * s1[None, None, None, :]
    w1f = params["w1"] * s2[None, :]
    N, Cin, H, W = x_nchw.shape
    Ho, Wo = scale * H, scale * W
    x = jnp.transpose(x_nchw, (0, 2, 3, 1)).astype(jnp.float32)
    y = lax.conv_general_dilated(x, w3f, (1, 1), ((1, 1), (1, 1)),
                                 dimension_numbers=("NHWC", "HWIO", "NHWC"))
    y = jnp.maximum(y + params["b1"], 0.0)
    ry = jnp.asarray(_interp_matrix(H, Ho))
    rx = jnp.asarray(_interp_matrix(W, Wo))
    u = jnp.einsum("oh,nhwc->nowc", ry, y)
    u = jnp.einsum("pw,nowc->nopc", rx, u)
    z = jnp.maximum(jnp.einsum("nopc,cd->nopd", u, w1f) + params["b2"], 0.0)
    return jnp.transpose(z, (0, 3, 1, 2))


if __name__ == "__main__":
    key = jax.random.PRNGKey(0)
    kx, kp = jax.random.split(key)

    in_planes, out_planes = 4, 8
    N, H, W = 2, 16, 16

    x = jax.random.normal(kx, (N, in_planes, H, W), jnp.float32)
    params = init_params(kp, in_planes, out_planes)

    out = feature_block_forward(x, params, scale=2)
    out = jax.block_until_ready(out)
    assert out.shape == (N, out_planes, 2 * H, 2 * W), out.shape

    ref = reference_forward(x, params, scale=2)
    max_err = float(jnp.max(jnp.abs(out - ref)))
    assert jnp.allclose(out, ref, rtol=1e-3, atol=1e-3), max_err

    print("KERNEL_OK")
</pallas_src>

<mosaic_0001>
module attributes {stable_mosaic.version = 11 : i64} {
  func.func @_feature_block_kernel(%arg0: i32, %arg1: memref<8x256xf32, #tpu.memory_space<vmem>>, %arg2: memref<9x256x256xf32, #tpu.memory_space<vmem>>, %arg3: memref<9x8x8xf32, #tpu.memory_space<vmem>>, %arg4: memref<8x1xf32, #tpu.memory_space<vmem>>, %arg5: memref<16x8xf32, #tpu.memory_space<vmem>>, %arg6: memref<256x1024xf32, #tpu.memory_space<vmem>>, %arg7: memref<16x1xf32, #tpu.memory_space<vmem>>, %arg8: memref<16x1024xf32, #tpu.memory_space<vmem>>) attributes {dimension_semantics = [#tpu.dimension_semantics<arbitrary>], iteration_bounds = array<i64: 1>, scalar_prefetch = 0 : i64, scratch_operands = 0 : i64, tpu.core_type = #tpu.core_type<tc>, window_params = [{pipeline_mode = #tpu.pipeline_mode<synchronous>, transform_indices = @transform_0, window_bounds = array<i64: 8, 256>}, {pipeline_mode = #tpu.pipeline_mode<synchronous>, transform_indices = @transform_1, window_bounds = array<i64: 9, 256, 256>}, {pipeline_mode = #tpu.pipeline_mode<synchronous>, transform_indices = @transform_2, window_bounds = array<i64: 9, 8, 8>}, {pipeline_mode = #tpu.pipeline_mode<synchronous>, transform_indices = @transform_3, window_bounds = array<i64: 8, 1>}, {pipeline_mode = #tpu.pipeline_mode<synchronous>, transform_indices = @transform_4, window_bounds = array<i64: 16, 8>}, {pipeline_mode = #tpu.pipeline_mode<synchronous>, transform_indices = @transform_5, window_bounds = array<i64: 256, 1024>}, {pipeline_mode = #tpu.pipeline_mode<synchronous>, transform_indices = @transform_6, window_bounds = array<i64: 16, 1>}, {pipeline_mode = #tpu.pipeline_mode<synchronous>, transform_indices = @transform_7, window_bounds = array<i64: 16, 1024>}]} {
    %c0 = arith.constant 0 : index
    %c0_0 = arith.constant 0 : index
    %0 = vector.load %arg1[%c0, %c0_0] : memref<8x256xf32, #tpu.memory_space<vmem>>, vector<8x256xf32>
    %c0_1 = arith.constant 0 : index
    %c0_2 = arith.constant 0 : index
    %c0_3 = arith.constant 0 : index
    %1 = vector.load %arg3[%c0_1, %c0_2, %c0_3] : memref<9x8x8xf32, #tpu.memory_space<vmem>>, vector<1x8x8xf32>
    %2 = vector.shape_cast %1 : vector<1x8x8xf32> to vector<8x8xf32>
    %c0_4 = arith.constant 0 : index
    %c0_5 = arith.constant 0 : index
    %c0_6 = arith.constant 0 : index
    %3 = vector.load %arg2[%c0_4, %c0_5, %c0_6] : memref<9x256x256xf32, #tpu.memory_space<vmem>>, vector<1x256x256xf32>
    %4 = vector.shape_cast %3 : vector<1x256x256xf32> to vector<256x256xf32>
    %cst = arith.constant dense<0.000000e+00> : vector<8x256xf32>
    %5 = tpu.matmul %0, %4, %cst {dimension_numbers = #tpu.dot_dimension_numbers<[1], [0], [0], [1], [0, 0, 1, 1], [], []>} : vector<8x256xf32>, vector<256x256xf32>, vector<8x256xf32> -> vector<8x256xf32>
    %cst_7 = arith.constant dense<0.000000e+00> : vector<8x256xf32>
    %6 = tpu.matmul %2, %5, %cst_7 {dimension_numbers = #tpu.dot_dimension_numbers<[1], [0], [0], [1], [0, 0, 1, 1], [], []>} : vector<8x8xf32>, vector<8x256xf32>, vector<8x256xf32> -> vector<8x256xf32>
    %c1 = arith.constant 1 : index
    %c0_8 = arith.constant 0 : index
    %c0_9 = arith.constant 0 : index
    %7 = vector.load %arg2[%c1, %c0_8, %c0_9] : memref<9x256x256xf32, #tpu.memory_space<vmem>>, vector<1x256x256xf32>
    %8 = vector.shape_cast %7 : vector<1x256x256xf32> to vector<256x256xf32>
    %cst_10 = arith.constant dense<0.000000e+00> : vector<8x256xf32>
    %9 = tpu.matmul %0, %8, %cst_10 {dimension_numbers = #tpu.dot_dimension_numbers<[1], [0], [0], [1], [0, 0, 1, 1], [], []>} : vector<8x256xf32>, vector<256x256xf32>, vector<8x256xf32> -> vector<8x256xf32>
    %c1_11 = arith.constant 1 : index
    %c0_12 = arith.constant 0 : index
    %c0_13 = arith.constant 0 : index
    %10 = vector.load %arg3[%c1_11, %c0_12, %c0_13] : memref<9x8x8xf32, #tpu.memory_space<vmem>>, vector<1x8x8xf32>
    %11 = vector.shape_cast %10 : vector<1x8x8xf32> to vector<8x8xf32>
    %cst_14 = arith.constant dense<0.000000e+00> : vector<8x256xf32>
    %12 = tpu.matmul %11, %9, %cst_14 {dimension_numbers = #tpu.dot_dimension_numbers<[1], [0], [0], [1], [0, 0, 1, 1], [], []>} : vector<8x8xf32>, vector<8x256xf32>, vector<8x256xf32> -> vector<8x256xf32>
    %13 = arith.addf %6, %12 : vector<8x256xf32>
    %c2 = arith.constant 2 : index
    %c0_15 = arith.constant 0 : index
    %c0_16 = arith.constant 0 : index
    %14 = vector.load %arg2[%c2, %c0_15, %c0_16] : memref<9x256x256xf32, #tpu.memory_space<vmem>>, vector<1x256x256xf32>
    %15 = vector.shape_cast %14 : vector<1x256x256xf32> to vector<256x256xf32>
    %cst_17 = arith.constant dense<0.000000e+00> : vector<8x256xf32>
    %16 = tpu.matmul %0, %15, %cst_17 {dimension_numbers = #tpu.dot_dimension_numbers<[1], [0], [0], [1], [0, 0, 1, 1], [], []>} : vector<8x256xf32>, vector<256x256xf32>, vector<8x256xf32> -> vector<8x256xf32>
    %c2_18 = arith.constant 2 : index
    %c0_19 = arith.constant 0 : index
    %c0_20 = arith.constant 0 : index
    %17 = vector.load %arg3[%c2_18, %c0_19, %c0_20] : memref<9x8x8xf32, #tpu.memory_space<vmem>>, vector<1x8x8xf32>
    %18 = vector.shape_cast %17 : vector<1x8x8xf32> to vector<8x8xf32>
    %cst_21 = arith.constant dense<0.000000e+00> : vector<8x256xf32>
    %19 = tpu.matmul %18, %16, %cst_21 {dimension_numbers = #tpu.dot_dimension_numbers<[1], [0], [0], [1], [0, 0, 1, 1], [], []>} : vector<8x8xf32>, vector<8x256xf32>, vector<8x256xf32> -> vector<8x256xf32>
    %20 = arith.addf %13, %19 : vector<8x256xf32>
    %c3 = arith.constant 3 : index
    %c0_22 = arith.constant 0 : index
    %c0_23 = arith.constant 0 : index
    %21 = vector.load %arg2[%c3, %c0_22, %c0_23] : memref<9x256x256xf32, #tpu.memory_space<vmem>>, vector<1x256x256xf32>
    %22 = vector.shape_cast %21 : vector<1x256x256xf32> to vector<256x256xf32>
    %cst_24 = arith.constant dense<0.000000e+00> : vector<8x256xf32>
    %23 = tpu.matmul %0, %22, %cst_24 {dimension_numbers = #tpu.dot_dimension_numbers<[1], [0], [0], [1], [0, 0, 1, 1], [], []>} : vector<8x256xf32>, vector<256x256xf32>, vector<8x256xf32> -> vector<8x256xf32>
    %c3_25 = arith.constant 3 : index
    %c0_26 = arith.constant 0 : index
    %c0_27 = arith.constant 0 : index
    %24 = vector.load %arg3[%c3_25, %c0_26, %c0_27] : memref<9x8x8xf32, #tpu.memory_space<vmem>>, vector<1x8x8xf32>
    %25 = vector.shape_cast %24 : vector<1x8x8xf32> to vector<8x8xf32>
    %cst_28 = arith.constant dense<0.000000e+00> : vector<8x256xf32>
    %26 = tpu.matmul %25, %23, %cst_28 {dimension_numbers = #tpu.dot_dimension_numbers<[1], [0], [0], [1], [0, 0, 1, 1], [], []>} : vector<8x8xf32>, vector<8x256xf32>, vector<8x256xf32> -> vector<8x256xf32>
    %27 = arith.addf %20, %26 : vector<8x256xf32>
    %c4 = arith.constant 4 : index
    %c0_29 = arith.constant 0 : index
    %c0_30 = arith.constant 0 : index
    %28 = vector.load %arg2[%c4, %c0_29, %c0_30] : memref<9x256x256xf32, #tpu.memory_space<vmem>>, vector<1x256x256xf32>
    %29 = vector.shape_cast %28 : vector<1x256x256xf32> to vector<256x256xf32>
    %cst_31 = arith.constant dense<0.000000e+00> : vector<8x256xf32>
    %30 = tpu.matmul %0, %29, %cst_31 {dimension_numbers = #tpu.dot_dimension_numbers<[1], [0], [0], [1], [0, 0, 1, 1], [], []>} : vector<8x256xf32>, vector<256x256xf32>, vector<8x256xf32> -> vector<8x256xf32>
    %c4_32 = arith.constant 4 : index
    %c0_33 = arith.constant 0 : index
    %c0_34 = arith.constant 0 : index
    %31 = vector.load %arg3[%c4_32, %c0_33, %c0_34] : memref<9x8x8xf32, #tpu.memory_space<vmem>>, vector<1x8x8xf32>
    %32 = vector.shape_cast %31 : vector<1x8x8xf32> to vector<8x8xf32>
    %cst_35 = arith.constant dense<0.000000e+00> : vector<8x256xf32>
    %33 = tpu.matmul %32, %30, %cst_35 {dimension_numbers = #tpu.dot_dimension_numbers<[1], [0], [0], [1], [0, 0, 1, 1], [], []>} : vector<8x8xf32>, vector<8x256xf32>, vector<8x256xf32> -> vector<8x256xf32>
    %34 = arith.addf %27, %33 : vector<8x256xf32>
    %c5 = arith.constant 5 : index
    %c0_36 = arith.constant 0 : index
    %c0_37 = arith.constant 0 : index
    %35 = vector.load %arg2[%c5, %c0_36, %c0_37] : memref<9x256x256xf32, #tpu.memory_space<vmem>>, vector<1x256x256xf32>
    %36 = vector.shape_cast %35 : vector<1x256x256xf32> to vector<256x256xf32>
    %cst_38 = arith.constant dense<0.000000e+00> : vector<8x256xf32>
    %37 = tpu.matmul %0, %36, %cst_38 {dimension_numbers = #tpu.dot_dimension_numbers<[1], [0], [0], [1], [0, 0, 1, 1], [], []>} : vector<8x256xf32>, vector<256x256xf32>, vector<8x256xf32> -> vector<8x256xf32>
    %c5_39 = arith.constant 5 : index
    %c0_40 = arith.constant 0 : index
    %c0_41 = arith.constant 0 : index
    %38 = vector.load %arg3[%c5_39, %c0_40, %c0_41] : memref<9x8x8xf32, #tpu.memory_space<vmem>>, vector<1x8x8xf32>
    %39 = vector.shape_cast %38 : vector<1x8x8xf32> to vector<8x8xf32>
    %cst_42 = arith.constant dense<0.000000e+00> : vector<8x256xf32>
    %40 = tpu.matmul %39, %37, %cst_42 {dimension_numbers = #tpu.dot_dimension_numbers<[1], [0], [0], [1], [0, 0, 1, 1], [], []>} : vector<8x8xf32>, vector<8x256xf32>, vector<8x256xf32> -> vector<8x256xf32>
    %41 = arith.addf %34, %40 : vector<8x256xf32>
    %c6 = arith.constant 6 : index
    %c0_43 = arith.constant 0 : index
    %c0_44 = arith.constant 0 : index
    %42 = vector.load %arg2[%c6, %c0_43, %c0_44] : memref<9x256x256xf32, #tpu.memory_space<vmem>>, vector<1x256x256xf32>
    %43 = vector.shape_cast %42 : vector<1x256x256xf32> to vector<256x256xf32>
    %cst_45 = arith.constant dense<0.000000e+00> : vector<8x256xf32>
    %44 = tpu.matmul %0, %43, %cst_45 {dimension_numbers = #tpu.dot_dimension_numbers<[1], [0], [0], [1], [0, 0, 1, 1], [], []>} : vector<8x256xf32>, vector<256x256xf32>, vector<8x256xf32> -> vector<8x256xf32>
    %c6_46 = arith.constant 6 : index
    %c0_47 = arith.constant 0 : index
    %c0_48 = arith.constant 0 : index
    %45 = vector.load %arg3[%c6_46, %c0_47, %c0_48] : memref<9x8x8xf32, #tpu.memory_space<vmem>>, vector<1x8x8xf32>
    %46 = vector.shape_cast %45 : vector<1x8x8xf32> to vector<8x8xf32>
    %cst_49 = arith.constant dense<0.000000e+00> : vector<8x256xf32>
    %47 = tpu.matmul %46, %44, %cst_49 {dimension_numbers = #tpu.dot_dimension_numbers<[1], [0], [0], [1], [0, 0, 1, 1], [], []>} : vector<8x8xf32>, vector<8x256xf32>, vector<8x256xf32> -> vector<8x256xf32>
    %48 = arith.addf %41, %47 : vector<8x256xf32>
    %c7 = arith.constant 7 : index
    %c0_50 = arith.constant 0 : index
    %c0_51 = arith.constant 0 : index
    %49 = vector.load %arg2[%c7, %c0_50, %c0_51] : memref<9x256x256xf32, #tpu.memory_space<vmem>>, vector<1x256x256xf32>
    %50 = vector.shape_cast %49 : vector<1x256x256xf32> to vector<256x256xf32>
    %cst_52 = arith.constant dense<0.000000e+00> : vector<8x256xf32>
    %51 = tpu.matmul %0, %50, %cst_52 {dimension_numbers = #tpu.dot_dimension_numbers<[1], [0], [0], [1], [0, 0, 1, 1], [], []>} : vector<8x256xf32>, vector<256x256xf32>, vector<8x256xf32> -> vector<8x256xf32>
    %c7_53 = arith.constant 7 : index
    %c0_54 = arith.constant 0 : index
    %c0_55 = arith.constant 0 : index
    %52 = vector.load %arg3[%c7_53, %c0_54, %c0_55] : memref<9x8x8xf32, #tpu.memory_space<vmem>>, vector<1x8x8xf32>
    %53 = vector.shape_cast %52 : vector<1x8x8xf32> to vector<8x8xf32>
    %cst_56 = arith.constant dense<0.000000e+00> : vector<8x256xf32>
    %54 = tpu.matmul %53, %51, %cst_56 {dimension_numbers = #tpu.dot_dimension_numbers<[1], [0], [0], [1], [0, 0, 1, 1], [], []>} : vector<8x8xf32>, vector<8x256xf32>, vector<8x256xf32> -> vector<8x256xf32>
    %55 = arith.addf %48, %54 : vector<8x256xf32>
    %c8 = arith.constant 8 : index
    %c0_57 = arith.constant 0 : index
    %c0_58 = arith.constant 0 : index
    %56 = vector.load %arg2[%c8, %c0_57, %c0_58] : memref<9x256x256xf32, #tpu.memory_space<vmem>>, vector<1x256x256xf32>
    %57 = vector.shape_cast %56 : vector<1x256x256xf32> to vector<256x256xf32>
    %cst_59 = arith.constant dense<0.000000e+00> : vector<8x256xf32>
    %58 = tpu.matmul %0, %57, %cst_59 {dimension_numbers = #tpu.dot_dimension_numbers<[1], [0], [0], [1], [0, 0, 1, 1], [], []>} : vector<8x256xf32>, vector<256x256xf32>, vector<8x256xf32> -> vector<8x256xf32>
    %c8_60 = arith.constant 8 : index
    %c0_61 = arith.constant 0 : index
    %c0_62 = arith.constant 0 : index
    %59 = vector.load %arg3[%c8_60, %c0_61, %c0_62] : memref<9x8x8xf32, #tpu.memory_space<vmem>>, vector<1x8x8xf32>
    %60 = vector.shape_cast %59 : vector<1x8x8xf32> to vector<8x8xf32>
    %cst_63 = arith.constant dense<0.000000e+00> : vector<8x256xf32>
    %61 = tpu.matmul %60, %58, %cst_63 {dimension_numbers = #tpu.dot_dimension_numbers<[1], [0], [0], [1], [0, 0, 1, 1], [], []>} : vector<8x8xf32>, vector<8x256xf32>, vector<8x256xf32> -> vector<8x256xf32>
    %62 = arith.addf %55, %61 : vector<8x256xf32>
    %c0_64 = arith.constant 0 : index
    %c0_65 = arith.constant 0 : index
    %63 = vector.load %arg4[%c0_64, %c0_65] : memref<8x1xf32, #tpu.memory_space<vmem>>, vector<8x1xf32>
    %64 = vector.broadcast %63 : vector<8x1xf32> to vector<8x256xf32>
    %65 = arith.addf %62, %64 : vector<8x256xf32>
    %cst_66 = arith.constant 0.000000e+00 : f32
    %66 = vector.broadcast %cst_66 : f32 to vector<8x256xf32>
    %67 = arith.maximumf %65, %66 : vector<8x256xf32>
    %c0_67 = arith.constant 0 : index
    %c0_68 = arith.constant 0 : index
    %68 = vector.load %arg5[%c0_67, %c0_68] : memref<16x8xf32, #tpu.memory_space<vmem>>, vector<16x8xf32>
    %cst_69 = arith.constant dense<0.000000e+00> : vector<16x256xf32>
    %69 = tpu.matmul %68, %67, %cst_69 {dimension_numbers = #tpu.dot_dimension_numbers<[1], [0], [0], [1], [0, 0, 1, 1], [], []>} : vector<16x8xf32>, vector<8x256xf32>, vector<16x256xf32> -> vector<16x256xf32>
    %c0_70 = arith.constant 0 : index
    %c0_71 = arith.constant 0 : index
    %70 = vector.load %arg6[%c0_70, %c0_71] : memref<256x1024xf32, #tpu.memory_space<vmem>>, vector<256x1024xf32>
    %cst_72 = arith.constant dense<0.000000e+00> : vector<16x1024xf32>
    %71 = tpu.matmul %69, %70, %cst_72 {dimension_numbers = #tpu.dot_dimension_numbers<[1], [0], [0], [1], [0, 0, 1, 1], [], []>} : vector<16x256xf32>, vector<256x1024xf32>, vector<16x1024xf32> -> vector<16x1024xf32>
    %c0_73 = arith.constant 0 : index
    %c0_74 = arith.constant 0 : index
    %72 = vector.load %arg7[%c0_73, %c0_74] : memref<16x1xf32, #tpu.memory_space<vmem>>, vector<16x1xf32>
    %73 = vector.broadcast %72 : vector<16x1xf32> to vector<16x1024xf32>
    %74 = arith.addf %71, %73 : vector<16x1024xf32>
    %cst_75 = arith.constant 0.000000e+00 : f32
    %75 = vector.broadcast %cst_75 : f32 to vector<16x1024xf32>
    %76 = arith.maximumf %74, %75 : vector<16x1024xf32>
    %c0_76 = arith.constant 0 : index
    %c0_77 = arith.constant 0 : index
    %77 = vector.load %arg8[%c0_76, %c0_77] : memref<16x1024xf32, #tpu.memory_space<vmem>>, vector<16x1024xf32>
    tpu.vector_store %arg8[%c0_76, %c0_77], %76 {strides = array<i32>} : memref<16x1024xf32, #tpu.memory_space<vmem>>, vector<16x1024xf32>,
    return
  }
  func.func @transform_0(%arg0: i32) -> (i32, i32) {
    %c0_i32 = arith.constant 0 : i32
    %c0_i32_0 = arith.constant 0 : i32
    %c0_i32_1 = arith.constant 0 : i32
    return %c0_i32, %c0_i32_0 : i32, i32
  }
  func.func @transform_1(%arg0: i32) -> (i32, i32, i32) {
    %c0_i32 = arith.constant 0 : i32
    %c0_i32_0 = arith.constant 0 : i32
    %c0_i32_1 = arith.constant 0 : i32
    %c0_i32_2 = arith.constant 0 : i32
    return %c0_i32, %c0_i32_0, %c0_i32_1 : i32, i32, i32
  }
  func.func @transform_2(%arg0: i32) -> (i32, i32, i32) {
    %c0_i32 = arith.constant 0 : i32
    %c0_i32_0 = arith.constant 0 : i32
    %c0_i32_1 = arith.constant 0 : i32
    %c0_i32_2 = arith.constant 0 : i32
    return %c0_i32, %c0_i32_0, %c0_i32_1 : i32, i32, i32
  }
  func.func @transform_3(%arg0: i32) -> (i32, i32) {
    %c0_i32 = arith.constant 0 : i32
    %c0_i32_0 = arith.constant 0 : i32
    %c0_i32_1 = arith.constant 0 : i32
    return %c0_i32, %c0_i32_0 : i32, i32
  }
  func.func @transform_4(%arg0: i32) -> (i32, i32) {
    %c0_i32 = arith.constant 0 : i32
    %c0_i32_0 = arith.constant 0 : i32
    %c0_i32_1 = arith.constant 0 : i32
    return %c0_i32, %c0_i32_0 : i32, i32
  }
  func.func @transform_5(%arg0: i32) -> (i32, i32) {
    %c0_i32 = arith.constant 0 : i32
    %c0_i32_0 = arith.constant 0 : i32
    %c0_i32_1 = arith.constant 0 : i32
    return %c0_i32, %c0_i32_0 : i32, i32
  }
  func.func @transform_6(%arg0: i32) -> (i32, i32) {
    %c0_i32 = arith.constant 0 : i32
    %c0_i32_0 = arith.constant 0 : i32
    %c0_i32_1 = arith.constant 0 : i32
    return %c0_i32, %c0_i32_0 : i32, i32
  }
  func.func @transform_7(%arg0: i32) -> (i32, i32) {
    %c0_i32 = arith.constant 0 : i32
    %c0_i32_0 = arith.constant 0 : i32
    %c0_i32_1 = arith.constant 0 : i32
    return %c0_i32, %c0_i32_0 : i32, i32
  }
}

</mosaic_0001>

<bundles_post_ra>
// kernel: tpu_custom_call.1
= control target key start
LH: loop header
LB: loop body
LE: loop exit
PB: predicated region body
PF: predicated region fallthrough
CT: control target
= control target key end

     0   :  { %12 = vsyncpa [#allocation3], 0  ;;  %s3003_s0 = inlined_call_operand.hbm [shape: f32[8,256], index: 0, kind: input, shape index: {}]   ;;  %s3004_s1 = inlined_call_operand.hbm [shape: f32[9,256,256], index: 1, kind: input, shape index: {}]   ;;  %s3005_s2 = inlined_call_operand.vmem [shape: f32[9,8,8], index: 2, kind: input, shape index: {}]   ;;  %s3006_s3 = inlined_call_operand.vmem [shape: f32[8,1], index: 3, kind: input, shape index: {}]   ;;  %s3007_s4 = inlined_call_operand.vmem [shape: f32[16,8], index: 4, kind: input, shape index: {}]   ;;  %s3008_s5 = inlined_call_operand.hbm [shape: f32[256,1024], index: 5, kind: input, shape index: {}]   ;;  %s3009_s6 = inlined_call_operand.vmem [shape: f32[16,1], index: 6, kind: input, shape index: {}]   ;;  %s3010_s7 = inlined_call_operand.hbm [shape: f32[16,1024], index: 7, kind: output, shape index: {}]  }
   0x1   :  { %13 = vsyncpa [#allocation6], 0  ;;  %s30_s26 = sshll.u32 %s3004_s1, 4  ;;  %s31_s26 = int_to_ptr.hbm [resolvable:$true] %s30_s26 }
   0x2   :  { %14 = vsyncpa [#allocation4], 0  ;;  %s2696_s27 = smov [#allocation5]   ;;  %s20_s8 = sshll.u32 %s3003_s0, 4  ;;  %s21_s8 = int_to_ptr.hbm [resolvable:$true] %s20_s8 }
   0x3   :  { %s32_s28 = sshll.u32 %s2696_s27, 4  ;;  %s2697_s9 = smov 256   ;;  %s33_s28 = int_to_ptr.vmem [resolvable:$true] %s32_s28 }
   0x4   :  { %s2698_s10 = smov 16   ;;  %s2699_s11 = smov [#allocation2]  }
   0x5   :  { %38 = dma.hbm_to_vmem [thread:$0]  %s31_s26, 73728, %s33_s28, [#allocation6], %s2697_s9, %s2697_s9, %s2698_s10  }
   0x6   :  { %s22_s12 = sshll.u32 %s2699_s11, 4  ;;  %s49_s15 = sshll.u32 %s3008_s5, 4  ;;  %s23_s12 = int_to_ptr.vmem [resolvable:$true] %s22_s12  ;;  %s50_s15 = int_to_ptr.hbm [resolvable:$true] %s49_s15 }
   0x7   :  { %25 = dma.hbm_to_vmem [thread:$0]  %s21_s8, 256, %s23_s12, [#allocation3]  }
   0x8   :  { %s2700_s1 = smov [#allocation7]   ;;  %s2701_s17 = smov 1024  }
   0x9   :  { %s51_s16 = sshll.u32 %s2700_s1, 4  ;;  %s2702_s18 = smov 64   ;;  %s52_s16 = int_to_ptr.vmem [resolvable:$true] %s51_s16 }
   0xa   :  { %57 = dma.hbm_to_vmem [thread:$0]  %s50_s15, 32768, %s52_s16, [#allocation6], %s2701_s17, %s2701_s17, %s2702_s18  }
   0xb   :  { %2690 = dma.done.wait [#allocation3], 256  }
   0xc   :  { %2691 = vsyncadd [#allocation3], 4294967040 }
   0xd   :  { %2692 = dma.done.wait [#allocation6], 106496  }
   0xe   :  { %2693 = vsyncadd [#allocation6], 4294860800  ;;  %v106_v0 = vld [vmem:[#allocation5 + $0xf8] sm:$0xff]  ;;  %v104_v2 = vld [vmem:[#allocation5 + $0xe8] sm:$0xff]  ;;  %vm366_vm0 = vcmask 64512   ;;  %s2535_s21 = sshll.u32 %s3010_s7, 4  ;;  %s2536_s21 = int_to_ptr.hbm [resolvable:$true] %s2535_s21 }
   0xf   :  { %v138_v1 = vld [vmem:[#allocation5 + $0x1f8] sm:$0xff]  ;;  %179 = vmatpush.msra.mxu2 %v106_v0  ;;  %v136_v3 = vld [vmem:[#allocation5 + $0x1e8] sm:$0xff]  ;;  %v105_v6 = vld [vmem:[#allocation5 + $0xf0] sm:$0xff] }
  0x10   :  { %199 = vmatpush.msra.mxu3 %v138_v1  ;;  %v102_v4 = vld [vmem:[#allocation5 + $0xd8] sm:$0xff]  ;;  %v137_v7 = vld [vmem:[#allocation5 + $0x1f0] sm:$0xff]  ;;  %v103_v8 = vld [vmem:[#allocation5 + $0xe0] sm:$0xff]  ;;  %139 = vmatpush.msra.mxu0 %v105_v6 }
  0x11   :  { %v134_v5 = vld [vmem:[#allocation5 + $0x1d8] sm:$0xff]  ;;  %180 = vmatpush.msra.mxu2 %v104_v2  ;;  %v135_v9 = vld [vmem:[#allocation5 + $0x1e0] sm:$0xff]  ;;  %159 = vmatpush.msra.mxu1 %v137_v7  ;;  %v100_v10 = vld [vmem:[#allocation5 + $0xc8] sm:$0xff] }
  0x12   :  { %200 = vmatpush.msra.mxu3 %v136_v3  ;;  %v132_v11 = vld [vmem:[#allocation5 + $0x1c8] sm:$0xff]  ;;  %v101_v12 = vld [vmem:[#allocation5 + $0xd0] sm:$0xff]  ;;  %140 = vmatpush.msra.mxu0 %v103_v8  ;;  %v98_v14 = vld [vmem:[#allocation5 + $0xb8] sm:$0xff] }
  0x13   :  { %181 = vmatpush.msra.mxu2 %v102_v4  ;;  %v133_v13 = vld [vmem:[#allocation5 + $0x1d0] sm:$0xff]  ;;  %160 = vmatpush.msra.mxu1 %v135_v9  ;;  %v130_v15 = vld [vmem:[#allocation5 + $0x1b8] sm:$0xff]  ;;  %v99_v16 = vld [vmem:[#allocation5 + $0xc0] sm:$0xff] }
  0x14   :  { %201 = vmatpush.msra.mxu3 %v134_v5  ;;  %v131_v17 = vld [vmem:[#allocation5 + $0x1c0] sm:$0xff]  ;;  %141 = vmatpush.msra.mxu0 %v101_v12  ;;  %v96_v18 = vld [vmem:[#allocation5 + $0xa8] sm:$0xff]  ;;  %v97_v20 = vld [vmem:[#allocation5 + $0xb0] sm:$0xff] }
  0x15   :  { %182 = vmatpush.msra.mxu2 %v100_v10  ;;  %161 = vmatpush.msra.mxu1 %v133_v13  ;;  %v128_v19 = vld [vmem:[#allocation5 + $0x1a8] sm:$0xff]  ;;  %v129_v21 = vld [vmem:[#allocation5 + $0x1b0] sm:$0xff]  ;;  %v94_v22 = vld [vmem:[#allocation5 + $0x98] sm:$0xff] }
  0x16   :  { %202 = vmatpush.msra.mxu3 %v132_v11  ;;  %142 = vmatpush.msra.mxu0 %v99_v16  ;;  %v126_v23 = vld [vmem:[#allocation5 + $0x198] sm:$0xff]  ;;  %v95_v24 = vld [vmem:[#allocation5 + $0xa0] sm:$0xff]  ;;  %v92_v26 = vld [vmem:[#allocation5 + $0x88] sm:$0xff] }
  0x17   :  { %183 = vmatpush.msra.mxu2 %v98_v14  ;;  %162 = vmatpush.msra.mxu1 %v131_v17  ;;  %v127_v25 = vld [vmem:[#allocation5 + $0x1a0] sm:$0xff]  ;;  %v124_v27 = vld [vmem:[#allocation5 + $0x188] sm:$0xff]  ;;  %v93_v28 = vld [vmem:[#allocation5 + $0x90] sm:$0xff] }
  0x18   :  { %203 = vmatpush.msra.mxu3 %v130_v15  ;;  %143 = vmatpush.msra.mxu0 %v97_v20  ;;  %v125_v29 = vld [vmem:[#allocation5 + $0x190] sm:$0xff]  ;;  %v90_v30 = vld [vmem:[#allocation5 + $0x78] sm:$0xff]  ;;  %v91_v32 = vld [vmem:[#allocation5 + $0x80] sm:$0xff] }
  0x19   :  { %184 = vmatpush.msra.mxu2 %v96_v18  ;;  %163 = vmatpush.msra.mxu1 %v129_v21  ;;  %v122_v31 = vld [vmem:[#allocation5 + $0x178] sm:$0xff]  ;;  %v123_v33 = vld [vmem:[#allocation5 + $0x180] sm:$0xff]  ;;  %v88_v34 = vld [vmem:[#allocation5 + $0x68] sm:$0xff] }
  0x1a   :  { %204 = vmatpush.msra.mxu3 %v128_v19  ;;  %144 = vmatpush.msra.mxu0 %v95_v24  ;;  %v120_v35 = vld [vmem:[#allocation5 + $0x168] sm:$0xff]  ;;  %v89_v36 = vld [vmem:[#allocation5 + $0x70] sm:$0xff]  ;;  %v86_v38 = vld [vmem:[#allocation5 + $0x58] sm:$0xff] }
  0x1b   :  { %185 = vmatpush.msra.mxu2 %v94_v22  ;;  %164 = vmatpush.msra.mxu1 %v127_v25  ;;  %v121_v37 = vld [vmem:[#allocation5 + $0x170] sm:$0xff]  ;;  %v118_v39 = vld [vmem:[#allocation5 + $0x158] sm:$0xff]  ;;  %v87_v40 = vld [vmem:[#allocation5 + $0x60] sm:$0xff] }
  0x1c   :  { %205 = vmatpush.msra.mxu3 %v126_v23  ;;  %145 = vmatpush.msra.mxu0 %v93_v28  ;;  %v119_v41 = vld [vmem:[#allocation5 + $0x160] sm:$0xff]  ;;  %v84_v42 = vld [vmem:[#allocation5 + $0x48] sm:$0xff]  ;;  %v85_v44 = vld [vmem:[#allocation5 + $0x50] sm:$0xff] }
  0x1d   :  { %186 = vmatpush.msra.mxu2 %v92_v26  ;;  %165 = vmatpush.msra.mxu1 %v125_v29  ;;  %v116_v43 = vld [vmem:[#allocation5 + $0x148] sm:$0xff]  ;;  %v117_v45 = vld [vmem:[#allocation5 + $0x150] sm:$0xff]  ;;  %v82_v46 = vld [vmem:[#allocation5 + $0x38] sm:$0xff] }
  0x1e   :  { %206 = vmatpush.msra.mxu3 %v124_v27  ;;  %146 = vmatpush.msra.mxu0 %v91_v32  ;;  %v114_v47 = vld [vmem:[#allocation5 + $0x138] sm:$0xff]  ;;  %v83_v48 = vld [vmem:[#allocation5 + $0x40] sm:$0xff]  ;;  %v80_v50 = vld [vmem:[#allocation5 + $0x28] sm:$0xff] }
  0x1f   :  { %187 = vmatpush.msra.mxu2 %v90_v30  ;;  %166 = vmatpush.msra.mxu1 %v123_v33  ;;  %v115_v49 = vld [vmem:[#allocation5 + $0x140] sm:$0xff]  ;;  %v112_v51 = vld [vmem:[#allocation5 + $0x128] sm:$0xff]  ;;  %v81_v52 = vld [vmem:[#allocation5 + $0x30] sm:$0xff] }
  0x20   :  { %207 = vmatpush.msra.mxu3 %v122_v31  ;;  %147 = vmatpush.msra.mxu0 %v89_v36  ;;  %v113_v53 = vld [vmem:[#allocation5 + $0x130] sm:$0xff]  ;;  %v78_v54 = vld [vmem:[#allocation5 + $0x18] sm:$0xff]  ;;  %v79_v56 = vld [vmem:[#allocation5 + $0x20] sm:$0xff] }
  0x21   :  { %188 = vmatpush.msra.mxu2 %v88_v34  ;;  %167 = vmatpush.msra.mxu1 %v121_v37  ;;  %v110_v55 = vld [vmem:[#allocation5 + $0x118] sm:$0xff]  ;;  %v111_v57 = vld [vmem:[#allocation5 + $0x120] sm:$0xff]  ;;  %v76_v58 = vld [vmem:[#allocation5 + $0x8] sm:$0xff] }
  0x22   :  { %208 = vmatpush.msra.mxu3 %v120_v35  ;;  %148 = vmatpush.msra.mxu0 %v87_v40  ;;  %v108_v59 = vld [vmem:[#allocation5 + $0x108] sm:$0xff]  ;;  %v2757_v60 = vld [vmem:[#allocation2] sm:$0xff]  ;;  %v2759_v61 = vld [vmem:[#allocation2 + $0x8] sm:$0xff] }
  0x23   :  { %189 = vmatpush.msra.mxu2 %v86_v38  ;;  %168 = vmatpush.msra.mxu1 %v119_v41  ;;  %v251_v62 = vld [vmem:[#allocation5 + $0x2f8] sm:$0xff]  ;;  %v77_v0 = vld [vmem:[#allocation5 + $0x10] sm:$0xff]  ;;  %v249_v2 = vld [vmem:[#allocation5 + $0x2e8] sm:$0xff] }
  0x24   :  { %209 = vmatpush.msra.mxu3 %v118_v39  ;;  %149 = vmatpush.msra.mxu0 %v85_v44  ;;  %v283_v63 = vld [vmem:[#allocation5 + $0x3f8] sm:$0xff]  ;;  %v109_v1 = vld [vmem:[#allocation5 + $0x110] sm:$0xff]  ;;  %v281_v3 = vld [vmem:[#allocation5 + $0x3e8] sm:$0xff] }
  0x25   :  { %190 = vmatpush.msra.mxu2 %v84_v42  ;;  %169 = vmatpush.msra.mxu1 %v117_v45  ;;  %v75_v4 = vld [vmem:[#allocation5] sm:$0xff]  ;;  %v247_v6 = vld [vmem:[#allocation5 + $0x2d8] sm:$0xff]  ;;  %v250_v8 = vld [vmem:[#allocation5 + $0x2f0] sm:$0xff] }
  0x26   :  { %210 = vmatpush.msra.mxu3 %v116_v43  ;;  %150 = vmatpush.msra.mxu0 %v83_v48  ;;  %v107_v5 = vld [vmem:[#allocation5 + $0x100] sm:$0xff]  ;;  %v279_v7 = vld [vmem:[#allocation5 + $0x3d8] sm:$0xff]  ;;  %v282_v9 = vld [vmem:[#allocation5 + $0x3f0] sm:$0xff] }
  0x27   :  { %191 = vmatpush.msra.mxu2 %v82_v46  ;;  %170 = vmatpush.msra.mxu1 %v115_v49  ;;  %v245_v10 = vld [vmem:[#allocation5 + $0x2c8] sm:$0xff]  ;;  %v248_v12 = vld [vmem:[#allocation5 + $0x2e0] sm:$0xff]  ;;  %v243_v14 = vld [vmem:[#allocation5 + $0x2b8] sm:$0xff] }
  0x28   :  { %211 = vmatpush.msra.mxu3 %v114_v47  ;;  %151 = vmatpush.msra.mxu0 %v81_v52  ;;  %v277_v11 = vld [vmem:[#allocation5 + $0x3c8] sm:$0xff]  ;;  %v280_v13 = vld [vmem:[#allocation5 + $0x3e0] sm:$0xff]  ;;  %v275_v15 = vld [vmem:[#allocation5 + $0x3b8] sm:$0xff] }
  0x29   :  { %192 = vmatpush.msra.mxu2 %v80_v50  ;;  %171 = vmatpush.msra.mxu1 %v113_v53  ;;  %v246_v16 = vld [vmem:[#allocation5 + $0x2d0] sm:$0xff]  ;;  %v241_v18 = vld [vmem:[#allocation5 + $0x2a8] sm:$0xff]  ;;  %v244_v20 = vld [vmem:[#allocation5 + $0x2c0] sm:$0xff] }
  0x2a   :  { %212 = vmatpush.msra.mxu3 %v112_v51  ;;  %152 = vmatpush.msra.mxu0 %v79_v56  ;;  %v278_v17 = vld [vmem:[#allocation5 + $0x3d0] sm:$0xff]  ;;  %v273_v19 = vld [vmem:[#allocation5 + $0x3a8] sm:$0xff]  ;;  %v276_v21 = vld [vmem:[#allocation5 + $0x3c0] sm:$0xff] }
  0x2b   :  { %193 = vmatpush.msra.mxu2 %v78_v54  ;;  %172 = vmatpush.msra.mxu1 %v111_v57  ;;  %v239_v22 = vld [vmem:[#allocation5 + $0x298] sm:$0xff]  ;;  %v242_v24 = vld [vmem:[#allocation5 + $0x2b0] sm:$0xff]  ;;  %v237_v26 = vld [vmem:[#allocation5 + $0x288] sm:$0xff] }
  0x2c   :  { %213 = vmatpush.msra.mxu3 %v110_v55  ;;  %153 = vmatpush.msra.mxu0 %v77_v0  ;;  %v271_v23 = vld [vmem:[#allocation5 + $0x398] sm:$0xff]  ;;  %v274_v25 = vld [vmem:[#allocation5 + $0x3b0] sm:$0xff]  ;;  %v269_v27 = vld [vmem:[#allocation5 + $0x388] sm:$0xff] }
  0x2d   :  { %194 = vmatpush.msra.mxu2 %v76_v58  ;;  %173 = vmatpush.msra.mxu1 %v109_v1  ;;  %v240_v28 = vld [vmem:[#allocation5 + $0x2a0] sm:$0xff]  ;;  %v235_v30 = vld [vmem:[#allocation5 + $0x278] sm:$0xff]  ;;  %v238_v32 = vld [vmem:[#allocation5 + $0x290] sm:$0xff] }
  0x2e   :  { %214 = vmatpush.msra.mxu3 %v108_v59  ;;  %195 = vmatmul.f32.vlgmr.msra.gmra.mxu2 %v2757_v60  ;;  %v272_v29 = vld [vmem:[#allocation5 + $0x3a0] sm:$0xff]  ;;  %v267_v31 = vld [vmem:[#allocation5 + $0x378] sm:$0xff]  ;;  %v270_v33 = vld [vmem:[#allocation5 + $0x390] sm:$0xff] }
  0x2f   :  { %215 = vmatmul.f32.vlgmr.msra.gmra.mxu3 %v2759_v61  ;;  %324 = vmatpush.msrb.mxu2 %v251_v62  ;;  %v233_v34 = vld [vmem:[#allocation5 + $0x268] sm:$0xff]  ;;  %v236_v36 = vld [vmem:[#allocation5 + $0x280] sm:$0xff]  ;;  %v231_v38 = vld [vmem:[#allocation5 + $0x258] sm:$0xff] }
  0x30   :  { %344 = vmatpush.msrb.mxu3 %v283_v63  ;;  %154 = vmatpush.msra.mxu0 %v75_v4  ;;  %v265_v35 = vld [vmem:[#allocation5 + $0x368] sm:$0xff]  ;;  %v268_v37 = vld [vmem:[#allocation5 + $0x380] sm:$0xff]  ;;  %v263_v39 = vld [vmem:[#allocation5 + $0x358] sm:$0xff] }
  0x31   :  { %325 = vmatpush.msrb.mxu2 %v249_v2  ;;  %174 = vmatpush.msra.mxu1 %v107_v5  ;;  %v234_v40 = vld [vmem:[#allocation5 + $0x270] sm:$0xff]  ;;  %v229_v42 = vld [vmem:[#allocation5 + $0x248] sm:$0xff]  ;;  %v232_v44 = vld [vmem:[#allocation5 + $0x260] sm:$0xff] }
  0x32   :  { %345 = vmatpush.msrb.mxu3 %v281_v3  ;;  %155 = vmatmul.f32.vlgmr.msra.gmra.mxu0 %v2757_v60  ;;  %v266_v41 = vld [vmem:[#allocation5 + $0x370] sm:$0xff]  ;;  %v261_v43 = vld [vmem:[#allocation5 + $0x348] sm:$0xff]  ;;  %v264_v45 = vld [vmem:[#allocation5 + $0x360] sm:$0xff] }
  0x33   :  { %326 = vmatpush.msrb.mxu2 %v247_v6  ;;  %175 = vmatmul.f32.vlgmr.msra.gmra.mxu1 %v2759_v61  ;;  %v227_v46 = vld [vmem:[#allocation5 + $0x238] sm:$0xff]  ;;  %v230_v48 = vld [vmem:[#allocation5 + $0x250] sm:$0xff]  ;;  %v225_v50 = vld [vmem:[#allocation5 + $0x228] sm:$0xff] }
  0x34   :  { %346 = vmatpush.msrb.mxu3 %v279_v7  ;;  %284 = vmatpush.msrb.mxu0 %v250_v8  ;;  %v259_v47 = vld [vmem:[#allocation5 + $0x338] sm:$0xff]  ;;  %v262_v49 = vld [vmem:[#allocation5 + $0x350] sm:$0xff]  ;;  %v257_v51 = vld [vmem:[#allocation5 + $0x328] sm:$0xff] }
  0x35   :  { %304 = vmatpush.msrb.mxu1 %v282_v9  ;;  %327 = vmatpush.msrb.mxu2 %v245_v10  ;;  %v228_v52 = vld [vmem:[#allocation5 + $0x240] sm:$0xff]  ;;  %v223_v54 = vld [vmem:[#allocation5 + $0x218] sm:$0xff]  ;;  %v226_v56 = vld [vmem:[#allocation5 + $0x230] sm:$0xff] }
  0x36   :  { %347 = vmatpush.msrb.mxu3 %v277_v11  ;;  %285 = vmatpush.msrb.mxu0 %v248_v12  ;;  %v260_v53 = vld [vmem:[#allocation5 + $0x340] sm:$0xff]  ;;  %v255_v55 = vld [vmem:[#allocation5 + $0x318] sm:$0xff]  ;;  %v258_v57 = vld [vmem:[#allocation5 + $0x330] sm:$0xff] }
  0x37   :  { %305 = vmatpush.msrb.mxu1 %v280_v13  ;;  %328 = vmatpush.msrb.mxu2 %v243_v14  ;;  %v221_v58 = vld [vmem:[#allocation5 + $0x208] sm:$0xff]  ;;  %v224_v62 = vld [vmem:[#allocation5 + $0x220] sm:$0xff]  ;;  %v222_v0 = vld [vmem:[#allocation5 + $0x210] sm:$0xff] }
  0x38   :  { %348 = vmatpush.msrb.mxu3 %v275_v15  ;;  %286 = vmatpush.msrb.mxu0 %v246_v16  ;;  %v253_v59 = vld [vmem:[#allocation5 + $0x308] sm:$0xff]  ;;  %v256_v63 = vld [vmem:[#allocation5 + $0x320] sm:$0xff]  ;;  %v254_v1 = vld [vmem:[#allocation5 + $0x310] sm:$0xff] }
  0x39   :  { %306 = vmatpush.msrb.mxu1 %v278_v17  ;;  %329 = vmatpush.msrb.mxu2 %v241_v18  ;;  %v220_v2 = vld [vmem:[#allocation5 + $0x200] sm:$0xff]  ;;  %v485_v9 = vld [vmem:[#allocation5 + $0x4f8] sm:$0xff]  ;;  %v74_v12 = vld [vmem:[%s3005_s2] sm:$0xff] }
  0x3a   :  { %349 = vmatpush.msrb.mxu3 %v273_v19  ;;  %287 = vmatpush.msrb.mxu0 %v244_v20  ;;  %v252_v3 = vld [vmem:[#allocation5 + $0x300] sm:$0xff]  ;;  %v517_v11 = vld [vmem:[#allocation5 + $0x5f8] sm:$0xff]  ;;  %v483_v13 = vld [vmem:[#allocation5 + $0x4e8] sm:$0xff] }
  0x3b   :  { %307 = vmatpush.msrb.mxu1 %v276_v21  ;;  %330 = vmatpush.msrb.mxu2 %v239_v22  ;;  %v515_v14 = vld [vmem:[#allocation5 + $0x5e8] sm:$0xff]  ;;  %v481_v15 = vld [vmem:[#allocation5 + $0x4d8] sm:$0xff] }
  0x3c   :  { %350 = vmatpush.msrb.mxu3 %v271_v23  ;;  %288 = vmatpush.msrb.mxu0 %v242_v24  ;;  %v513_v16 = vld [vmem:[#allocation5 + $0x5d8] sm:$0xff]  ;;  %v479_v17 = vld [vmem:[#allocation5 + $0x4c8] sm:$0xff] }
  0x3d   :  { %308 = vmatpush.msrb.mxu1 %v274_v25  ;;  %331 = vmatpush.msrb.mxu2 %v237_v26  ;;  %v511_v18 = vld [vmem:[#allocation5 + $0x5c8] sm:$0xff]  ;;  %v477_v19 = vld [vmem:[#allocation5 + $0x4b8] sm:$0xff] }
  0x3e   :  { %351 = vmatpush.msrb.mxu3 %v269_v27  ;;  %289 = vmatpush.msrb.mxu0 %v240_v28  ;;  %v509_v20 = vld [vmem:[#allocation5 + $0x5b8] sm:$0xff]  ;;  %v475_v21 = vld [vmem:[#allocation5 + $0x4a8] sm:$0xff] }
  0x3f   :  { %309 = vmatpush.msrb.mxu1 %v272_v29  ;;  %332 = vmatpush.msrb.mxu2 %v235_v30  ;;  %v507_v22 = vld [vmem:[#allocation5 + $0x5a8] sm:$0xff]  ;;  %v473_v23 = vld [vmem:[#allocation5 + $0x498] sm:$0xff] }
  0x40   :  { %352 = vmatpush.msrb.mxu3 %v267_v31  ;;  %290 = vmatpush.msrb.mxu0 %v238_v32  ;;  %v505_v24 = vld [vmem:[#allocation5 + $0x598] sm:$0xff]  ;;  %v471_v25 = vld [vmem:[#allocation5 + $0x488] sm:$0xff] }
  0x41   :  { %310 = vmatpush.msrb.mxu1 %v270_v33  ;;  %333 = vmatpush.msrb.mxu2 %v233_v34  ;;  %v503_v26 = vld [vmem:[#allocation5 + $0x588] sm:$0xff]  ;;  %v469_v27 = vld [vmem:[#allocation5 + $0x478] sm:$0xff] }
  0x42   :  { %353 = vmatpush.msrb.mxu3 %v265_v35  ;;  %291 = vmatpush.msrb.mxu0 %v236_v36  ;;  %v501_v28 = vld [vmem:[#allocation5 + $0x578] sm:$0xff]  ;;  %v467_v29 = vld [vmem:[#allocation5 + $0x468] sm:$0xff] }
  0x43   :  { %311 = vmatpush.msrb.mxu1 %v268_v37  ;;  %334 = vmatpush.msrb.mxu2 %v231_v38  ;;  %v499_v30 = vld [vmem:[#allocation5 + $0x568] sm:$0xff]  ;;  %v465_v31 = vld [vmem:[#allocation5 + $0x458] sm:$0xff] }
  0x44   :  { %354 = vmatpush.msrb.mxu3 %v263_v39  ;;  %292 = vmatpush.msrb.mxu0 %v234_v40  ;;  %v497_v32 = vld [vmem:[#allocation5 + $0x558] sm:$0xff]  ;;  %v463_v33 = vld [vmem:[#allocation5 + $0x448] sm:$0xff] }
  0x45   :  { %312 = vmatpush.msrb.mxu1 %v266_v41  ;;  %335 = vmatpush.msrb.mxu2 %v229_v42  ;;  %v495_v34 = vld [vmem:[#allocation5 + $0x548] sm:$0xff]  ;;  %v461_v35 = vld [vmem:[#allocation5 + $0x438] sm:$0xff] }
  0x46   :  { %355 = vmatpush.msrb.mxu3 %v261_v43  ;;  %293 = vmatpush.msrb.mxu0 %v232_v44  ;;  %v493_v36 = vld [vmem:[#allocation5 + $0x538] sm:$0xff]  ;;  %v459_v37 = vld [vmem:[#allocation5 + $0x428] sm:$0xff] }
  0x47   :  { %313 = vmatpush.msrb.mxu1 %v264_v45  ;;  %336 = vmatpush.msrb.mxu2 %v227_v46  ;;  %v491_v38 = vld [vmem:[#allocation5 + $0x528] sm:$0xff]  ;;  %v457_v39 = vld [vmem:[#allocation5 + $0x418] sm:$0xff] }
  0x48   :  { %356 = vmatpush.msrb.mxu3 %v259_v47  ;;  %294 = vmatpush.msrb.mxu0 %v230_v48  ;;  %v489_v40 = vld [vmem:[#allocation5 + $0x518] sm:$0xff]  ;;  %v455_v41 = vld [vmem:[#allocation5 + $0x408] sm:$0xff]  ;;  %v484_v48 = vld [vmem:[#allocation5 + $0x4f0] sm:$0xff] }
  0x49   :  { %314 = vmatpush.msrb.mxu1 %v262_v49  ;;  %337 = vmatpush.msrb.mxu2 %v225_v50  ;;  %v487_v42 = vld [vmem:[#allocation5 + $0x508] sm:$0xff]  ;;  %v516_v50 = vld [vmem:[#allocation5 + $0x5f0] sm:$0xff] }
  0x4a   :  { %357 = vmatpush.msrb.mxu3 %v257_v51  ;;  %295 = vmatpush.msrb.mxu0 %v228_v52  ;;  %v676_v51 = vld [vmem:[#allocation5 + $0x6f0] sm:$0xff] }
  0x4b   :  { %315 = vmatpush.msrb.mxu1 %v260_v53  ;;  %338 = vmatpush.msrb.mxu2 %v223_v54  ;;  %v708_v52 = vld [vmem:[#allocation5 + $0x7f0] sm:$0xff]  ;;  %v482_v53 = vld [vmem:[#allocation5 + $0x4e0] sm:$0xff] }
  0x4c   :  { %358 = vmatpush.msrb.mxu3 %v255_v55  ;;  %296 = vmatpush.msrb.mxu0 %v226_v56  ;;  %v514_v54 = vld [vmem:[#allocation5 + $0x5e0] sm:$0xff] }
  0x4d   :  { %316 = vmatpush.msrb.mxu1 %v258_v57  ;;  %339 = vmatpush.msrb.mxu2 %v221_v58  ;;  %v674_v55 = vld [vmem:[#allocation5 + $0x6e0] sm:$0xff]  ;;  %v480_v57 = vld [vmem:[#allocation5 + $0x4d0] sm:$0xff] }
  0x4e   :  { %359 = vmatpush.msrb.mxu3 %v253_v59  ;;  %340 = vmatmul.f32.vlgmr.msrb.gmra.mxu2 %v2757_v60  ;;  %v706_v56 = vld [vmem:[#allocation5 + $0x7e0] sm:$0xff]  ;;  %v512_v58 = vld [vmem:[#allocation5 + $0x5d0] sm:$0xff] }
  0x4f   :  { %360 = vmatmul.f32.vlgmr.msrb.gmra.mxu3 %v2759_v61  ;;  %297 = vmatpush.msrb.mxu0 %v224_v62  ;;  %v672_v59 = vld [vmem:[#allocation5 + $0x6d0] sm:$0xff] }
  0x50   :  { %317 = vmatpush.msrb.mxu1 %v256_v63  ;;  %v704_v62 = vld [vmem:[#allocation5 + $0x7d0] sm:$0xff]  ;;  %v478_v63 = vld [vmem:[#allocation5 + $0x4c0] sm:$0xff] }
  0x51   :  { %298 = vmatpush.msrb.mxu0 %v222_v0  ;;  %v510_v0 = vld [vmem:[#allocation5 + $0x5c0] sm:$0xff] }
  0x52   :  { %318 = vmatpush.msrb.mxu1 %v254_v1  ;;  %v670_v1 = vld [vmem:[#allocation5 + $0x6c0] sm:$0xff] }
  0x53   :  { %299 = vmatpush.msrb.mxu0 %v220_v2  ;;  %v702_v2 = vld [vmem:[#allocation5 + $0x7c0] sm:$0xff] }
  0x54   :  { %319 = vmatpush.msrb.mxu1 %v252_v3  ;;  %300 = vmatmul.f32.vlgmr.msrb.gmra.mxu0 %v2757_v60  ;;  %v476_v3 = vld [vmem:[#allocation5 + $0x4b0] sm:$0xff] }
  0x55   :  { %320 = vmatmul.f32.vlgmr.msrb.gmra.mxu1 %v2759_v61 }
  0xaf   :  { %v156_v4 = vpop.f32.mrf.mxu0 }
  0xb0   :  { %v176_v5 = vpop.f32.mrf.mxu1 }
  0xb1   :  { %v177_v6 = vadd.f32 %v176_v5, %v156_v4  ;;  %v196_v7 = vpop.f32.mrf.mxu2  ;;  %v508_v4 = vld [vmem:[#allocation5 + $0x5b0] sm:$0xff] }
  0xb2   :  { %v216_v8 = vpop.f32.mrf.mxu3  ;;  %v668_v5 = vld [vmem:[#allocation5 + $0x6b0] sm:$0xff] }
  0xb3   :  { %v217_v10 = vadd.f32 %v216_v8, %v196_v7  ;;  %428 = vmatpush.msra.mxu2 %v177_v6  ;;  %v700_v6 = vld [vmem:[#allocation5 + $0x7b0] sm:$0xff]  ;;  %v474_v7 = vld [vmem:[#allocation5 + $0x4a0] sm:$0xff] }
  0xb4   :  { %2552 = vmatmul.msk.f32.vlgmr.msra.gmra.mxu2 %vm366_vm0, %v74_v12  ;;  %v506_v8 = vld [vmem:[#allocation5 + $0x5a0] sm:$0xff] }
  0xb5   :  { %448 = vmatpush.msra.mxu3 %v217_v10  ;;  %558 = vmatpush.msrb.mxu2 %v485_v9  ;;  %v666_v9 = vld [vmem:[#allocation5 + $0x6a0] sm:$0xff] }
  0xb6   :  { %2553 = vmatmul.msk.f32.vlgmr.msra.gmra.mxu3 %vm366_vm0, %v74_v12  ;;  %v698_v10 = vld [vmem:[#allocation5 + $0x7a0] sm:$0xff]  ;;  %v504_v12 = vld [vmem:[#allocation5 + $0x590] sm:$0xff] }
  0xb7   :  { %578 = vmatpush.msrb.mxu3 %v517_v11  ;;  %559 = vmatpush.msrb.mxu2 %v483_v13  ;;  %v472_v11 = vld [vmem:[#allocation5 + $0x490] sm:$0xff] }
  0xb8   :  { %v664_v13 = vld [vmem:[#allocation5 + $0x690] sm:$0xff] }
  0xb9   :  { %579 = vmatpush.msrb.mxu3 %v515_v14  ;;  %560 = vmatpush.msrb.mxu2 %v481_v15  ;;  %v696_v14 = vld [vmem:[#allocation5 + $0x790] sm:$0xff]  ;;  %v470_v15 = vld [vmem:[#allocation5 + $0x480] sm:$0xff] }
  0xbb   :  { %580 = vmatpush.msrb.mxu3 %v513_v16  ;;  %561 = vmatpush.msrb.mxu2 %v479_v17  ;;  %v502_v16 = vld [vmem:[#allocation5 + $0x580] sm:$0xff] }
  0xbc   :  { %v662_v17 = vld [vmem:[#allocation5 + $0x680] sm:$0xff] }
  0xbd   :  { %581 = vmatpush.msrb.mxu3 %v511_v18  ;;  %562 = vmatpush.msrb.mxu2 %v477_v19  ;;  %v694_v18 = vld [vmem:[#allocation5 + $0x780] sm:$0xff]  ;;  %v468_v19 = vld [vmem:[#allocation5 + $0x470] sm:$0xff] }
  0xbf   :  { %582 = vmatpush.msrb.mxu3 %v509_v20  ;;  %563 = vmatpush.msrb.mxu2 %v475_v21  ;;  %v500_v20 = vld [vmem:[#allocation5 + $0x570] sm:$0xff] }
  0xc0   :  { %v660_v21 = vld [vmem:[#allocation5 + $0x670] sm:$0xff] }
  0xc1   :  { %583 = vmatpush.msrb.mxu3 %v507_v22  ;;  %564 = vmatpush.msrb.mxu2 %v473_v23  ;;  %v692_v22 = vld [vmem:[#allocation5 + $0x770] sm:$0xff]  ;;  %v466_v23 = vld [vmem:[#allocation5 + $0x460] sm:$0xff] }
  0xc3   :  { %584 = vmatpush.msrb.mxu3 %v505_v24  ;;  %565 = vmatpush.msrb.mxu2 %v471_v25  ;;  %v498_v24 = vld [vmem:[#allocation5 + $0x560] sm:$0xff] }
  0xc4   :  { %v658_v25 = vld [vmem:[#allocation5 + $0x660] sm:$0xff] }
  0xc5   :  { %585 = vmatpush.msrb.mxu3 %v503_v26  ;;  %566 = vmatpush.msrb.mxu2 %v469_v27  ;;  %v690_v26 = vld [vmem:[#allocation5 + $0x760] sm:$0xff]  ;;  %v464_v27 = vld [vmem:[#allocation5 + $0x450] sm:$0xff] }
  0xc7   :  { %586 = vmatpush.msrb.mxu3 %v501_v28  ;;  %567 = vmatpush.msrb.mxu2 %v467_v29  ;;  %v496_v28 = vld [vmem:[#allocation5 + $0x550] sm:$0xff] }
  0xc8   :  { %v656_v29 = vld [vmem:[#allocation5 + $0x650] sm:$0xff] }
  0xc9   :  { %587 = vmatpush.msrb.mxu3 %v499_v30  ;;  %568 = vmatpush.msrb.mxu2 %v465_v31  ;;  %v688_v30 = vld [vmem:[#allocation5 + $0x750] sm:$0xff]  ;;  %v462_v31 = vld [vmem:[#allocation5 + $0x440] sm:$0xff] }
  0xcb   :  { %588 = vmatpush.msrb.mxu3 %v497_v32  ;;  %569 = vmatpush.msrb.mxu2 %v463_v33  ;;  %v494_v32 = vld [vmem:[#allocation5 + $0x540] sm:$0xff] }
  0xcc   :  { %v654_v33 = vld [vmem:[#allocation5 + $0x640] sm:$0xff] }
  0xcd   :  { %589 = vmatpush.msrb.mxu3 %v495_v34  ;;  %570 = vmatpush.msrb.mxu2 %v461_v35  ;;  %v686_v34 = vld [vmem:[#allocation5 + $0x740] sm:$0xff]  ;;  %v2549_v35 = vld [vmem:[%s3005_s2 + $0x8] sm:$0xff] }
  0xcf   :  { %590 = vmatpush.msrb.mxu3 %v493_v36  ;;  %571 = vmatpush.msrb.mxu2 %v459_v37  ;;  %v460_v36 = vld [vmem:[#allocation5 + $0x430] sm:$0xff] }
  0xd0   :  { %v492_v37 = vld [vmem:[#allocation5 + $0x530] sm:$0xff] }
  0xd1   :  { %591 = vmatpush.msrb.mxu3 %v491_v38  ;;  %572 = vmatpush.msrb.mxu2 %v457_v39  ;;  %v301_v43 = vpop.f32.mrf.mxu0  ;;  %v341_v46 = vpop.f32.mrf.mxu2  ;;  %v652_v38 = vld [vmem:[#allocation5 + $0x630] sm:$0xff] }
  0xd2   :  { %v321_v44 = vpop.f32.mrf.mxu1  ;;  %v361_v47 = vpop.f32.mrf.mxu3  ;;  %v684_v39 = vld [vmem:[#allocation5 + $0x730] sm:$0xff] }
  0xd3   :  { %592 = vmatpush.msrb.mxu3 %v489_v40  ;;  %v322_v45 = vadd.f32 %v321_v44, %v301_v43  ;;  %573 = vmatpush.msrb.mxu2 %v455_v41  ;;  %v362_v49 = vadd.f32 %v361_v47, %v341_v46  ;;  %v458_v40 = vld [vmem:[#allocation5 + $0x420] sm:$0xff]  ;;  %v456_v44 = vld [vmem:[#allocation5 + $0x410] sm:$0xff] }
  0xd4   :  { %574 = vmatmul.f32.vlgmr.msrb.gmra.mxu2 %v2757_v60  ;;  %v490_v41 = vld [vmem:[#allocation5 + $0x520] sm:$0xff]  ;;  %v648_v46 = vld [vmem:[#allocation5 + $0x610] sm:$0xff] }
  0xd5   :  { %593 = vmatpush.msrb.mxu3 %v487_v42  ;;  %385 = vmatpush.msra.mxu0 %v322_v45  ;;  %v650_v42 = vld [vmem:[#allocation5 + $0x620] sm:$0xff]  ;;  %v488_v45 = vld [vmem:[#allocation5 + $0x510] sm:$0xff] }
  0xd6   :  { %594 = vmatmul.f32.vlgmr.msrb.gmra.mxu3 %v2759_v61  ;;  %405 = vmatpush.msra.mxu1 %v362_v49  ;;  %v682_v43 = vld [vmem:[#allocation5 + $0x720] sm:$0xff]  ;;  %v680_v47 = vld [vmem:[#allocation5 + $0x710] sm:$0xff] }
  0xd7   :  { %518 = vmatpush.msrb.mxu0 %v484_v48  ;;  %710 = vmatpush.msra.mxu2 %v676_v51  ;;  %v454_v48 = vld [vmem:[#allocation5 + $0x400] sm:$0xff] }
  0xd8   :  { %538 = vmatpush.msrb.mxu1 %v516_v50  ;;  %730 = vmatpush.msra.mxu3 %v708_v52  ;;  %v486_v49 = vld [vmem:[#allocation5 + $0x500] sm:$0xff] }
  0xd9   :  { %519 = vmatpush.msrb.mxu0 %v482_v53  ;;  %711 = vmatpush.msra.mxu2 %v674_v55  ;;  %v646_v50 = vld [vmem:[#allocation5 + $0x600] sm:$0xff] }
  0xda   :  { %539 = vmatpush.msrb.mxu1 %v514_v54  ;;  %731 = vmatpush.msra.mxu3 %v706_v56  ;;  %v678_v51 = vld [vmem:[#allocation5 + $0x700] sm:$0xff] }
  0xdb   :  { %520 = vmatpush.msrb.mxu0 %v480_v57  ;;  %712 = vmatpush.msra.mxu2 %v672_v59  ;;  %v2554_v57 = vld [vmem:[%s3005_s2 + $0x10] sm:$0xff]  ;;  %v707_v59 = vld [vmem:[#allocation5 + $0x7e8] sm:$0xff] }
  0xdc   :  { %540 = vmatpush.msrb.mxu1 %v512_v58  ;;  %732 = vmatpush.msra.mxu3 %v704_v62  ;;  %v709_v58 = vld [vmem:[#allocation5 + $0x7f8] sm:$0xff] }
  0xdd   :  { %521 = vmatpush.msrb.mxu0 %v478_v63  ;;  %713 = vmatpush.msra.mxu2 %v670_v1  ;;  %v705_v62 = vld [vmem:[#allocation5 + $0x7d8] sm:$0xff]  ;;  %v703_v63 = vld [vmem:[#allocation5 + $0x7c8] sm:$0xff] }
  0xde   :  { %541 = vmatpush.msrb.mxu1 %v510_v0  ;;  %733 = vmatpush.msra.mxu3 %v702_v2  ;;  %v701_v0 = vld [vmem:[#allocation5 + $0x7b8] sm:$0xff]  ;;  %v699_v1 = vld [vmem:[#allocation5 + $0x7a8] sm:$0xff] }
  0xdf   :  { %522 = vmatpush.msrb.mxu0 %v476_v3  ;;  %714 = vmatpush.msra.mxu2 %v668_v5  ;;  %v697_v2 = vld [vmem:[#allocation5 + $0x798] sm:$0xff]  ;;  %v695_v3 = vld [vmem:[#allocation5 + $0x788] sm:$0xff] }
  0xe0   :  { %542 = vmatpush.msrb.mxu1 %v508_v4  ;;  %734 = vmatpush.msra.mxu3 %v700_v6  ;;  %v693_v4 = vld [vmem:[#allocation5 + $0x778] sm:$0xff] }
  0xe1   :  { %523 = vmatpush.msrb.mxu0 %v474_v7  ;;  %715 = vmatpush.msra.mxu2 %v666_v9 }
  0xe2   :  { %543 = vmatpush.msrb.mxu1 %v506_v8  ;;  %735 = vmatpush.msra.mxu3 %v698_v10  ;;  %v691_v8 = vld [vmem:[#allocation5 + $0x768] sm:$0xff]  ;;  %v689_v10 = vld [vmem:[#allocation5 + $0x758] sm:$0xff] }
  0xe3   :  { %524 = vmatpush.msrb.mxu0 %v472_v11  ;;  %716 = vmatpush.msra.mxu2 %v664_v13  ;;  %v687_v11 = vld [vmem:[#allocation5 + $0x748] sm:$0xff] }
  0xe4   :  { %544 = vmatpush.msrb.mxu1 %v504_v12  ;;  %736 = vmatpush.msra.mxu3 %v696_v14  ;;  %v685_v12 = vld [vmem:[#allocation5 + $0x738] sm:$0xff]  ;;  %v683_v14 = vld [vmem:[#allocation5 + $0x728] sm:$0xff] }
  0xe5   :  { %525 = vmatpush.msrb.mxu0 %v470_v15  ;;  %717 = vmatpush.msra.mxu2 %v662_v17  ;;  %v681_v17 = vld [vmem:[#allocation5 + $0x718] sm:$0xff] }
  0xe6   :  { %545 = vmatpush.msrb.mxu1 %v502_v16  ;;  %737 = vmatpush.msra.mxu3 %v694_v18  ;;  %v677_v18 = vld [vmem:[#allocation5 + $0x6f8] sm:$0xff] }
  0xe7   :  { %526 = vmatpush.msrb.mxu0 %v468_v19  ;;  %718 = vmatpush.msra.mxu2 %v660_v21  ;;  %v679_v19 = vld [vmem:[#allocation5 + $0x708] sm:$0xff]  ;;  %v900_v21 = vld [vmem:[#allocation5 + $0x9f0] sm:$0xff] }
  0xe8   :  { %546 = vmatpush.msrb.mxu1 %v500_v20  ;;  %738 = vmatpush.msra.mxu3 %v692_v22  ;;  %v675_v20 = vld [vmem:[#allocation5 + $0x6e8] sm:$0xff] }
  0xe9   :  { %527 = vmatpush.msrb.mxu0 %v466_v23  ;;  %719 = vmatpush.msra.mxu2 %v658_v25  ;;  %v673_v23 = vld [vmem:[#allocation5 + $0x6d8] sm:$0xff]  ;;  %v898_v25 = vld [vmem:[#allocation5 + $0x9e0] sm:$0xff] }
  0xea   :  { %547 = vmatpush.msrb.mxu1 %v498_v24  ;;  %739 = vmatpush.msra.mxu3 %v690_v26 }
  0xeb   :  { %528 = vmatpush.msrb.mxu0 %v464_v27  ;;  %720 = vmatpush.msra.mxu2 %v656_v29  ;;  %v671_v27 = vld [vmem:[#allocation5 + $0x6c8] sm:$0xff]  ;;  %v896_v29 = vld [vmem:[#allocation5 + $0x9d0] sm:$0xff] }
  0xec   :  { %548 = vmatpush.msrb.mxu1 %v496_v28  ;;  %740 = vmatpush.msra.mxu3 %v688_v30  ;;  %v2798_v28 = vld [vmem:[%s3005_s2 + $0x18] sm:$0xff]  ;;  %v669_v30 = vld [vmem:[#allocation5 + $0x6b8] sm:$0xff] }
  0xed   :  { %529 = vmatpush.msrb.mxu0 %v462_v31  ;;  %721 = vmatpush.msra.mxu2 %v654_v33  ;;  %v894_v31 = vld [vmem:[#allocation5 + $0x9c0] sm:$0xff]  ;;  %v892_v33 = vld [vmem:[#allocation5 + $0x9b0] sm:$0xff] }
  0xee   :  { %549 = vmatpush.msrb.mxu1 %v494_v32  ;;  %741 = vmatpush.msra.mxu3 %v686_v34  ;;  %v667_v32 = vld [vmem:[#allocation5 + $0x6a8] sm:$0xff]  ;;  %v665_v34 = vld [vmem:[#allocation5 + $0x698] sm:$0xff] }
  0xef   :  { %2550 = vmatmul.msk.f32.vlgmr.msra.gmra.mxu0 %vm366_vm0, %v2549_v35  ;;  %2551 = vmatmul.msk.f32.vlgmr.msra.gmra.mxu1 %vm366_vm0, %v2549_v35  ;;  %v890_v35 = vld [vmem:[#allocation5 + $0x9a0] sm:$0xff] }
  0xf0   :  { %530 = vmatpush.msrb.mxu0 %v460_v36  ;;  %550 = vmatpush.msrb.mxu1 %v492_v37  ;;  %v663_v36 = vld [vmem:[#allocation5 + $0x688] sm:$0xff]  ;;  %v888_v37 = vld [vmem:[#allocation5 + $0x990] sm:$0xff] }
  0xf1   :  { %722 = vmatpush.msra.mxu2 %v652_v38  ;;  %742 = vmatpush.msra.mxu3 %v684_v39  ;;  %v661_v38 = vld [vmem:[#allocation5 + $0x678] sm:$0xff]  ;;  %v886_v39 = vld [vmem:[#allocation5 + $0x980] sm:$0xff] }
  0xf2   :  { %531 = vmatpush.msrb.mxu0 %v458_v40  ;;  %551 = vmatpush.msrb.mxu1 %v490_v41  ;;  %v659_v40 = vld [vmem:[#allocation5 + $0x668] sm:$0xff]  ;;  %v884_v41 = vld [vmem:[#allocation5 + $0x970] sm:$0xff] }
  0xf3   :  { %723 = vmatpush.msra.mxu2 %v650_v42  ;;  %743 = vmatpush.msra.mxu3 %v682_v43  ;;  %v657_v42 = vld [vmem:[#allocation5 + $0x658] sm:$0xff]  ;;  %v882_v43 = vld [vmem:[#allocation5 + $0x960] sm:$0xff] }
  0xf4   :  { %532 = vmatpush.msrb.mxu0 %v456_v44  ;;  %552 = vmatpush.msrb.mxu1 %v488_v45  ;;  %v655_v44 = vld [vmem:[#allocation5 + $0x648] sm:$0xff]  ;;  %v880_v45 = vld [vmem:[#allocation5 + $0x950] sm:$0xff] }
  0xf5   :  { %724 = vmatpush.msra.mxu2 %v648_v46  ;;  %744 = vmatpush.msra.mxu3 %v680_v47  ;;  %v653_v46 = vld [vmem:[#allocation5 + $0x638] sm:$0xff]  ;;  %v878_v47 = vld [vmem:[#allocation5 + $0x940] sm:$0xff] }
  0xf6   :  { %533 = vmatpush.msrb.mxu0 %v454_v48  ;;  %553 = vmatpush.msrb.mxu1 %v486_v49  ;;  %v651_v48 = vld [vmem:[#allocation5 + $0x628] sm:$0xff]  ;;  %v876_v49 = vld [vmem:[#allocation5 + $0x930] sm:$0xff] }
  0xf7   :  { %725 = vmatpush.msra.mxu2 %v646_v50  ;;  %745 = vmatpush.msra.mxu3 %v678_v51  ;;  %v649_v50 = vld [vmem:[#allocation5 + $0x618] sm:$0xff]  ;;  %v874_v51 = vld [vmem:[#allocation5 + $0x920] sm:$0xff] }
  0xf8   :  { %534 = vmatmul.f32.vlgmr.msrb.gmra.mxu0 %v2757_v60  ;;  %554 = vmatmul.f32.vlgmr.msrb.gmra.mxu1 %v2759_v61 }
  0xf9   :  { %726 = vmatmul.f32.vlgmr.msra.gmra.mxu2 %v2757_v60  ;;  %746 = vmatmul.f32.vlgmr.msra.gmra.mxu3 %v2759_v61 }
 0x137   :  { %v430_v52 = vpop.f32.mrf.mxu2 }
 0x139   :  { %v450_v53 = vpop.f32.mrf.mxu3 }
 0x157   :  { %v575_v54 = vpop.f32.mrf.mxu2 }
 0x159   :  { %v595_v55 = vpop.f32.mrf.mxu3 }
 0x15a   :  { %v596_v56 = vadd.f32 %v595_v55, %v575_v54  ;;  %v868_v54 = vld [vmem:[#allocation5 + $0x8f0] sm:$0xff]  ;;  %v870_v55 = vld [vmem:[#allocation5 + $0x900] sm:$0xff] }
 0x15c   :  { %638 = vmatpush.msra.mxu1 %v596_v56  ;;  %v866_v56 = vld [vmem:[#allocation5 + $0x8e0] sm:$0xff] }
 0x15d   :  { %2556 = vmatmul.msk.f32.vlgmr.msra.gmra.mxu1 %vm366_vm0, %v2554_v57 }
 0x15e   :  { %770 = vmatpush.msrb.mxu1 %v709_v58  ;;  %v862_v58 = vld [vmem:[#allocation5 + $0x8c0] sm:$0xff] }
 0x160   :  { %771 = vmatpush.msrb.mxu1 %v707_v59  ;;  %v860_v59 = vld [vmem:[#allocation5 + $0x8b0] sm:$0xff] }
 0x162   :  { %772 = vmatpush.msrb.mxu1 %v705_v62  ;;  %v858_v62 = vld [vmem:[#allocation5 + $0x8a0] sm:$0xff] }
 0x164   :  { %773 = vmatpush.msrb.mxu1 %v703_v63  ;;  %v856_v63 = vld [vmem:[#allocation5 + $0x890] sm:$0xff] }
 0x166   :  { %774 = vmatpush.msrb.mxu1 %v701_v0  ;;  %v854_v0 = vld [vmem:[#allocation5 + $0x880] sm:$0xff] }
 0x168   :  { %775 = vmatpush.msrb.mxu1 %v699_v1  ;;  %v852_v1 = vld [vmem:[#allocation5 + $0x870] sm:$0xff] }
 0x16a   :  { %776 = vmatpush.msrb.mxu1 %v697_v2  ;;  %v848_v2 = vld [vmem:[#allocation5 + $0x850] sm:$0xff] }
 0x16c   :  { %v387_v5 = vpop.f32.mrf.mxu0  ;;  %777 = vmatpush.msrb.mxu1 %v695_v3  ;;  %v407_v7 = vpop.f32.mrf.mxu1  ;;  %v846_v3 = vld [vmem:[#allocation5 + $0x840] sm:$0xff] }
 0x16d   :  { %v2789_v6 = vadd.f32 %v430_v52, %v387_v5  ;;  %v2791_v9 = vadd.f32 %v450_v53, %v407_v7  ;;  %v647_v52 = vld [vmem:[#allocation5 + $0x608] sm:$0xff]  ;;  %v872_v53 = vld [vmem:[#allocation5 + $0x910] sm:$0xff]  ;;  %v838_v7 = vld [vmem:[#allocation5 + $0x800] sm:$0xff] }
 0x16e   :  { %778 = vmatpush.msrb.mxu1 %v693_v4  ;;  %v844_v4 = vld [vmem:[#allocation5 + $0x830] sm:$0xff] }
 0x16f   :  { %v840_v5 = vld [vmem:[#allocation5 + $0x810] sm:$0xff] }
 0x170   :  { %779 = vmatpush.msrb.mxu1 %v691_v8  ;;  %v2804_v8 = vld [vmem:[#allocation2] sm:$0xff] }
 0x172   :  { %780 = vmatpush.msrb.mxu1 %v689_v10 }
 0x174   :  { %781 = vmatpush.msrb.mxu1 %v687_v11 }
 0x175   :  { %v535_v13 = vpop.f32.mrf.mxu0  ;;  %v555_v15 = vpop.f32.mrf.mxu1 }
 0x176   :  { %782 = vmatpush.msrb.mxu1 %v685_v12  ;;  %v556_v16 = vadd.f32 %v555_v15, %v535_v13  ;;  %v867_v15 = vld [vmem:[#allocation5 + $0x8e8] sm:$0xff] }
 0x178   :  { %783 = vmatpush.msrb.mxu1 %v683_v14  ;;  %618 = vmatpush.msra.mxu0 %v556_v16  ;;  %v869_v14 = vld [vmem:[#allocation5 + $0x8f8] sm:$0xff] }
 0x179   :  { %2555 = vmatmul.msk.f32.vlgmr.msra.gmra.mxu0 %vm366_vm0, %v2554_v57  ;;  %v864_v57 = vld [vmem:[#allocation5 + $0x8d0] sm:$0xff]  ;;  %v865_v16 = vld [vmem:[#allocation5 + $0x8d8] sm:$0xff] }
 0x17a   :  { %784 = vmatpush.msrb.mxu1 %v681_v17  ;;  %750 = vmatpush.msrb.mxu0 %v677_v18  ;;  %v863_v17 = vld [vmem:[#allocation5 + $0x8c8] sm:$0xff]  ;;  %v861_v18 = vld [vmem:[#allocation5 + $0x8b8] sm:$0xff] }
 0x17c   :  { %v727_v22 = vpop.f32.mrf.mxu2  ;;  %785 = vmatpush.msrb.mxu1 %v679_v19  ;;  %v747_v24 = vpop.f32.mrf.mxu3  ;;  %751 = vmatpush.msrb.mxu0 %v675_v20  ;;  %v859_v19 = vld [vmem:[#allocation5 + $0x8a8] sm:$0xff]  ;;  %v857_v20 = vld [vmem:[#allocation5 + $0x898] sm:$0xff] }
 0x17d   :  { %786 = vmatmul.f32.vlgmr.msrb.gmra.mxu1 %v2759_v61  ;;  %v748_v26 = vadd.f32 %v747_v24, %v727_v22  ;;  %v849_v22 = vld [vmem:[#allocation5 + $0x858] sm:$0xff] }
 0x17e   :  { %922 = vmatpush.msra.mxu1 %v900_v21  ;;  %752 = vmatpush.msrb.mxu0 %v673_v23  ;;  %v853_v21 = vld [vmem:[#allocation5 + $0x878] sm:$0xff]  ;;  %v847_v23 = vld [vmem:[#allocation5 + $0x848] sm:$0xff] }
 0x17f   :  { %810 = vmatpush.msrb.mxu2 %v748_v26  ;;  %v845_v24 = vld [vmem:[#allocation5 + $0x838] sm:$0xff] }
 0x180   :  { %923 = vmatpush.msra.mxu1 %v898_v25  ;;  %753 = vmatpush.msrb.mxu0 %v671_v27  ;;  %v843_v25 = vld [vmem:[#allocation5 + $0x828] sm:$0xff] }
 0x181   :  { %2558 = vmatmul.msk.f32.vlgmr.msrb.gmra.mxu2 %vm366_vm0, %v2798_v28 }
 0x182   :  { %924 = vmatpush.msra.mxu1 %v896_v29  ;;  %754 = vmatpush.msrb.mxu0 %v669_v30  ;;  %v841_v29 = vld [vmem:[#allocation5 + $0x818] sm:$0xff] }
 0x183   :  { %942 = vmatpush.msra.mxu2 %v869_v14  ;;  %v1082_v14 = vld [vmem:[#allocation5 + $0xba0] sm:$0xff] }
 0x184   :  { %925 = vmatpush.msra.mxu1 %v894_v31  ;;  %755 = vmatpush.msrb.mxu0 %v667_v32  ;;  %v839_v31 = vld [vmem:[#allocation5 + $0x808] sm:$0xff]  ;;  %v901_v32 = vld [vmem:[#allocation5 + $0x9f8] sm:$0xff] }
 0x185   :  { %943 = vmatpush.msra.mxu2 %v867_v15  ;;  %v1080_v15 = vld [vmem:[#allocation5 + $0xb90] sm:$0xff] }
 0x186   :  { %926 = vmatpush.msra.mxu1 %v892_v33  ;;  %756 = vmatpush.msrb.mxu0 %v665_v34  ;;  %v1060_v33 = vld [vmem:[#allocation5 + $0xaf0] sm:$0xff]  ;;  %v899_v34 = vld [vmem:[#allocation5 + $0x9e8] sm:$0xff] }
 0x187   :  { %944 = vmatpush.msra.mxu2 %v865_v16  ;;  %v1078_v16 = vld [vmem:[#allocation5 + $0xb80] sm:$0xff] }
 0x188   :  { %927 = vmatpush.msra.mxu1 %v890_v35  ;;  %757 = vmatpush.msrb.mxu0 %v663_v36  ;;  %v1058_v35 = vld [vmem:[#allocation5 + $0xae0] sm:$0xff]  ;;  %v897_v36 = vld [vmem:[#allocation5 + $0x9d8] sm:$0xff] }
 0x189   :  { %945 = vmatpush.msra.mxu2 %v863_v17  ;;  %v1076_v17 = vld [vmem:[#allocation5 + $0xb70] sm:$0xff] }
 0x18a   :  { %928 = vmatpush.msra.mxu1 %v888_v37  ;;  %758 = vmatpush.msrb.mxu0 %v661_v38  ;;  %v1056_v37 = vld [vmem:[#allocation5 + $0xad0] sm:$0xff]  ;;  %v895_v38 = vld [vmem:[#allocation5 + $0x9c8] sm:$0xff] }
 0x18b   :  { %946 = vmatpush.msra.mxu2 %v861_v18  ;;  %v1074_v18 = vld [vmem:[#allocation5 + $0xb60] sm:$0xff] }
 0x18c   :  { %929 = vmatpush.msra.mxu1 %v886_v39  ;;  %759 = vmatpush.msrb.mxu0 %v659_v40  ;;  %v1054_v39 = vld [vmem:[#allocation5 + $0xac0] sm:$0xff]  ;;  %v893_v40 = vld [vmem:[#allocation5 + $0x9b8] sm:$0xff] }
 0x18d   :  { %947 = vmatpush.msra.mxu2 %v859_v19  ;;  %v1072_v19 = vld [vmem:[#allocation5 + $0xb50] sm:$0xff] }
 0x18e   :  { %930 = vmatpush.msra.mxu1 %v884_v41  ;;  %760 = vmatpush.msrb.mxu0 %v657_v42  ;;  %v1052_v41 = vld [vmem:[#allocation5 + $0xab0] sm:$0xff]  ;;  %v891_v42 = vld [vmem:[#allocation5 + $0x9a8] sm:$0xff] }
 0x18f   :  { %948 = vmatpush.msra.mxu2 %v857_v20  ;;  %v1070_v20 = vld [vmem:[#allocation5 + $0xb40] sm:$0xff] }
 0x190   :  { %931 = vmatpush.msra.mxu1 %v882_v43  ;;  %761 = vmatpush.msrb.mxu0 %v655_v44  ;;  %v889_v43 = vld [vmem:[#allocation5 + $0x998] sm:$0xff]  ;;  %v1048_v44 = vld [vmem:[#allocation5 + $0xa90] sm:$0xff] }
 0x192   :  { %932 = vmatpush.msra.mxu1 %v880_v45  ;;  %762 = vmatpush.msrb.mxu0 %v653_v46  ;;  %v887_v45 = vld [vmem:[#allocation5 + $0x988] sm:$0xff]  ;;  %v1046_v46 = vld [vmem:[#allocation5 + $0xa80] sm:$0xff] }
 0x194   :  { %933 = vmatpush.msra.mxu1 %v878_v47  ;;  %763 = vmatpush.msrb.mxu0 %v651_v48  ;;  %v885_v47 = vld [vmem:[#allocation5 + $0x978] sm:$0xff]  ;;  %v1044_v48 = vld [vmem:[#allocation5 + $0xa70] sm:$0xff] }
 0x196   :  { %934 = vmatpush.msra.mxu1 %v876_v49  ;;  %764 = vmatpush.msrb.mxu0 %v649_v50  ;;  %v883_v49 = vld [vmem:[#allocation5 + $0x968] sm:$0xff]  ;;  %v1042_v50 = vld [vmem:[#allocation5 + $0xa60] sm:$0xff] }
 0x198   :  { %935 = vmatpush.msra.mxu1 %v874_v51  ;;  %765 = vmatpush.msrb.mxu0 %v647_v52  ;;  %v881_v51 = vld [vmem:[#allocation5 + $0x958] sm:$0xff]  ;;  %v1040_v52 = vld [vmem:[#allocation5 + $0xa50] sm:$0xff] }
 0x199   :  { %766 = vmatmul.f32.vlgmr.msrb.gmra.mxu0 %v2757_v60  ;;  %v850_v60 = vld [vmem:[#allocation5 + $0x860] sm:$0xff] }
 0x19a   :  { %936 = vmatpush.msra.mxu1 %v872_v53  ;;  %902 = vmatpush.msra.mxu0 %v868_v54  ;;  %v879_v53 = vld [vmem:[#allocation5 + $0x948] sm:$0xff]  ;;  %v1038_v54 = vld [vmem:[#allocation5 + $0xa40] sm:$0xff] }
 0x19c   :  { %937 = vmatpush.msra.mxu1 %v870_v55  ;;  %903 = vmatpush.msra.mxu0 %v866_v56  ;;  %v877_v55 = vld [vmem:[#allocation5 + $0x938] sm:$0xff]  ;;  %v1036_v56 = vld [vmem:[#allocation5 + $0xa30] sm:$0xff] }
 0x19d   :  { %938 = vmatmul.f32.vlgmr.msra.gmra.mxu1 %v2759_v61  ;;  %v842_v61 = vld [vmem:[#allocation5 + $0x820] sm:$0xff] }
 0x19e   :  { %904 = vmatpush.msra.mxu0 %v864_v57  ;;  %v875_v57 = vld [vmem:[#allocation5 + $0x928] sm:$0xff] }
 0x1a0   :  { %905 = vmatpush.msra.mxu0 %v862_v58  ;;  %v1034_v58 = vld [vmem:[#allocation5 + $0xa20] sm:$0xff] }
 0x1a2   :  { %906 = vmatpush.msra.mxu0 %v860_v59 }
 0x1a4   :  { %907 = vmatpush.msra.mxu0 %v858_v62  ;;  %v873_v62 = vld [vmem:[#allocation5 + $0x918] sm:$0xff] }
 0x1a6   :  { %908 = vmatpush.msra.mxu0 %v856_v63  ;;  %v1032_v63 = vld [vmem:[#allocation5 + $0xa10] sm:$0xff] }
 0x1a8   :  { %909 = vmatpush.msra.mxu0 %v854_v0 }
 0x1aa   :  { %910 = vmatpush.msra.mxu0 %v852_v1  ;;  %v871_v1 = vld [vmem:[#allocation5 + $0x908] sm:$0xff] }
 0x1ac   :  { %911 = vmatpush.msra.mxu0 %v850_v60 }
 0x1ae   :  { %912 = vmatpush.msra.mxu0 %v848_v2  ;;  %v2819_v2 = vld [vmem:[%s3005_s2 + $0x20] sm:$0xff] }
 0x1b0   :  { %913 = vmatpush.msra.mxu0 %v846_v3  ;;  %v1092_v3 = vld [vmem:[#allocation5 + $0xbf0] sm:$0xff] }
 0x1b2   :  { %914 = vmatpush.msra.mxu0 %v844_v4  ;;  %v1030_v4 = vld [vmem:[#allocation5 + $0xa00] sm:$0xff] }
 0x1b4   :  { %915 = vmatpush.msra.mxu0 %v842_v61  ;;  %v2821_v61 = vld [vmem:[#allocation2 + $0x8] sm:$0xff] }
 0x1b6   :  { %916 = vmatpush.msra.mxu0 %v840_v5  ;;  %v1090_v5 = vld [vmem:[#allocation5 + $0xbe0] sm:$0xff] }
 0x1b8   :  { %917 = vmatpush.msra.mxu0 %v838_v7  ;;  %v1088_v7 = vld [vmem:[#allocation5 + $0xbd0] sm:$0xff] }
 0x1b9   :  { %918 = vmatmul.f32.vlgmr.msra.gmra.mxu0 %v2804_v8 }
 0x1da   :  { %v640_v10 = vpop.f32.mrf.mxu1 }
 0x1db   :  { %v2808_v11 = vadd.f32 %v640_v10, %v2791_v9  ;;  %v855_v9 = vld [vmem:[#allocation5 + $0x888] sm:$0xff]  ;;  %v1086_v10 = vld [vmem:[#allocation5 + $0xbc0] sm:$0xff] }
 0x1dc   :  { %949 = vmatpush.msra.mxu2 %v855_v9  ;;  %v1068_v9 = vld [vmem:[#allocation5 + $0xb30] sm:$0xff] }
 0x1de   :  { %950 = vmatpush.msra.mxu2 %v853_v21  ;;  %v1066_v21 = vld [vmem:[#allocation5 + $0xb20] sm:$0xff] }
 0x1f6   :  { %v620_v12 = vpop.f32.mrf.mxu0 }
 0x1f7   :  { %v2811_v13 = vadd.f32 %v620_v12, %v2789_v6  ;;  %v851_v6 = vld [vmem:[#allocation5 + $0x868] sm:$0xff]  ;;  %v1084_v12 = vld [vmem:[#allocation5 + $0xbb0] sm:$0xff] }
 0x1f8   :  { %951 = vmatpush.msra.mxu2 %v851_v6  ;;  %v1064_v6 = vld [vmem:[#allocation5 + $0xb10] sm:$0xff] }
 0x1fa   :  { %952 = vmatpush.msra.mxu2 %v849_v22  ;;  %v787_v26 = vpop.f32.mrf.mxu1  ;;  %v1062_v22 = vld [vmem:[#allocation5 + $0xb00] sm:$0xff] }
 0x1fc   :  { %953 = vmatpush.msra.mxu2 %v847_v23 }
 0x1fe   :  { %954 = vmatpush.msra.mxu2 %v845_v24 }
 0x200   :  { %955 = vmatpush.msra.mxu2 %v843_v25  ;;  %v1061_v25 = vld [vmem:[#allocation5 + $0xaf8] sm:$0xff] }
 0x202   :  { %956 = vmatpush.msra.mxu2 %v841_v29  ;;  %v1055_v29 = vld [vmem:[#allocation5 + $0xac8] sm:$0xff] }
 0x204   :  { %957 = vmatpush.msra.mxu2 %v839_v31  ;;  %v1051_v31 = vld [vmem:[#allocation5 + $0xaa8] sm:$0xff] }
 0x205   :  { %958 = vmatmul.f32.vlgmr.msra.gmra.mxu2 %v2804_v8 }
 0x206   :  { %1094 = vmatpush.msrb.mxu2 %v1060_v33  ;;  %v1047_v33 = vld [vmem:[#allocation5 + $0xa88] sm:$0xff] }
 0x208   :  { %1095 = vmatpush.msrb.mxu2 %v1058_v35  ;;  %v2831_v35 = vpop.f32.mrf.mxu2 }
 0x20a   :  { %1096 = vmatpush.msrb.mxu2 %v1056_v37  ;;  %v1039_v37 = vld [vmem:[#allocation5 + $0xa48] sm:$0xff] }
 0x20c   :  { %1097 = vmatpush.msrb.mxu2 %v1054_v39  ;;  %v1035_v39 = vld [vmem:[#allocation5 + $0xa28] sm:$0xff] }
 0x20e   :  { %1098 = vmatpush.msrb.mxu2 %v1052_v41 }
 0x216   :  { %v767_v27 = vpop.f32.mrf.mxu0 }
 0x217   :  { %v788_v30 = vadd.f32 %v787_v26, %v767_v27  ;;  %v1059_v26 = vld [vmem:[#allocation5 + $0xae8] sm:$0xff]  ;;  %v1057_v27 = vld [vmem:[#allocation5 + $0xad8] sm:$0xff] }
 0x219   :  { %830 = vmatpush.msrb.mxu3 %v788_v30  ;;  %v1053_v30 = vld [vmem:[#allocation5 + $0xab8] sm:$0xff] }
 0x21a   :  { %2559 = vmatmul.msk.f32.vlgmr.msrb.gmra.mxu3 %vm366_vm0, %v2798_v28  ;;  %v1050_v28 = vld [vmem:[#allocation5 + $0xaa0] sm:$0xff]  ;;  %v939_v59 = vpop.f32.mrf.mxu1 }
 0x21b   :  { %962 = vmatpush.msra.mxu3 %v901_v32  ;;  %1099 = vmatpush.msrb.mxu2 %v1050_v28  ;;  %v1049_v32 = vld [vmem:[#allocation5 + $0xa98] sm:$0xff] }
 0x21d   :  { %963 = vmatpush.msra.mxu3 %v899_v34  ;;  %1100 = vmatpush.msrb.mxu2 %v1048_v44  ;;  %v1045_v34 = vld [vmem:[#allocation5 + $0xa78] sm:$0xff] }
 0x21e   :  { %v1093_v44 = vld [vmem:[#allocation5 + $0xbf8] sm:$0xff] }
 0x21f   :  { %964 = vmatpush.msra.mxu3 %v897_v36  ;;  %1101 = vmatpush.msrb.mxu2 %v1046_v46  ;;  %v1041_v36 = vld [vmem:[#allocation5 + $0xa58] sm:$0xff]  ;;  %v1091_v46 = vld [vmem:[#allocation5 + $0xbe8] sm:$0xff] }
 0x221   :  { %965 = vmatpush.msra.mxu3 %v895_v38  ;;  %1102 = vmatpush.msrb.mxu2 %v1044_v48  ;;  %v1037_v38 = vld [vmem:[#allocation5 + $0xa38] sm:$0xff] }
 0x222   :  { %v1089_v48 = vld [vmem:[#allocation5 + $0xbd8] sm:$0xff] }
 0x223   :  { %966 = vmatpush.msra.mxu3 %v893_v40  ;;  %1103 = vmatpush.msrb.mxu2 %v1042_v50  ;;  %v1087_v50 = vld [vmem:[#allocation5 + $0xbc8] sm:$0xff] }
 0x225   :  { %967 = vmatpush.msra.mxu3 %v891_v42  ;;  %1104 = vmatpush.msrb.mxu2 %v1040_v52  ;;  %v1033_v42 = vld [vmem:[#allocation5 + $0xa18] sm:$0xff] }
 0x226   :  { %v1085_v52 = vld [vmem:[#allocation5 + $0xbb8] sm:$0xff] }
 0x227   :  { %968 = vmatpush.msra.mxu3 %v889_v43  ;;  %1105 = vmatpush.msrb.mxu2 %v1038_v54  ;;  %v1031_v43 = vld [vmem:[#allocation5 + $0xa08] sm:$0xff] }
 0x228   :  { %v1083_v54 = vld [vmem:[#allocation5 + $0xba8] sm:$0xff] }
 0x229   :  { %969 = vmatpush.msra.mxu3 %v887_v45  ;;  %1106 = vmatpush.msrb.mxu2 %v1036_v56  ;;  %v1252_v45 = vld [vmem:[#allocation5 + $0xcf0] sm:$0xff]  ;;  %v1081_v56 = vld [vmem:[#allocation5 + $0xb98] sm:$0xff] }
 0x22b   :  { %970 = vmatpush.msra.mxu3 %v885_v47  ;;  %1107 = vmatpush.msrb.mxu2 %v1034_v58  ;;  %v1250_v47 = vld [vmem:[#allocation5 + $0xce0] sm:$0xff]  ;;  %v1079_v58 = vld [vmem:[#allocation5 + $0xb88] sm:$0xff] }
 0x22d   :  { %971 = vmatpush.msra.mxu3 %v883_v49  ;;  %1108 = vmatpush.msrb.mxu2 %v1032_v63  ;;  %v1248_v49 = vld [vmem:[#allocation5 + $0xcd0] sm:$0xff] }
 0x22e   :  { %v1236_v63 = vld [vmem:[#allocation5 + $0xc70] sm:$0xff] }
 0x22f   :  { %972 = vmatpush.msra.mxu3 %v881_v51  ;;  %1109 = vmatpush.msrb.mxu2 %v1030_v4  ;;  %v1246_v51 = vld [vmem:[#allocation5 + $0xcc0] sm:$0xff] }
 0x230   :  { %1110 = vmatmul.f32.vlgmr.msrb.gmra.mxu2 %v2804_v8  ;;  %v1230_v4 = vld [vmem:[#allocation5 + $0xc40] sm:$0xff] }
 0x231   :  { %973 = vmatpush.msra.mxu3 %v879_v53  ;;  %v1244_v53 = vld [vmem:[#allocation5 + $0xcb0] sm:$0xff] }
 0x233   :  { %974 = vmatpush.msra.mxu3 %v877_v55  ;;  %v1242_v55 = vld [vmem:[#allocation5 + $0xca0] sm:$0xff] }
 0x235   :  { %975 = vmatpush.msra.mxu3 %v875_v57  ;;  %v1240_v57 = vld [vmem:[#allocation5 + $0xc90] sm:$0xff] }
 0x236   :  { %v919_v0 = vpop.f32.mrf.mxu0 }
 0x237   :  { %v940_v60 = vadd.f32 %v939_v59, %v919_v0  ;;  %976 = vmatpush.msra.mxu3 %v873_v62  ;;  %v1238_v59 = vld [vmem:[#allocation5 + $0xc80] sm:$0xff]  ;;  %v1077_v62 = vld [vmem:[#allocation5 + $0xb78] sm:$0xff]  ;;  %v1075_v0 = vld [vmem:[#allocation5 + $0xb68] sm:$0xff] }
 0x239   :  { %977 = vmatpush.msra.mxu3 %v871_v1  ;;  %1002 = vmatpush.msrb.mxu0 %v940_v60  ;;  %v1234_v1 = vld [vmem:[#allocation5 + $0xc60] sm:$0xff]  ;;  %v1073_v60 = vld [vmem:[#allocation5 + $0xb58] sm:$0xff] }
 0x23a   :  { %978 = vmatmul.f32.vlgmr.msra.gmra.mxu3 %v2821_v61  ;;  %2561 = vmatmul.msk.f32.vlgmr.msrb.gmra.mxu0 %vm366_vm0, %v2819_v2 }
 0x23b   :  { %1114 = vmatpush.msrb.mxu3 %v1092_v3  ;;  %1134 = vmatpush.msra.mxu0 %v1061_v25  ;;  %v1071_v3 = vld [vmem:[#allocation5 + $0xb48] sm:$0xff]  ;;  %v1276_v25 = vld [vmem:[#allocation5 + $0xdb0] sm:$0xff] }
 0x23d   :  { %1115 = vmatpush.msrb.mxu3 %v1090_v5  ;;  %1135 = vmatpush.msra.mxu0 %v1059_v26  ;;  %v1069_v5 = vld [vmem:[#allocation5 + $0xb38] sm:$0xff]  ;;  %v1274_v26 = vld [vmem:[#allocation5 + $0xda0] sm:$0xff] }
 0x23f   :  { %1116 = vmatpush.msrb.mxu3 %v1088_v7  ;;  %1136 = vmatpush.msra.mxu0 %v1057_v27  ;;  %v1228_v7 = vld [vmem:[#allocation5 + $0xc30] sm:$0xff] }
 0x240   :  { %v1272_v27 = vld [vmem:[#allocation5 + $0xd90] sm:$0xff] }
 0x241   :  { %1117 = vmatpush.msrb.mxu3 %v1086_v10  ;;  %1137 = vmatpush.msra.mxu0 %v1055_v29  ;;  %v1067_v10 = vld [vmem:[#allocation5 + $0xb28] sm:$0xff]  ;;  %v1270_v29 = vld [vmem:[#allocation5 + $0xd80] sm:$0xff] }
 0x243   :  { %1118 = vmatpush.msrb.mxu3 %v1084_v12  ;;  %1138 = vmatpush.msra.mxu0 %v1053_v30  ;;  %v1226_v12 = vld [vmem:[#allocation5 + $0xc20] sm:$0xff]  ;;  %v1268_v30 = vld [vmem:[#allocation5 + $0xd70] sm:$0xff] }
 0x245   :  { %1119 = vmatpush.msrb.mxu3 %v1082_v14  ;;  %1139 = vmatpush.msra.mxu0 %v1051_v31  ;;  %v1266_v31 = vld [vmem:[#allocation5 + $0xd60] sm:$0xff] }
 0x247   :  { %1120 = vmatpush.msrb.mxu3 %v1080_v15  ;;  %1140 = vmatpush.msra.mxu0 %v1049_v32  ;;  %v1065_v15 = vld [vmem:[#allocation5 + $0xb18] sm:$0xff]  ;;  %v1264_v32 = vld [vmem:[#allocation5 + $0xd50] sm:$0xff] }
 0x249   :  { %1121 = vmatpush.msrb.mxu3 %v1078_v16  ;;  %1141 = vmatpush.msra.mxu0 %v1047_v33  ;;  %v1224_v16 = vld [vmem:[#allocation5 + $0xc10] sm:$0xff]  ;;  %v1262_v33 = vld [vmem:[#allocation5 + $0xd40] sm:$0xff] }
 0x24b   :  { %1122 = vmatpush.msrb.mxu3 %v1076_v17  ;;  %1142 = vmatpush.msra.mxu0 %v1045_v34  ;;  %v1260_v34 = vld [vmem:[#allocation5 + $0xd30] sm:$0xff] }
 0x24d   :  { %1123 = vmatpush.msrb.mxu3 %v1074_v18  ;;  %v1063_v18 = vld [vmem:[#allocation5 + $0xb08] sm:$0xff] }
 0x24f   :  { %1124 = vmatpush.msrb.mxu3 %v1072_v19 }
 0x251   :  { %1125 = vmatpush.msrb.mxu3 %v1070_v20  ;;  %v2839_v20 = vld [vmem:[%s3005_s2 + $0x28] sm:$0xff] }
 0x253   :  { %1126 = vmatpush.msrb.mxu3 %v1068_v9  ;;  %v1284_v9 = vld [vmem:[#allocation5 + $0xdf0] sm:$0xff] }
 0x255   :  { %1127 = vmatpush.msrb.mxu3 %v1066_v21  ;;  %v1222_v21 = vld [vmem:[#allocation5 + $0xc00] sm:$0xff] }
 0x257   :  { %1128 = vmatpush.msrb.mxu3 %v1064_v6  ;;  %v1282_v6 = vld [vmem:[#allocation5 + $0xde0] sm:$0xff] }
 0x259   :  { %1129 = vmatpush.msrb.mxu3 %v1062_v22  ;;  %v1280_v22 = vld [vmem:[#allocation5 + $0xdd0] sm:$0xff] }
 0x25a   :  { %1130 = vmatmul.f32.vlgmr.msrb.gmra.mxu3 %v2821_v61 }
 0x288   :  { %v959_v40 = vpop.f32.mrf.mxu2 }
 0x29d   :  { %v832_v23 = vpop.f32.mrf.mxu3 }
 0x29e   :  { %v2829_v24 = vadd.f32 %v832_v23, %v2808_v11  ;;  %v1043_v11 = vld [vmem:[#allocation5 + $0xa68] sm:$0xff]  ;;  %v1278_v23 = vld [vmem:[#allocation5 + $0xdc0] sm:$0xff] }
 0x29f   :  { %1143 = vmatpush.msra.mxu0 %v1043_v11  ;;  %v1258_v11 = vld [vmem:[#allocation5 + $0xd20] sm:$0xff] }
 0x2a1   :  { %1144 = vmatpush.msra.mxu0 %v1041_v36  ;;  %v1256_v36 = vld [vmem:[#allocation5 + $0xd10] sm:$0xff] }
 0x2a3   :  { %1145 = vmatpush.msra.mxu0 %v1039_v37  ;;  %v1254_v37 = vld [vmem:[#allocation5 + $0xd00] sm:$0xff] }
 0x2a5   :  { %1146 = vmatpush.msra.mxu0 %v1037_v38 }
 0x2a7   :  { %1147 = vmatpush.msra.mxu0 %v1035_v39 }
 0x2a9   :  { %1148 = vmatpush.msra.mxu0 %v1033_v42  ;;  %v1249_v42 = vld [vmem:[#allocation5 + $0xcd8] sm:$0xff] }
 0x2ab   :  { %1149 = vmatpush.msra.mxu0 %v1031_v43  ;;  %v1245_v43 = vld [vmem:[#allocation5 + $0xcb8] sm:$0xff] }
 0x2ac   :  { %1150 = vmatmul.f32.vlgmr.msra.gmra.mxu0 %v2804_v8 }
 0x2ad   :  { %1286 = vmatpush.msrb.mxu0 %v1252_v45  ;;  %v1241_v45 = vld [vmem:[#allocation5 + $0xc98] sm:$0xff] }
 0x2af   :  { %1287 = vmatpush.msrb.mxu0 %v1250_v47  ;;  %v1237_v47 = vld [vmem:[#allocation5 + $0xc78] sm:$0xff] }
 0x2b1   :  { %1288 = vmatpush.msrb.mxu0 %v1248_v49  ;;  %v1233_v49 = vld [vmem:[#allocation5 + $0xc58] sm:$0xff] }
 0x2b3   :  { %1289 = vmatpush.msrb.mxu0 %v1246_v51  ;;  %v1111_v14 = vpop.f32.mrf.mxu2  ;;  %v1229_v51 = vld [vmem:[#allocation5 + $0xc38] sm:$0xff] }
 0x2b5   :  { %1290 = vmatpush.msrb.mxu0 %v1244_v53 }
 0x2b7   :  { %1291 = vmatpush.msrb.mxu0 %v1242_v55  ;;  %v1225_v55 = vld [vmem:[#allocation5 + $0xc18] sm:$0xff] }
 0x2b9   :  { %1292 = vmatpush.msrb.mxu0 %v1240_v57  ;;  %v1223_v57 = vld [vmem:[#allocation5 + $0xc08] sm:$0xff] }
 0x2bb   :  { %1293 = vmatpush.msrb.mxu0 %v1238_v59  ;;  %v1444_v59 = vld [vmem:[#allocation5 + $0xef0] sm:$0xff] }
 0x2bd   :  { %v979_v41 = vpop.f32.mrf.mxu3  ;;  %1294 = vmatpush.msrb.mxu0 %v1236_v63  ;;  %v1442_v63 = vld [vmem:[#allocation5 + $0xee0] sm:$0xff] }
 0x2be   :  { %v980_v28 = vadd.f32 %v979_v41, %v959_v40  ;;  %v1253_v40 = vld [vmem:[#allocation5 + $0xcf8] sm:$0xff]  ;;  %v1251_v41 = vld [vmem:[#allocation5 + $0xce8] sm:$0xff] }
 0x2bf   :  { %1295 = vmatpush.msrb.mxu0 %v1234_v1  ;;  %v1440_v1 = vld [vmem:[#allocation5 + $0xed0] sm:$0xff] }
 0x2c0   :  { %1022 = vmatpush.msrb.mxu1 %v980_v28  ;;  %v1247_v28 = vld [vmem:[#allocation5 + $0xcc8] sm:$0xff] }
 0x2c1   :  { %2562 = vmatmul.msk.f32.vlgmr.msrb.gmra.mxu1 %vm366_vm0, %v2819_v2  ;;  %v1232_v2 = vld [vmem:[#allocation5 + $0xc50] sm:$0xff] }
 0x2c2   :  { %1154 = vmatpush.msra.mxu1 %v1093_v44  ;;  %1296 = vmatpush.msrb.mxu0 %v1232_v2  ;;  %v1243_v44 = vld [vmem:[#allocation5 + $0xca8] sm:$0xff]  ;;  %v1438_v2 = vld [vmem:[#allocation5 + $0xec0] sm:$0xff] }
 0x2c4   :  { %1155 = vmatpush.msra.mxu1 %v1091_v46  ;;  %1297 = vmatpush.msrb.mxu0 %v1230_v4  ;;  %v1239_v46 = vld [vmem:[#allocation5 + $0xc88] sm:$0xff]  ;;  %v1436_v4 = vld [vmem:[#allocation5 + $0xeb0] sm:$0xff] }
 0x2c6   :  { %1156 = vmatpush.msra.mxu1 %v1089_v48  ;;  %1298 = vmatpush.msrb.mxu0 %v1228_v7  ;;  %v2849_v48 = vpop.f32.mrf.mxu0  ;;  %v1434_v7 = vld [vmem:[#allocation5 + $0xea0] sm:$0xff] }
 0x2c8   :  { %1157 = vmatpush.msra.mxu1 %v1087_v50  ;;  %1299 = vmatpush.msrb.mxu0 %v1226_v12  ;;  %v1231_v50 = vld [vmem:[#allocation5 + $0xc48] sm:$0xff]  ;;  %v1432_v12 = vld [vmem:[#allocation5 + $0xe90] sm:$0xff] }
 0x2ca   :  { %1158 = vmatpush.msra.mxu1 %v1085_v52  ;;  %1300 = vmatpush.msrb.mxu0 %v1224_v16  ;;  %v1227_v52 = vld [vmem:[#allocation5 + $0xc28] sm:$0xff]  ;;  %v1269_v16 = vld [vmem:[#allocation5 + $0xd78] sm:$0xff] }
 0x2cc   :  { %1159 = vmatpush.msra.mxu1 %v1083_v54  ;;  %1301 = vmatpush.msrb.mxu0 %v1222_v21  ;;  %v1263_v21 = vld [vmem:[#allocation5 + $0xd48] sm:$0xff] }
 0x2cd   :  { %1302 = vmatmul.f32.vlgmr.msrb.gmra.mxu0 %v2804_v8 }
 0x2ce   :  { %1160 = vmatpush.msra.mxu1 %v1081_v56 }
 0x2d0   :  { %1161 = vmatpush.msra.mxu1 %v1079_v58  ;;  %v1285_v58 = vld [vmem:[#allocation5 + $0xdf8] sm:$0xff] }
 0x2d2   :  { %1162 = vmatpush.msra.mxu1 %v1077_v62  ;;  %v1283_v62 = vld [vmem:[#allocation5 + $0xde8] sm:$0xff] }
 0x2d4   :  { %1163 = vmatpush.msra.mxu1 %v1075_v0  ;;  %v1281_v0 = vld [vmem:[#allocation5 + $0xdd8] sm:$0xff] }
 0x2d6   :  { %1164 = vmatpush.msra.mxu1 %v1073_v60  ;;  %v1279_v60 = vld [vmem:[#allocation5 + $0xdc8] sm:$0xff] }
 0x2d8   :  { %1165 = vmatpush.msra.mxu1 %v1071_v3  ;;  %v1277_v3 = vld [vmem:[#allocation5 + $0xdb8] sm:$0xff] }
 0x2da   :  { %1166 = vmatpush.msra.mxu1 %v1069_v5  ;;  %v1275_v5 = vld [vmem:[#allocation5 + $0xda8] sm:$0xff] }
 0x2dc   :  { %1167 = vmatpush.msra.mxu1 %v1067_v10  ;;  %v1273_v10 = vld [vmem:[#allocation5 + $0xd98] sm:$0xff] }
 0x2dd   :  { %v1131_v17 = vpop.f32.mrf.mxu3 }
 0x2de   :  { %v1132_v19 = vadd.f32 %v1131_v17, %v1111_v14  ;;  %1168 = vmatpush.msra.mxu1 %v1065_v15  ;;  %v1271_v14 = vld [vmem:[#allocation5 + $0xd88] sm:$0xff]  ;;  %v1430_v15 = vld [vmem:[#allocation5 + $0xe80] sm:$0xff]  ;;  %v1428_v17 = vld [vmem:[#allocation5 + $0xe70] sm:$0xff] }
 0x2e0   :  { %1169 = vmatpush.msra.mxu1 %v1063_v18  ;;  %1194 = vmatpush.msra.mxu2 %v1132_v19  ;;  %v1267_v18 = vld [vmem:[#allocation5 + $0xd68] sm:$0xff]  ;;  %v1426_v19 = vld [vmem:[#allocation5 + $0xe60] sm:$0xff] }
 0x2e1   :  { %1170 = vmatmul.f32.vlgmr.msra.gmra.mxu1 %v2821_v61  ;;  %2564 = vmatmul.msk.f32.vlgmr.msra.gmra.mxu2 %vm366_vm0, %v2839_v20 }
 0x2e2   :  { %1306 = vmatpush.msrb.mxu1 %v1284_v9  ;;  %1326 = vmatpush.msrb.mxu2 %v1253_v40  ;;  %v1424_v9 = vld [vmem:[#allocation5 + $0xe50] sm:$0xff]  ;;  %v1470_v40 = vld [vmem:[#allocation5 + $0xfc0] sm:$0xff] }
 0x2e4   :  { %1307 = vmatpush.msrb.mxu1 %v1282_v6  ;;  %1327 = vmatpush.msrb.mxu2 %v1251_v41  ;;  %v1422_v6 = vld [vmem:[#allocation5 + $0xe40] sm:$0xff]  ;;  %v1468_v41 = vld [vmem:[#allocation5 + $0xfb0] sm:$0xff] }
 0x2e6   :  { %1308 = vmatpush.msrb.mxu1 %v1280_v22  ;;  %1328 = vmatpush.msrb.mxu2 %v1249_v42  ;;  %v1261_v22 = vld [vmem:[#allocation5 + $0xd38] sm:$0xff]  ;;  %v1466_v42 = vld [vmem:[#allocation5 + $0xfa0] sm:$0xff] }
 0x2e8   :  { %1309 = vmatpush.msrb.mxu1 %v1278_v23  ;;  %1329 = vmatpush.msrb.mxu2 %v1247_v28  ;;  %v1420_v23 = vld [vmem:[#allocation5 + $0xe30] sm:$0xff] }
 0x2e9   :  { %v1464_v28 = vld [vmem:[#allocation5 + $0xf90] sm:$0xff] }
 0x2ea   :  { %1310 = vmatpush.msrb.mxu1 %v1276_v25  ;;  %1330 = vmatpush.msrb.mxu2 %v1245_v43  ;;  %v1259_v25 = vld [vmem:[#allocation5 + $0xd28] sm:$0xff]  ;;  %v1462_v43 = vld [vmem:[#allocation5 + $0xf80] sm:$0xff] }
 0x2ec   :  { %1311 = vmatpush.msrb.mxu1 %v1274_v26  ;;  %1331 = vmatpush.msrb.mxu2 %v1243_v44  ;;  %v1418_v26 = vld [vmem:[#allocation5 + $0xe20] sm:$0xff]  ;;  %v1460_v44 = vld [vmem:[#allocation5 + $0xf70] sm:$0xff] }
 0x2ee   :  { %1312 = vmatpush.msrb.mxu1 %v1272_v27  ;;  %1332 = vmatpush.msrb.mxu2 %v1241_v45  ;;  %v1458_v45 = vld [vmem:[#allocation5 + $0xf60] sm:$0xff] }
 0x2f0   :  { %1313 = vmatpush.msrb.mxu1 %v1270_v29  ;;  %1333 = vmatpush.msrb.mxu2 %v1239_v46  ;;  %v1257_v29 = vld [vmem:[#allocation5 + $0xd18] sm:$0xff]  ;;  %v1456_v46 = vld [vmem:[#allocation5 + $0xf50] sm:$0xff] }
 0x2f2   :  { %1314 = vmatpush.msrb.mxu1 %v1268_v30  ;;  %1334 = vmatpush.msrb.mxu2 %v1237_v47  ;;  %v1416_v30 = vld [vmem:[#allocation5 + $0xe10] sm:$0xff]  ;;  %v1454_v47 = vld [vmem:[#allocation5 + $0xf40] sm:$0xff] }
 0x2f4   :  { %1315 = vmatpush.msrb.mxu1 %v1266_v31 }
 0x2f6   :  { %1316 = vmatpush.msrb.mxu1 %v1264_v32  ;;  %v1255_v32 = vld [vmem:[#allocation5 + $0xd08] sm:$0xff] }
 0x2f8   :  { %1317 = vmatpush.msrb.mxu1 %v1262_v33 }
 0x2fa   :  { %1318 = vmatpush.msrb.mxu1 %v1260_v34  ;;  %v2857_v34 = vld [vmem:[%s3005_s2 + $0x30] sm:$0xff] }
 0x2fc   :  { %1319 = vmatpush.msrb.mxu1 %v1258_v11  ;;  %v1476_v11 = vld [vmem:[#allocation5 + $0xff0] sm:$0xff] }
 0x2fe   :  { %1320 = vmatpush.msrb.mxu1 %v1256_v36  ;;  %v1414_v36 = vld [vmem:[#allocation5 + $0xe00] sm:$0xff] }
 0x300   :  { %1321 = vmatpush.msrb.mxu1 %v1254_v37  ;;  %v1474_v37 = vld [vmem:[#allocation5 + $0xfe0] sm:$0xff] }
 0x301   :  { %1322 = vmatmul.f32.vlgmr.msrb.gmra.mxu1 %v2821_v61 }
 0x329   :  { %v1151_v53 = vpop.f32.mrf.mxu0 }
 0x33e   :  { %v1024_v38 = vpop.f32.mrf.mxu1 }
 0x33f   :  { %v2847_v39 = vadd.f32 %v1024_v38, %v2829_v24  ;;  %v1235_v24 = vld [vmem:[#allocation5 + $0xc68] sm:$0xff]  ;;  %v1472_v38 = vld [vmem:[#allocation5 + $0xfd0] sm:$0xff] }
 0x340   :  { %1335 = vmatpush.msrb.mxu2 %v1235_v24  ;;  %v1452_v24 = vld [vmem:[#allocation5 + $0xf30] sm:$0xff] }
 0x342   :  { %1336 = vmatpush.msrb.mxu2 %v1233_v49  ;;  %v1450_v49 = vld [vmem:[#allocation5 + $0xf20] sm:$0xff] }
 0x344   :  { %1337 = vmatpush.msrb.mxu2 %v1231_v50  ;;  %v1448_v50 = vld [vmem:[#allocation5 + $0xf10] sm:$0xff] }
 0x346   :  { %1338 = vmatpush.msrb.mxu2 %v1229_v51  ;;  %v1446_v51 = vld [vmem:[#allocation5 + $0xf00] sm:$0xff] }
 0x348   :  { %1339 = vmatpush.msrb.mxu2 %v1227_v52 }
 0x34a   :  { %1340 = vmatpush.msrb.mxu2 %v1225_v55  ;;  %v1303_v27 = vpop.f32.mrf.mxu0  ;;  %v1443_v55 = vld [vmem:[#allocation5 + $0xee8] sm:$0xff] }
 0x34c   :  { %1341 = vmatpush.msrb.mxu2 %v1223_v57  ;;  %v1439_v57 = vld [vmem:[#allocation5 + $0xec8] sm:$0xff] }
 0x34d   :  { %1342 = vmatmul.f32.vlgmr.msrb.gmra.mxu2 %v2804_v8 }
 0x34e   :  { %1478 = vmatpush.msra.mxu2 %v1444_v59  ;;  %v1435_v59 = vld [vmem:[#allocation5 + $0xea8] sm:$0xff] }
 0x350   :  { %1479 = vmatpush.msra.mxu2 %v1442_v63  ;;  %v1431_v63 = vld [vmem:[#allocation5 + $0xe88] sm:$0xff] }
 0x352   :  { %1480 = vmatpush.msra.mxu2 %v1440_v1 }
 0x354   :  { %1481 = vmatpush.msra.mxu2 %v1438_v2  ;;  %v1423_v2 = vld [vmem:[#allocation5 + $0xe48] sm:$0xff] }
 0x356   :  { %1482 = vmatpush.msra.mxu2 %v1436_v4  ;;  %v1419_v4 = vld [vmem:[#allocation5 + $0xe28] sm:$0xff] }
 0x358   :  { %1483 = vmatpush.msra.mxu2 %v1434_v7 }
 0x35a   :  { %1484 = vmatpush.msra.mxu2 %v1432_v12 }
 0x35c   :  { %1485 = vmatpush.msra.mxu2 %v1430_v15  ;;  %v1477_v15 = vld [vmem:[#allocation5 + $0xff8] sm:$0xff] }
 0x35e   :  { %v1171_v54 = vpop.f32.mrf.mxu1  ;;  %1486 = vmatpush.msra.mxu2 %v1428_v17  ;;  %v1475_v17 = vld [vmem:[#allocation5 + $0xfe8] sm:$0xff] }
 0x35f   :  { %v1172_v56 = vadd.f32 %v1171_v54, %v1151_v53  ;;  %v1445_v54 = vld [vmem:[#allocation5 + $0xef8] sm:$0xff] }
 0x360   :  { %1487 = vmatpush.msra.mxu2 %v1426_v19  ;;  %v1473_v19 = vld [vmem:[#allocation5 + $0xfd8] sm:$0xff] }
 0x361   :  { %1214 = vmatpush.msra.mxu3 %v1172_v56  ;;  %v1441_v56 = vld [vmem:[#allocation5 + $0xed8] sm:$0xff] }
 0x362   :  { %2565 = vmatmul.msk.f32.vlgmr.msra.gmra.mxu3 %vm366_vm0, %v2839_v20  ;;  %v1265_v20 = vld [vmem:[#allocation5 + $0xd58] sm:$0xff]  ;;  %1488 = vmatpush.msra.mxu2 %v1424_v9  ;;  %v1471_v9 = vld [vmem:[#allocation5 + $0xfc8] sm:$0xff] }
 0x363   :  { %1346 = vmatpush.msrb.mxu3 %v1285_v58  ;;  %v1437_v58 = vld [vmem:[#allocation5 + $0xeb8] sm:$0xff] }
 0x364   :  { %1489 = vmatpush.msra.mxu2 %v1422_v6  ;;  %v2867_v1 = vpop.f32.mrf.mxu2  ;;  %v1469_v6 = vld [vmem:[#allocation5 + $0xfb8] sm:$0xff] }
 0x365   :  { %1347 = vmatpush.msrb.mxu3 %v1283_v62  ;;  %v1433_v62 = vld [vmem:[#allocation5 + $0xe98] sm:$0xff] }
 0x366   :  { %1490 = vmatpush.msra.mxu2 %v1420_v23  ;;  %v1467_v23 = vld [vmem:[#allocation5 + $0xfa8] sm:$0xff] }
 0x367   :  { %1348 = vmatpush.msrb.mxu3 %v1281_v0  ;;  %v1429_v0 = vld [vmem:[#allocation5 + $0xe78] sm:$0xff] }
 0x368   :  { %1491 = vmatpush.msra.mxu2 %v1418_v26  ;;  %v1624_v26 = vld [vmem:[#allocation5 + $0x1090] sm:$0xff] }
 0x369   :  { %1349 = vmatpush.msrb.mxu3 %v1279_v60  ;;  %v1425_v60 = vld [vmem:[#allocation5 + $0xe58] sm:$0xff] }
 0x36a   :  { %1492 = vmatpush.msra.mxu2 %v1416_v30  ;;  %v1461_v30 = vld [vmem:[#allocation5 + $0xf78] sm:$0xff] }
 0x36b   :  { %1350 = vmatpush.msrb.mxu3 %v1277_v3  ;;  %v1421_v3 = vld [vmem:[#allocation5 + $0xe38] sm:$0xff] }
 0x36c   :  { %1493 = vmatpush.msra.mxu2 %v1414_v36  ;;  %v1455_v36 = vld [vmem:[#allocation5 + $0xf48] sm:$0xff] }
 0x36d   :  { %1351 = vmatpush.msrb.mxu3 %v1275_v5  ;;  %1494 = vmatmul.f32.vlgmr.msra.gmra.mxu2 %v2804_v8 }
 0x36f   :  { %1352 = vmatpush.msrb.mxu3 %v1273_v10  ;;  %v1417_v10 = vld [vmem:[#allocation5 + $0xe18] sm:$0xff] }
 0x371   :  { %1353 = vmatpush.msrb.mxu3 %v1271_v14  ;;  %v1415_v14 = vld [vmem:[#allocation5 + $0xe08] sm:$0xff] }
 0x373   :  { %1354 = vmatpush.msrb.mxu3 %v1269_v16  ;;  %v1636_v16 = vld [vmem:[#allocation5 + $0x10f0] sm:$0xff] }
 0x375   :  { %1355 = vmatpush.msrb.mxu3 %v1267_v18  ;;  %v1634_v18 = vld [vmem:[#allocation5 + $0x10e0] sm:$0xff] }
 0x377   :  { %1356 = vmatpush.msrb.mxu3 %v1265_v20  ;;  %v1632_v20 = vld [vmem:[#allocation5 + $0x10d0] sm:$0xff] }
 0x379   :  { %1357 = vmatpush.msrb.mxu3 %v1263_v21  ;;  %v1630_v21 = vld [vmem:[#allocation5 + $0x10c0] sm:$0xff] }
 0x37b   :  { %1358 = vmatpush.msrb.mxu3 %v1261_v22  ;;  %v1628_v22 = vld [vmem:[#allocation5 + $0x10b0] sm:$0xff] }
 0x37d   :  { %1359 = vmatpush.msrb.mxu3 %v1259_v25  ;;  %v1626_v25 = vld [vmem:[#allocation5 + $0x10a0] sm:$0xff] }
 0x37e   :  { %v1323_v31 = vpop.f32.mrf.mxu1 }
 0x37f   :  { %v1324_v33 = vadd.f32 %v1323_v31, %v1303_v27  ;;  %1360 = vmatpush.msrb.mxu3 %v1257_v29  ;;  %v1463_v27 = vld [vmem:[#allocation5 + $0xf88] sm:$0xff]  ;;  %v1622_v29 = vld [vmem:[#allocation5 + $0x1080] sm:$0xff]  ;;  %v1620_v31 = vld [vmem:[#allocation5 + $0x1070] sm:$0xff] }
 0x381   :  { %1361 = vmatpush.msrb.mxu3 %v1255_v32  ;;  %1386 = vmatpush.msra.mxu0 %v1324_v33  ;;  %v1459_v32 = vld [vmem:[#allocation5 + $0xf68] sm:$0xff]  ;;  %v1618_v33 = vld [vmem:[#allocation5 + $0x1060] sm:$0xff] }
 0x382   :  { %1362 = vmatmul.f32.vlgmr.msrb.gmra.mxu3 %v2821_v61  ;;  %2567 = vmatmul.msk.f32.vlgmr.msra.gmra.mxu0 %vm366_vm0, %v2857_v34 }
 0x383   :  { %1498 = vmatpush.msra.mxu3 %v1476_v11  ;;  %1518 = vmatpush.msrb.mxu0 %v1445_v54  ;;  %v1616_v11 = vld [vmem:[#allocation5 + $0x1050] sm:$0xff] }
 0x384   :  { %v2880_v54 = vld [vmem:[#allocation2] sm:$0xff] }
 0x385   :  { %1499 = vmatpush.msra.mxu3 %v1474_v37  ;;  %1519 = vmatpush.msrb.mxu0 %v1443_v55  ;;  %v1614_v37 = vld [vmem:[#allocation5 + $0x1040] sm:$0xff] }
 0x386   :  { %v1662_v55 = vld [vmem:[#allocation5 + $0x11c0] sm:$0xff] }
 0x387   :  { %1500 = vmatpush.msra.mxu3 %v1472_v38  ;;  %1520 = vmatpush.msrb.mxu0 %v1441_v56  ;;  %v1453_v38 = vld [vmem:[#allocation5 + $0xf38] sm:$0xff]  ;;  %v1660_v56 = vld [vmem:[#allocation5 + $0x11b0] sm:$0xff] }
 0x389   :  { %1501 = vmatpush.msra.mxu3 %v1470_v40  ;;  %1521 = vmatpush.msrb.mxu0 %v1439_v57  ;;  %v1612_v40 = vld [vmem:[#allocation5 + $0x1030] sm:$0xff]  ;;  %v1658_v57 = vld [vmem:[#allocation5 + $0x11a0] sm:$0xff] }
 0x38b   :  { %1502 = vmatpush.msra.mxu3 %v1468_v41  ;;  %1522 = vmatpush.msrb.mxu0 %v1437_v58  ;;  %v1451_v41 = vld [vmem:[#allocation5 + $0xf28] sm:$0xff]  ;;  %v1656_v58 = vld [vmem:[#allocation5 + $0x1190] sm:$0xff] }
 0x38d   :  { %1503 = vmatpush.msra.mxu3 %v1466_v42  ;;  %1523 = vmatpush.msrb.mxu0 %v1435_v59  ;;  %v1610_v42 = vld [vmem:[#allocation5 + $0x1020] sm:$0xff] }
 0x38e   :  { %v1654_v59 = vld [vmem:[#allocation5 + $0x1180] sm:$0xff] }
 0x38f   :  { %1504 = vmatpush.msra.mxu3 %v1464_v28  ;;  %1524 = vmatpush.msrb.mxu0 %v1433_v62  ;;  %v1652_v62 = vld [vmem:[#allocation5 + $0x1170] sm:$0xff] }
 0x391   :  { %1505 = vmatpush.msra.mxu3 %v1462_v43  ;;  %1525 = vmatpush.msrb.mxu0 %v1431_v63  ;;  %v1449_v43 = vld [vmem:[#allocation5 + $0xf18] sm:$0xff]  ;;  %v1650_v63 = vld [vmem:[#allocation5 + $0x1160] sm:$0xff] }
 0x393   :  { %1506 = vmatpush.msra.mxu3 %v1460_v44  ;;  %1526 = vmatpush.msrb.mxu0 %v1429_v0  ;;  %v1608_v44 = vld [vmem:[#allocation5 + $0x1010] sm:$0xff] }
 0x394   :  { %v1648_v0 = vld [vmem:[#allocation5 + $0x1150] sm:$0xff] }
 0x395   :  { %1507 = vmatpush.msra.mxu3 %v1458_v45 }
 0x397   :  { %1508 = vmatpush.msra.mxu3 %v1456_v46  ;;  %v1447_v46 = vld [vmem:[#allocation5 + $0xf08] sm:$0xff] }
 0x399   :  { %1509 = vmatpush.msra.mxu3 %v1454_v47 }
 0x39b   :  { %1510 = vmatpush.msra.mxu3 %v1452_v24  ;;  %v2875_v24 = vld [vmem:[%s3005_s2 + $0x38] sm:$0xff] }
 0x39d   :  { %1511 = vmatpush.msra.mxu3 %v1450_v49  ;;  %v1668_v49 = vld [vmem:[#allocation5 + $0x11f0] sm:$0xff] }
 0x39f   :  { %1512 = vmatpush.msra.mxu3 %v1448_v50  ;;  %v1606_v50 = vld [vmem:[#allocation5 + $0x1000] sm:$0xff] }
 0x3a1   :  { %1513 = vmatpush.msra.mxu3 %v1446_v51  ;;  %v1666_v51 = vld [vmem:[#allocation5 + $0x11e0] sm:$0xff] }
 0x3a2   :  { %1514 = vmatmul.f32.vlgmr.msra.gmra.mxu3 %v2821_v61 }
 0x3d0   :  { %v1343_v5 = vpop.f32.mrf.mxu2 }
 0x3e5   :  { %v1216_v52 = vpop.f32.mrf.mxu3 }
 0x3e6   :  { %v2865_v53 = vadd.f32 %v1216_v52, %v2847_v39  ;;  %v1427_v39 = vld [vmem:[#allocation5 + $0xe68] sm:$0xff]  ;;  %v1664_v52 = vld [vmem:[#allocation5 + $0x11d0] sm:$0xff] }
 0x3e7   :  { %1527 = vmatpush.msrb.mxu0 %v1427_v39  ;;  %v1646_v39 = vld [vmem:[#allocation5 + $0x1140] sm:$0xff] }
 0x3e9   :  { %1528 = vmatpush.msrb.mxu0 %v1425_v60  ;;  %v1644_v60 = vld [vmem:[#allocation5 + $0x1130] sm:$0xff] }
 0x3eb   :  { %1529 = vmatpush.msrb.mxu0 %v1423_v2  ;;  %v1642_v2 = vld [vmem:[#allocation5 + $0x1120] sm:$0xff] }
 0x3ed   :  { %1530 = vmatpush.msrb.mxu0 %v1421_v3  ;;  %v1640_v3 = vld [vmem:[#allocation5 + $0x1110] sm:$0xff] }
 0x3ef   :  { %1531 = vmatpush.msrb.mxu0 %v1419_v4  ;;  %v1638_v4 = vld [vmem:[#allocation5 + $0x1100] sm:$0xff] }
 0x3f0   :  { %v1495_v28 = vpop.f32.mrf.mxu2 }
 0x3f1   :  { %1532 = vmatpush.msrb.mxu0 %v1417_v10  ;;  %v1637_v10 = vld [vmem:[#allocation5 + $0x10f8] sm:$0xff] }
 0x3f3   :  { %1533 = vmatpush.msrb.mxu0 %v1415_v14  ;;  %v1633_v14 = vld [vmem:[#allocation5 + $0x10d8] sm:$0xff] }
 0x3f4   :  { %1534 = vmatmul.f32.vlgmr.msrb.gmra.mxu0 %v2804_v8  ;;  %v1465_v8 = vld [vmem:[#allocation5 + $0xf98] sm:$0xff] }
 0x3f5   :  { %1670 = vmatpush.msra.mxu0 %v1636_v16  ;;  %v1629_v16 = vld [vmem:[#allocation5 + $0x10b8] sm:$0xff] }
 0x3f7   :  { %1671 = vmatpush.msra.mxu0 %v1634_v18  ;;  %v1625_v18 = vld [vmem:[#allocation5 + $0x1098] sm:$0xff] }
 0x3f9   :  { %1672 = vmatpush.msra.mxu0 %v1632_v20 }
 0x3fb   :  { %1673 = vmatpush.msra.mxu0 %v1630_v21  ;;  %v1615_v21 = vld [vmem:[#allocation5 + $0x1048] sm:$0xff] }
 0x3fd   :  { %1674 = vmatpush.msra.mxu0 %v1628_v22  ;;  %v1611_v22 = vld [vmem:[#allocation5 + $0x1028] sm:$0xff] }
 0x3ff   :  { %1675 = vmatpush.msra.mxu0 %v1626_v25  ;;  %v2887_v20 = vpop.f32.mrf.mxu0 }
 0x401   :  { %1676 = vmatpush.msra.mxu0 %v1624_v26 }
 0x403   :  { %1677 = vmatpush.msra.mxu0 %v1622_v29  ;;  %v1669_v29 = vld [vmem:[#allocation5 + $0x11f8] sm:$0xff] }
 0x405   :  { %v1363_v7 = vpop.f32.mrf.mxu3  ;;  %1678 = vmatpush.msra.mxu0 %v1620_v31  ;;  %v1797_v31 = vld [vmem:[%s3006_s3] sm:$0xff] }
 0x406   :  { %v1364_v12 = vadd.f32 %v1363_v7, %v1343_v5 }
 0x407   :  { %1679 = vmatpush.msra.mxu0 %v1618_v33  ;;  %v1665_v33 = vld [vmem:[#allocation5 + $0x11d8] sm:$0xff] }
 0x408   :  { %1406 = vmatpush.msra.mxu1 %v1364_v12  ;;  %v1635_v12 = vld [vmem:[#allocation5 + $0x10e8] sm:$0xff] }
 0x409   :  { %2568 = vmatmul.msk.f32.vlgmr.msra.gmra.mxu1 %vm366_vm0, %v2857_v34  ;;  %v1457_v34 = vld [vmem:[#allocation5 + $0xf58] sm:$0xff]  ;;  %1680 = vmatpush.msra.mxu0 %v1616_v11 }
 0x40a   :  { %1538 = vmatpush.msrb.mxu1 %v1477_v15  ;;  %v1631_v15 = vld [vmem:[#allocation5 + $0x10c8] sm:$0xff]  ;;  %v1661_v11 = vld [vmem:[#allocation5 + $0x11b8] sm:$0xff] }
 0x40b   :  { %1681 = vmatpush.msra.mxu0 %v1614_v37  ;;  %v1657_v37 = vld [vmem:[#allocation5 + $0x1198] sm:$0xff] }
 0x40c   :  { %1539 = vmatpush.msrb.mxu1 %v1475_v17  ;;  %v1627_v17 = vld [vmem:[#allocation5 + $0x10a8] sm:$0xff] }
 0x40d   :  { %1682 = vmatpush.msra.mxu0 %v1612_v40  ;;  %v1653_v40 = vld [vmem:[#allocation5 + $0x1178] sm:$0xff] }
 0x40e   :  { %1540 = vmatpush.msrb.mxu1 %v1473_v19  ;;  %v1623_v19 = vld [vmem:[#allocation5 + $0x1088] sm:$0xff] }
 0x40f   :  { %1683 = vmatpush.msra.mxu0 %v1610_v42  ;;  %v1649_v42 = vld [vmem:[#allocation5 + $0x1158] sm:$0xff] }
 0x410   :  { %1541 = vmatpush.msrb.mxu1 %v1471_v9  ;;  %v1617_v9 = vld [vmem:[#allocation5 + $0x1058] sm:$0xff] }
 0x411   :  { %1684 = vmatpush.msra.mxu0 %v1608_v44  ;;  %v1643_v44 = vld [vmem:[#allocation5 + $0x1128] sm:$0xff] }
 0x412   :  { %1542 = vmatpush.msrb.mxu1 %v1469_v6  ;;  %v1613_v6 = vld [vmem:[#allocation5 + $0x1038] sm:$0xff] }
 0x413   :  { %1685 = vmatpush.msra.mxu0 %v1606_v50  ;;  %v2572_v50 = vld [vmem:[%s3005_s2 + $0x40] sm:$0xff] }
 0x414   :  { %1543 = vmatpush.msrb.mxu1 %v1467_v23  ;;  %1686 = vmatmul.f32.vlgmr.msra.gmra.mxu0 %v2880_v54 }
 0x416   :  { %1544 = vmatpush.msrb.mxu1 %v1465_v8  ;;  %v1609_v8 = vld [vmem:[#allocation5 + $0x1018] sm:$0xff] }
 0x418   :  { %1545 = vmatpush.msrb.mxu1 %v1463_v27  ;;  %v1607_v27 = vld [vmem:[#allocation5 + $0x1008] sm:$0xff] }
 0x41a   :  { %1546 = vmatpush.msrb.mxu1 %v1461_v30  ;;  %v1667_v30 = vld [vmem:[#allocation5 + $0x11e8] sm:$0xff] }
 0x41c   :  { %1547 = vmatpush.msrb.mxu1 %v1459_v32  ;;  %v2703_v32 = vmov 0  }
 0x41d   :  { %2588 = vset.pattern.permute.xlu0 %v2703_v32  ;;  %2589 = vset.pattern.permute.xlu1 %v2703_v32  ;;  %v1967_v32 = vld [vmem:[#allocation7 + $0x350] sm:$0xff] }
 0x41e   :  { %1548 = vmatpush.msrb.mxu1 %v1457_v34  ;;  %1800 = vperm.xlu0 %2588, %v1797_v31   ;;  %v1663_v34 = vld [vmem:[#allocation5 + $0x11c8] sm:$0xff] }
 0x41f   :  { %v1934_v31 = vld [vmem:[#allocation7 + $0x248] sm:$0xff] }
 0x420   :  { %1549 = vmatpush.msrb.mxu1 %v1455_v36  ;;  %v1659_v36 = vld [vmem:[#allocation5 + $0x11a8] sm:$0xff] }
 0x422   :  { %1550 = vmatpush.msrb.mxu1 %v1453_v38  ;;  %v1655_v38 = vld [vmem:[#allocation5 + $0x1188] sm:$0xff] }
 0x424   :  { %1551 = vmatpush.msrb.mxu1 %v1451_v41  ;;  %v1651_v41 = vld [vmem:[#allocation5 + $0x1168] sm:$0xff] }
 0x425   :  { %v1515_v45 = vpop.f32.mrf.mxu3 }
 0x426   :  { %v1516_v47 = vadd.f32 %v1515_v45, %v1495_v28  ;;  %1552 = vmatpush.msrb.mxu1 %v1449_v43  ;;  %v1647_v28 = vld [vmem:[#allocation5 + $0x1148] sm:$0xff]  ;;  %v1645_v43 = vld [vmem:[#allocation5 + $0x1138] sm:$0xff] }
 0x428   :  { %1553 = vmatpush.msrb.mxu1 %v1447_v46  ;;  %1578 = vmatpush.msrb.mxu2 %v1516_v47  ;;  %v1641_v46 = vld [vmem:[#allocation5 + $0x1118] sm:$0xff] }
 0x429   :  { %1554 = vmatmul.f32.vlgmr.msrb.gmra.mxu1 %v2821_v61  ;;  %2570 = vmatmul.msk.f32.vlgmr.msrb.gmra.mxu2 %vm366_vm0, %v2875_v24 }
 0x42a   :  { %1690 = vmatpush.msra.mxu1 %v1668_v49  ;;  %1710 = vmatpush.msra.mxu2 %v1637_v10 }
 0x42c   :  { %1691 = vmatpush.msra.mxu1 %v1666_v51  ;;  %1711 = vmatpush.msra.mxu2 %v1635_v12  ;;  %v2593_v51 = vld [vmem:[#allocation2 + $0x8] sm:$0xff] }
 0x42e   :  { %1692 = vmatpush.msra.mxu1 %v1664_v52  ;;  %1712 = vmatpush.msra.mxu2 %v1633_v14 }
 0x430   :  { %1693 = vmatpush.msra.mxu1 %v1662_v55  ;;  %1713 = vmatpush.msra.mxu2 %v1631_v15  ;;  %v2117_v55 = vld [vmem:[%s3009_s6] sm:$0xff] }
 0x431   :  { %2121 = vperm.xlu0 %2588, %v2117_v55   ;;  %v1976_v55 = vld [vmem:[#allocation7 + $0x398] sm:$0xff] }
 0x432   :  { %1694 = vmatpush.msra.mxu1 %v1660_v56  ;;  %1714 = vmatpush.msra.mxu2 %v1629_v16  ;;  %v1981_v56 = vld [vmem:[#allocation7 + $0x3c0] sm:$0xff] }
 0x433   :  { %v1893_v16 = vld [vmem:[#allocation7 + $0x100] sm:$0xff] }
 0x434   :  { %1695 = vmatpush.msra.mxu1 %v1658_v57  ;;  %1715 = vmatpush.msra.mxu2 %v1627_v17  ;;  %v1973_v57 = vld [vmem:[#allocation7 + $0x380] sm:$0xff] }
 0x436   :  { %1696 = vmatpush.msra.mxu1 %v1656_v58  ;;  %1716 = vmatpush.msra.mxu2 %v1625_v18  ;;  %v1965_v58 = vld [vmem:[#allocation7 + $0x340] sm:$0xff]  ;;  %v2916_v18 = vld [vmem:[%s3007_s4] sm:$0xff] }
 0x438   :  { %1697 = vmatpush.msra.mxu1 %v1654_v59  ;;  %1717 = vmatpush.msra.mxu2 %v1623_v19  ;;  %v1957_v59 = vld [vmem:[#allocation7 + $0x300] sm:$0xff] }
 0x43a   :  { %1698 = vmatpush.msra.mxu1 %v1652_v62  ;;  %v1949_v62 = vld [vmem:[#allocation7 + $0x2c0] sm:$0xff] }
 0x43c   :  { %1699 = vmatpush.msra.mxu1 %v1650_v63  ;;  %v835_v63 = vadd.f32 %v2831_v35, %v2811_v13  ;;  %v1909_v13 = vld [vmem:[#allocation7 + $0x180] sm:$0xff] }
 0x43e   :  { %1700 = vmatpush.msra.mxu1 %v1648_v0  ;;  %v1941_v0 = vld [vmem:[#allocation7 + $0x280] sm:$0xff] }
 0x440   :  { %1701 = vmatpush.msra.mxu1 %v1646_v39  ;;  %v1027_v39 = vadd.f32 %v2849_v48, %v835_v63  ;;  %v1901_v48 = vld [vmem:[#allocation7 + $0x140] sm:$0xff]  ;;  %v1928_v63 = vld [vmem:[#allocation7 + $0x218] sm:$0xff] }
 0x442   :  { %1702 = vmatpush.msra.mxu1 %v1644_v60  ;;  %v1933_v60 = vld [vmem:[#allocation7 + $0x240] sm:$0xff] }
 0x444   :  { %1703 = vmatpush.msra.mxu1 %v1642_v2  ;;  %v1219_v2 = vadd.f32 %v2867_v1, %v1027_v39  ;;  %v1912_v39 = vld [vmem:[#allocation7 + $0x198] sm:$0xff] }
 0x446   :  { %1704 = vmatpush.msra.mxu1 %v1640_v3 }
 0x448   :  { %1705 = vmatpush.msra.mxu1 %v1638_v4  ;;  %v1925_v4 = vld [vmem:[#allocation7 + $0x200] sm:$0xff] }
 0x449   :  { %1706 = vmatmul.f32.vlgmr.msra.gmra.mxu1 %v2821_v61  ;;  %v1621_v61 = vld [vmem:[#allocation5 + $0x1078] sm:$0xff] }
 0x44a   :  { %1718 = vmatpush.msra.mxu2 %v1621_v61  ;;  %v1982_v61 = vld [vmem:[#allocation7 + $0x3c8] sm:$0xff] }
 0x471   :  { %v1535_v23 = vpop.f32.mrf.mxu0 }
 0x486   :  { %v1408_v5 = vpop.f32.mrf.mxu1 }
 0x487   :  { %v2885_v7 = vadd.f32 %v1408_v5, %v2865_v53  ;;  %v1619_v53 = vld [vmem:[#allocation5 + $0x1068] sm:$0xff]  ;;  %v1411_v5 = vadd.f32 %v2887_v20, %v1219_v2  ;;  %v1885_v20 = vld [vmem:[#allocation7 + $0xc0] sm:$0xff]  ;;  %v1896_v2 = vld [vmem:[#allocation7 + $0x118] sm:$0xff] }
 0x488   :  { %1719 = vmatpush.msra.mxu2 %v1619_v53 }
 0x48a   :  { %1720 = vmatpush.msra.mxu2 %v1617_v9  ;;  %v1974_v9 = vld [vmem:[#allocation7 + $0x388] sm:$0xff] }
 0x48c   :  { %1721 = vmatpush.msra.mxu2 %v1615_v21  ;;  %v1877_v21 = vld [vmem:[#allocation7 + $0x80] sm:$0xff] }
 0x48e   :  { %1722 = vmatpush.msra.mxu2 %v1613_v6  ;;  %v1966_v6 = vld [vmem:[#allocation7 + $0x348] sm:$0xff] }
 0x490   :  { %1723 = vmatpush.msra.mxu2 %v1611_v22  ;;  %v2910_v14 = vpop.permute.xlu0 %1800  ;;  %v1869_v22 = vld [vmem:[#allocation7 + $0x40] sm:$0xff] }
 0x491   :  { %v1687_v45 = vpop.f32.mrf.mxu0 }
 0x492   :  { %1724 = vmatpush.msra.mxu2 %v1609_v8  ;;  %v1861_v8 = vld [vmem:[#allocation7] sm:$0xff] }
 0x494   :  { %1725 = vmatpush.msra.mxu2 %v1607_v27  ;;  %v1983_v27 = vld [vmem:[#allocation7 + $0x3d0] sm:$0xff] }
 0x495   :  { %1726 = vmatmul.f32.vlgmr.msra.gmra.mxu2 %v2880_v54 }
 0x4a6   :  { %v1555_v25 = vpop.f32.mrf.mxu1 }
 0x4a7   :  { %v1556_v26 = vadd.f32 %v1555_v25, %v1535_v23  ;;  %v1958_v23 = vld [vmem:[#allocation7 + $0x308] sm:$0xff]  ;;  %v2924_v25 = vld [vmem:[%s3007_s4 + $0x8] sm:$0xff] }
 0x4a9   :  { %1598 = vmatpush.msrb.mxu3 %v1556_v26  ;;  %v1950_v26 = vld [vmem:[#allocation7 + $0x2c8] sm:$0xff] }
 0x4aa   :  { %2571 = vmatmul.msk.f32.vlgmr.msrb.gmra.mxu3 %vm366_vm0, %v2875_v24  ;;  %v1639_v24 = vld [vmem:[#allocation5 + $0x1108] sm:$0xff] }
 0x4ab   :  { %1730 = vmatpush.msra.mxu3 %v1669_v29  ;;  %v1942_v29 = vld [vmem:[#allocation7 + $0x288] sm:$0xff] }
 0x4ac   :  { %v1580_v3 = vpop.f32.mrf.mxu2 }
 0x4ad   :  { %1731 = vmatpush.msra.mxu3 %v1667_v30  ;;  %v1603_v10 = vadd.f32 %v1580_v3, %v1411_v5  ;;  %v1975_v30 = vld [vmem:[#allocation7 + $0x390] sm:$0xff]  ;;  %v1888_v3 = vld [vmem:[#allocation7 + $0xd8] sm:$0xff] }
 0x4ae   :  { %v1880_v5 = vld [vmem:[#allocation7 + $0x98] sm:$0xff] }
 0x4af   :  { %1732 = vmatpush.msra.mxu3 %v1665_v33  ;;  %v1926_v33 = vld [vmem:[#allocation7 + $0x208] sm:$0xff] }
 0x4b1   :  { %1733 = vmatpush.msra.mxu3 %v1663_v34  ;;  %v1959_v34 = vld [vmem:[#allocation7 + $0x310] sm:$0xff] }
 0x4b3   :  { %1734 = vmatpush.msra.mxu3 %v1661_v11  ;;  %v1918_v11 = vld [vmem:[#allocation7 + $0x1c8] sm:$0xff] }
 0x4b5   :  { %1735 = vmatpush.msra.mxu3 %v1659_v36  ;;  %v1951_v36 = vld [vmem:[#allocation7 + $0x2d0] sm:$0xff] }
 0x4b7   :  { %1736 = vmatpush.msra.mxu3 %v1657_v37  ;;  %v1910_v37 = vld [vmem:[#allocation7 + $0x188] sm:$0xff] }
 0x4b9   :  { %1737 = vmatpush.msra.mxu3 %v1655_v38  ;;  %v1943_v38 = vld [vmem:[#allocation7 + $0x290] sm:$0xff] }
 0x4bb   :  { %1738 = vmatpush.msra.mxu3 %v1653_v40  ;;  %v1902_v40 = vld [vmem:[#allocation7 + $0x148] sm:$0xff] }
 0x4bd   :  { %1739 = vmatpush.msra.mxu3 %v1651_v41  ;;  %v1935_v41 = vld [vmem:[#allocation7 + $0x250] sm:$0xff] }
 0x4bf   :  { %1740 = vmatpush.msra.mxu3 %v1649_v42  ;;  %v1894_v42 = vld [vmem:[#allocation7 + $0x108] sm:$0xff] }
 0x4c1   :  { %1741 = vmatpush.msra.mxu3 %v1647_v28  ;;  %v1927_v28 = vld [vmem:[#allocation7 + $0x210] sm:$0xff] }
 0x4c3   :  { %1742 = vmatpush.msra.mxu3 %v1645_v43  ;;  %v1886_v43 = vld [vmem:[#allocation7 + $0xc8] sm:$0xff] }
 0x4c5   :  { %1743 = vmatpush.msra.mxu3 %v1643_v44  ;;  %v1919_v44 = vld [vmem:[#allocation7 + $0x1d0] sm:$0xff] }
 0x4c6   :  { %v1707_v47 = vpop.f32.mrf.mxu1 }
 0x4c7   :  { %v1708_v49 = vadd.f32 %v1707_v47, %v1687_v45  ;;  %1744 = vmatpush.msra.mxu3 %v1641_v46  ;;  %v1878_v45 = vld [vmem:[#allocation7 + $0x88] sm:$0xff]  ;;  %v1911_v46 = vld [vmem:[#allocation7 + $0x190] sm:$0xff] }
 0x4c8   :  { %v1870_v47 = vld [vmem:[#allocation7 + $0x48] sm:$0xff] }
 0x4c9   :  { %1745 = vmatpush.msra.mxu3 %v1639_v24  ;;  %1770 = vmatpush.msrb.mxu0 %v1708_v49  ;;  %v1903_v24 = vld [vmem:[#allocation7 + $0x150] sm:$0xff]  ;;  %v1862_v49 = vld [vmem:[#allocation7 + $0x8] sm:$0xff] }
 0x4ca   :  { %1746 = vmatmul.f32.vlgmr.msra.gmra.mxu3 %v2593_v51  ;;  %2573 = vmatmul.msk.f32.vlgmr.msrb.gmra.mxu0 %vm366_vm0, %v2572_v50  ;;  %v1984_v51 = vld [vmem:[#allocation7 + $0x3d8] sm:$0xff] }
 0x4cb   :  { %2129 = vmatpush.msra.mxu0 %v1981_v56  ;;  %v1968_v56 = vld [vmem:[#allocation7 + $0x358] sm:$0xff] }
 0x4cd   :  { %2130 = vmatpush.msra.mxu0 %v1973_v57  ;;  %v1960_v57 = vld [vmem:[#allocation7 + $0x318] sm:$0xff] }
 0x4cf   :  { %2131 = vmatpush.msra.mxu0 %v1965_v58  ;;  %v1952_v58 = vld [vmem:[#allocation7 + $0x2d8] sm:$0xff] }
 0x4d1   :  { %2132 = vmatpush.msra.mxu0 %v1957_v59  ;;  %v1944_v59 = vld [vmem:[#allocation7 + $0x298] sm:$0xff] }
 0x4d3   :  { %2133 = vmatpush.msra.mxu0 %v1949_v62  ;;  %v1936_v62 = vld [vmem:[#allocation7 + $0x258] sm:$0xff] }
 0x4d5   :  { %2134 = vmatpush.msra.mxu0 %v1941_v0  ;;  %v1920_v0 = vld [vmem:[#allocation7 + $0x1d8] sm:$0xff] }
 0x4d7   :  { %2135 = vmatpush.msra.mxu0 %v1933_v60  ;;  %v1904_v60 = vld [vmem:[#allocation7 + $0x158] sm:$0xff] }
 0x4d9   :  { %2136 = vmatpush.msra.mxu0 %v1925_v4  ;;  %v1879_v4 = vld [vmem:[#allocation7 + $0x90] sm:$0xff] }
 0x518   :  { %v1727_v1 = vpop.f32.mrf.mxu2 }
 0x52d   :  { %v1600_v52 = vpop.f32.mrf.mxu3 }
 0x52e   :  { %v2900_v54 = vadd.f32 %v1600_v52, %v2885_v7  ;;  %v1917_v7 = vld [vmem:[#allocation7 + $0x1c0] sm:$0xff]  ;;  %v1887_v52 = vld [vmem:[#allocation7 + $0xd0] sm:$0xff] }
 0x52f   :  { %2137 = vmatpush.msra.mxu0 %v1917_v7  ;;  %v1871_v7 = vld [vmem:[#allocation7 + $0x50] sm:$0xff] }
 0x531   :  { %2138 = vmatpush.msra.mxu0 %v1909_v13  ;;  %v1864_v13 = vld [vmem:[#allocation7 + $0x18] sm:$0xff] }
 0x533   :  { %2139 = vmatpush.msra.mxu0 %v1901_v48 }
 0x535   :  { %2140 = vmatpush.msra.mxu0 %v1893_v16  ;;  %v1986_v16 = vld [vmem:[#allocation7 + $0x3e8] sm:$0xff] }
 0x537   :  { %2141 = vmatpush.msra.mxu0 %v1885_v20  ;;  %v1969_v20 = vld [vmem:[#allocation7 + $0x360] sm:$0xff] }
 0x539   :  { %2142 = vmatpush.msra.mxu0 %v1877_v21  ;;  %v1953_v21 = vld [vmem:[#allocation7 + $0x2e0] sm:$0xff] }
 0x53b   :  { %2143 = vmatpush.msra.mxu0 %v1869_v22 }
 0x53d   :  { %2144 = vmatpush.msra.mxu0 %v1861_v8  ;;  %v1946_v8 = vld [vmem:[#allocation7 + $0x2a8] sm:$0xff] }
 0x53f   :  { %2221 = vmatpush.msrb.mxu0 %v1983_v27  ;;  %v1929_v27 = vld [vmem:[#allocation7 + $0x220] sm:$0xff] }
 0x541   :  { %2222 = vmatpush.msrb.mxu0 %v1975_v30  ;;  %v1921_v30 = vld [vmem:[#allocation7 + $0x1e0] sm:$0xff] }
 0x543   :  { %2223 = vmatpush.msrb.mxu0 %v1967_v32  ;;  %v1913_v32 = vld [vmem:[#allocation7 + $0x1a0] sm:$0xff] }
 0x545   :  { %2224 = vmatpush.msrb.mxu0 %v1959_v34  ;;  %v1905_v34 = vld [vmem:[#allocation7 + $0x160] sm:$0xff] }
 0x547   :  { %v1772_v12 = vpop.f32.mrf.mxu0  ;;  %2225 = vmatpush.msrb.mxu0 %v1951_v36  ;;  %v1898_v36 = vld [vmem:[#allocation7 + $0x128] sm:$0xff] }
 0x548   :  { %v1795_v35 = vadd.f32 %v1772_v12, %v1603_v10  ;;  %v1872_v10 = vld [vmem:[#allocation7 + $0x58] sm:$0xff]  ;;  %v1863_v12 = vld [vmem:[#allocation7 + $0x10] sm:$0xff] }
 0x549   :  { %2226 = vmatpush.msrb.mxu0 %v1943_v38  ;;  %v1890_v38 = vld [vmem:[#allocation7 + $0xe8] sm:$0xff] }
 0x54a   :  { %v1803_v15 = vadd.f32 %v2910_v14, %v1795_v35 }
 0x54b   :  { %2227 = vmatpush.msrb.mxu0 %v1935_v41  ;;  %v1882_v41 = vld [vmem:[#allocation7 + $0xa8] sm:$0xff] }
 0x54c   :  { %v1805_v17 = vmax.f32 %v1803_v15, 0.0 }
 0x54d   :  { %v1747_v19 = vpop.f32.mrf.mxu3  ;;  %2228 = vmatpush.msrb.mxu0 %v1927_v28  ;;  %v1874_v28 = vld [vmem:[#allocation7 + $0x68] sm:$0xff] }
 0x54e   :  { %v1748_v53 = vadd.f32 %v1747_v19, %v1727_v1  ;;  %1830 = vmatpush.msrb.mxu2 %v1805_v17  ;;  %v1985_v1 = vld [vmem:[#allocation7 + $0x3e0] sm:$0xff] }
 0x54f   :  { %2575 = vmatmul.msk.f32.vlgmr.msrb.gmra.mxu2 %vm366_vm0, %v2916_v18  ;;  %2229 = vmatpush.msrb.mxu0 %v1919_v44  ;;  %v1866_v44 = vld [vmem:[#allocation7 + $0x28] sm:$0xff] }
 0x550   :  { %1790 = vmatpush.msrb.mxu1 %v1748_v53  ;;  %2175 = vmatpush.msra.mxu2 %v1982_v61  ;;  %v1977_v61 = vld [vmem:[#allocation7 + $0x3a0] sm:$0xff]  ;;  %v1978_v53 = vld [vmem:[#allocation7 + $0x3a8] sm:$0xff] }
 0x551   :  { %2574 = vmatmul.msk.f32.vlgmr.msrb.gmra.mxu1 %vm366_vm0, %v2572_v50  ;;  %2230 = vmatpush.msrb.mxu0 %v1911_v46  ;;  %v1895_v50 = vld [vmem:[#allocation7 + $0x110] sm:$0xff]  ;;  %v1988_v46 = vld [vmem:[#allocation7 + $0x3f8] sm:$0xff] }
 0x552   :  { %2176 = vmatpush.msra.mxu2 %v1974_v9  ;;  %v1970_v9 = vld [vmem:[#allocation7 + $0x368] sm:$0xff] }
 0x553   :  { %2231 = vmatpush.msrb.mxu0 %v1903_v24  ;;  %v1980_v24 = vld [vmem:[#allocation7 + $0x3b8] sm:$0xff] }
 0x554   :  { %2177 = vmatpush.msra.mxu2 %v1966_v6  ;;  %v1954_v6 = vld [vmem:[#allocation7 + $0x2e8] sm:$0xff] }
 0x555   :  { %2232 = vmatpush.msrb.mxu0 %v1895_v50  ;;  %v2110_v50 = vld [vmem:[#allocation7 + $0x7c8] sm:$0xff] }
 0x556   :  { %2178 = vmatpush.msra.mxu2 %v1958_v23  ;;  %v1945_v23 = vld [vmem:[#allocation7 + $0x2a0] sm:$0xff] }
 0x557   :  { %2576 = vmatmul.msk.f32.gmra.mxu2 %vm366_vm0, %v2924_v25  ;;  %2233 = vmatpush.msrb.mxu0 %v1887_v52  ;;  %v1972_v52 = vld [vmem:[#allocation7 + $0x378] sm:$0xff] }
 0x558   :  { %2179 = vmatpush.msra.mxu2 %v1950_v26  ;;  %v1937_v26 = vld [vmem:[#allocation7 + $0x260] sm:$0xff] }
 0x559   :  { %2234 = vmatpush.msrb.mxu0 %v1879_v4  ;;  %v1939_v4 = vld [vmem:[#allocation7 + $0x270] sm:$0xff] }
 0x55a   :  { %2180 = vmatpush.msra.mxu2 %v1942_v29  ;;  %v1930_v29 = vld [vmem:[#allocation7 + $0x228] sm:$0xff] }
 0x55b   :  { %2235 = vmatpush.msrb.mxu0 %v1871_v7  ;;  %v2077_v7 = vld [vmem:[#allocation7 + $0x6c0] sm:$0xff] }
 0x55c   :  { %2181 = vmatpush.msra.mxu2 %v1934_v31  ;;  %v1922_v31 = vld [vmem:[#allocation7 + $0x1e8] sm:$0xff] }
 0x55d   :  { %2236 = vmatpush.msrb.mxu0 %v1863_v12  ;;  %v1931_v12 = vld [vmem:[#allocation7 + $0x230] sm:$0xff] }
 0x55e   :  { %2182 = vmatpush.msra.mxu2 %v1926_v33  ;;  %v1914_v33 = vld [vmem:[#allocation7 + $0x1a8] sm:$0xff] }
 0x560   :  { %2183 = vmatpush.msra.mxu2 %v1918_v11  ;;  %v1906_v11 = vld [vmem:[#allocation7 + $0x168] sm:$0xff] }
 0x562   :  { %2184 = vmatpush.msra.mxu2 %v1910_v37  ;;  %v1889_v37 = vld [vmem:[#allocation7 + $0xe0] sm:$0xff] }
 0x564   :  { %2185 = vmatpush.msra.mxu2 %v1902_v40  ;;  %v1881_v40 = vld [vmem:[#allocation7 + $0xa0] sm:$0xff] }
 0x566   :  { %2186 = vmatpush.msra.mxu2 %v1894_v42  ;;  %v1873_v42 = vld [vmem:[#allocation7 + $0x60] sm:$0xff] }
 0x568   :  { %2187 = vmatpush.msra.mxu2 %v1886_v43  ;;  %v1865_v43 = vld [vmem:[#allocation7 + $0x20] sm:$0xff] }
 0x56a   :  { %2188 = vmatpush.msra.mxu2 %v1878_v45  ;;  %v1987_v45 = vld [vmem:[#allocation7 + $0x3f0] sm:$0xff] }
 0x56c   :  { %2189 = vmatpush.msra.mxu2 %v1870_v47  ;;  %v1979_v47 = vld [vmem:[#allocation7 + $0x3b0] sm:$0xff] }
 0x56e   :  { %2190 = vmatpush.msra.mxu2 %v1862_v49  ;;  %v2109_v49 = vld [vmem:[#allocation7 + $0x7c0] sm:$0xff] }
 0x56f   :  { %2152 = vmatpush.msra.mxu1 %v2109_v49  ;;  %v2103_v49 = vld [vmem:[#allocation7 + $0x790] sm:$0xff] }
 0x570   :  { %2267 = vmatpush.msrb.mxu2 %v1984_v51  ;;  %v1971_v51 = vld [vmem:[#allocation7 + $0x370] sm:$0xff] }
 0x572   :  { %2268 = vmatpush.msrb.mxu2 %v1976_v55  ;;  %v2101_v55 = vld [vmem:[#allocation7 + $0x780] sm:$0xff] }
 0x573   :  { %2153 = vmatpush.msra.mxu1 %v2101_v55  ;;  %v2088_v55 = vld [vmem:[#allocation7 + $0x718] sm:$0xff] }
 0x574   :  { %2269 = vmatpush.msrb.mxu2 %v1968_v56  ;;  %v2102_v56 = vld [vmem:[#allocation7 + $0x788] sm:$0xff] }
 0x576   :  { %2270 = vmatpush.msrb.mxu2 %v1960_v57  ;;  %v1963_v57 = vld [vmem:[#allocation7 + $0x330] sm:$0xff] }
 0x578   :  { %2271 = vmatpush.msrb.mxu2 %v1952_v58  ;;  %v1964_v58 = vld [vmem:[#allocation7 + $0x338] sm:$0xff] }
 0x57a   :  { %2272 = vmatpush.msrb.mxu2 %v1944_v59  ;;  %v2093_v59 = vld [vmem:[#allocation7 + $0x740] sm:$0xff] }
 0x57b   :  { %2154 = vmatpush.msra.mxu1 %v2093_v59  ;;  %v2072_v59 = vld [vmem:[#allocation7 + $0x698] sm:$0xff] }
 0x57c   :  { %2273 = vmatpush.msrb.mxu2 %v1936_v62  ;;  %v2094_v62 = vld [vmem:[#allocation7 + $0x748] sm:$0xff] }
 0x57e   :  { %2274 = vmatpush.msrb.mxu2 %v1928_v63  ;;  %v1955_v63 = vld [vmem:[#allocation7 + $0x2f0] sm:$0xff] }
 0x580   :  { %2275 = vmatpush.msrb.mxu2 %v1920_v0  ;;  %v1956_v0 = vld [vmem:[#allocation7 + $0x2f8] sm:$0xff] }
 0x582   :  { %2276 = vmatpush.msrb.mxu2 %v1912_v39  ;;  %v1947_v39 = vld [vmem:[#allocation7 + $0x2b0] sm:$0xff] }
 0x584   :  { %2277 = vmatpush.msrb.mxu2 %v1904_v60  ;;  %v1948_v60 = vld [vmem:[#allocation7 + $0x2b8] sm:$0xff] }
 0x586   :  { %2278 = vmatpush.msrb.mxu2 %v1896_v2  ;;  %v2085_v2 = vld [vmem:[#allocation7 + $0x700] sm:$0xff] }
 0x587   :  { %2155 = vmatpush.msra.mxu1 %v2085_v2  ;;  %v2039_v2 = vld [vmem:[#allocation7 + $0x590] sm:$0xff] }
 0x588   :  { %2279 = vmatpush.msrb.mxu2 %v1888_v3  ;;  %v2086_v3 = vld [vmem:[#allocation7 + $0x708] sm:$0xff] }
 0x589   :  { %2156 = vmatpush.msra.mxu1 %v2077_v7  ;;  %v2023_v7 = vld [vmem:[#allocation7 + $0x510] sm:$0xff] }
 0x58a   :  { %2280 = vmatpush.msrb.mxu2 %v1880_v5  ;;  %v1940_v5 = vld [vmem:[#allocation7 + $0x278] sm:$0xff] }
 0x58c   :  { %2281 = vmatpush.msrb.mxu2 %v1872_v10  ;;  %v2078_v10 = vld [vmem:[#allocation7 + $0x6c8] sm:$0xff] }
 0x58e   :  { %2282 = vmatpush.msrb.mxu2 %v1864_v13  ;;  %v1932_v13 = vld [vmem:[#allocation7 + $0x238] sm:$0xff] }
 0x5ce   :  { %v1792_v35 = vpop.f32.mrf.mxu1 }
 0x5cf   :  { %v1796_v48 = vadd.f32 %v1792_v35, %v2900_v54  ;;  %v1961_v54 = vld [vmem:[#allocation7 + $0x320] sm:$0xff] }
 0x5d0   :  { %v2069_v35 = vld [vmem:[#allocation7 + $0x680] sm:$0xff] }
 0x5d1   :  { %v1804_v15 = vadd.f32 %v2910_v14, %v1796_v48  ;;  %v1962_v14 = vld [vmem:[#allocation7 + $0x328] sm:$0xff]  ;;  %2157 = vmatpush.msra.mxu1 %v2069_v35  ;;  %v2007_v35 = vld [vmem:[#allocation7 + $0x490] sm:$0xff] }
 0x5d2   :  { %v2930_v17 = vpop.f32.mrf.mxu2  ;;  %v2070_v48 = vld [vmem:[#allocation7 + $0x688] sm:$0xff] }
 0x5d3   :  { %v1806_v19 = vmax.f32 %v1804_v15, 0.0  ;;  %2145 = vmatmul.f32.vlgmr.msra.gmra.mxu0 %v2930_v17  ;;  %2191 = vmatmul.f32.vlgmr.msra.gmra.mxu2 %v2930_v17  ;;  %v1923_v15 = vld [vmem:[#allocation7 + $0x1f0] sm:$0xff] }
 0x5d4   :  { %2313 = vmatpush.msra.mxu0 %v1985_v1  ;;  %2359 = vmatpush.msra.mxu2 %v1986_v16  ;;  %v1924_v1 = vld [vmem:[#allocation7 + $0x1f8] sm:$0xff]  ;;  %v2061_v16 = vld [vmem:[#allocation7 + $0x640] sm:$0xff] }
 0x5d5   :  { %1853 = vmatpush.msrb.mxu3 %v1806_v19  ;;  %v2062_v19 = vld [vmem:[#allocation7 + $0x648] sm:$0xff]  ;;  %2158 = vmatpush.msra.mxu1 %v2061_v16  ;;  %v1991_v16 = vld [vmem:[#allocation7 + $0x410] sm:$0xff] }
 0x5d6   :  { %2314 = vmatpush.msra.mxu0 %v1977_v61  ;;  %2360 = vmatpush.msra.mxu2 %v1978_v53  ;;  %v1915_v61 = vld [vmem:[#allocation7 + $0x1b0] sm:$0xff]  ;;  %v1916_v53 = vld [vmem:[#allocation7 + $0x1b8] sm:$0xff] }
 0x5d7   :  { %2577 = vmatmul.msk.f32.vlgmr.msrb.gmra.mxu3 %vm366_vm0, %v2916_v18  ;;  %v1938_v18 = vld [vmem:[#allocation7 + $0x268] sm:$0xff] }
 0x5d8   :  { %2315 = vmatpush.msra.mxu0 %v1969_v20  ;;  %2361 = vmatpush.msra.mxu2 %v1970_v9  ;;  %v2053_v20 = vld [vmem:[#allocation7 + $0x600] sm:$0xff]  ;;  %v2054_v9 = vld [vmem:[#allocation7 + $0x608] sm:$0xff] }
 0x5d9   :  { %2198 = vmatpush.msra.mxu3 %v2110_v50  ;;  %2159 = vmatpush.msra.mxu1 %v2053_v20  ;;  %v2104_v50 = vld [vmem:[#allocation7 + $0x798] sm:$0xff] }
 0x5da   :  { %2316 = vmatpush.msra.mxu0 %v1961_v54  ;;  %2362 = vmatpush.msra.mxu2 %v1962_v14  ;;  %v2936_v22 = vpop.f32.mrf.mxu2  ;;  %v1907_v54 = vld [vmem:[#allocation7 + $0x170] sm:$0xff]  ;;  %v1908_v14 = vld [vmem:[#allocation7 + $0x178] sm:$0xff] }
 0x5db   :  { %2148 = vmatmul.f32.gmra.mxu0 %v2936_v22  ;;  %2194 = vmatmul.f32.gmra.mxu2 %v2936_v22 }
 0x5dc   :  { %2317 = vmatpush.msra.mxu0 %v1953_v21  ;;  %2363 = vmatpush.msra.mxu2 %v1954_v6  ;;  %v2045_v21 = vld [vmem:[#allocation7 + $0x5c0] sm:$0xff]  ;;  %v2046_v6 = vld [vmem:[#allocation7 + $0x5c8] sm:$0xff] }
 0x5dd   :  { %2199 = vmatpush.msra.mxu3 %v2102_v56  ;;  %2160 = vmatpush.msra.mxu1 %v2045_v21  ;;  %v2079_v56 = vld [vmem:[#allocation7 + $0x6d0] sm:$0xff]  ;;  %v2097_v21 = vld [vmem:[#allocation7 + $0x760] sm:$0xff] }
 0x5de   :  { %2318 = vmatpush.msra.mxu0 %v1945_v23  ;;  %2364 = vmatpush.msra.mxu2 %v1946_v8  ;;  %v1899_v23 = vld [vmem:[#allocation7 + $0x130] sm:$0xff]  ;;  %v1900_v8 = vld [vmem:[#allocation7 + $0x138] sm:$0xff] }
 0x5df   :  { %2578 = vmatmul.msk.f32.gmra.mxu3 %vm366_vm0, %v2924_v25  ;;  %v1897_v25 = vld [vmem:[#allocation7 + $0x120] sm:$0xff] }
 0x5e0   :  { %2319 = vmatpush.msra.mxu0 %v1937_v26  ;;  %2365 = vmatpush.msra.mxu2 %v1938_v18  ;;  %v2037_v26 = vld [vmem:[#allocation7 + $0x580] sm:$0xff]  ;;  %v2038_v18 = vld [vmem:[#allocation7 + $0x588] sm:$0xff] }
 0x5e1   :  { %2200 = vmatpush.msra.mxu3 %v2094_v62  ;;  %2161 = vmatpush.msra.mxu1 %v2037_v26  ;;  %v2063_v62 = vld [vmem:[#allocation7 + $0x650] sm:$0xff]  ;;  %v2081_v26 = vld [vmem:[#allocation7 + $0x6e0] sm:$0xff] }
 0x5e2   :  { %2320 = vmatpush.msra.mxu0 %v1929_v27  ;;  %2366 = vmatpush.msra.mxu2 %v1930_v29  ;;  %v1891_v27 = vld [vmem:[#allocation7 + $0xf0] sm:$0xff]  ;;  %v1892_v29 = vld [vmem:[#allocation7 + $0xf8] sm:$0xff] }
 0x5e3   :  { %2237 = vmatmul.f32.vlgmr.msrb.gmra.mxu0 %v2930_v17  ;;  %2283 = vmatmul.f32.vlgmr.msrb.gmra.mxu2 %v2930_v17 }
 0x5e4   :  { %2321 = vmatpush.msra.mxu0 %v1921_v30  ;;  %2367 = vmatpush.msra.mxu2 %v1922_v31  ;;  %v2029_v30 = vld [vmem:[#allocation7 + $0x540] sm:$0xff]  ;;  %v2030_v31 = vld [vmem:[#allocation7 + $0x548] sm:$0xff] }
 0x5e5   :  { %2201 = vmatpush.msra.mxu3 %v2086_v3  ;;  %2162 = vmatpush.msra.mxu1 %v2029_v30  ;;  %v2040_v3 = vld [vmem:[#allocation7 + $0x598] sm:$0xff]  ;;  %v2074_v30 = vld [vmem:[#allocation7 + $0x6a8] sm:$0xff] }
 0x5e6   :  { %2322 = vmatpush.msra.mxu0 %v1913_v32  ;;  %2368 = vmatpush.msra.mxu2 %v1914_v33  ;;  %v1883_v32 = vld [vmem:[#allocation7 + $0xb0] sm:$0xff]  ;;  %v1884_v33 = vld [vmem:[#allocation7 + $0xb8] sm:$0xff] }
 0x5e7   :  { %2202 = vmatpush.msra.mxu3 %v2078_v10  ;;  %v2024_v10 = vld [vmem:[#allocation7 + $0x518] sm:$0xff] }
 0x5e8   :  { %2323 = vmatpush.msra.mxu0 %v1905_v34  ;;  %2369 = vmatpush.msra.mxu2 %v1906_v11  ;;  %v2021_v34 = vld [vmem:[#allocation7 + $0x500] sm:$0xff]  ;;  %v2022_v11 = vld [vmem:[#allocation7 + $0x508] sm:$0xff] }
 0x5e9   :  { %2203 = vmatpush.msra.mxu3 %v2070_v48  ;;  %2163 = vmatpush.msra.mxu1 %v2021_v34  ;;  %v2008_v48 = vld [vmem:[#allocation7 + $0x498] sm:$0xff]  ;;  %v2058_v34 = vld [vmem:[#allocation7 + $0x628] sm:$0xff] }
 0x5ea   :  { %2324 = vmatpush.msra.mxu0 %v1897_v25  ;;  %2370 = vmatpush.msra.mxu2 %v1898_v36  ;;  %v1875_v25 = vld [vmem:[#allocation7 + $0x70] sm:$0xff]  ;;  %v1876_v36 = vld [vmem:[#allocation7 + $0x78] sm:$0xff] }
 0x5eb   :  { %2240 = vmatmul.f32.gmra.mxu0 %v2936_v22  ;;  %2286 = vmatmul.f32.gmra.mxu2 %v2936_v22 }
 0x5ec   :  { %2325 = vmatpush.msra.mxu0 %v1889_v37  ;;  %2371 = vmatpush.msra.mxu2 %v1890_v38  ;;  %v2013_v37 = vld [vmem:[#allocation7 + $0x4c0] sm:$0xff]  ;;  %v2014_v38 = vld [vmem:[#allocation7 + $0x4c8] sm:$0xff] }
 0x5ed   :  { %2204 = vmatpush.msra.mxu3 %v2062_v19  ;;  %2164 = vmatpush.msra.mxu1 %v2013_v37  ;;  %v1992_v19 = vld [vmem:[#allocation7 + $0x418] sm:$0xff]  ;;  %v2042_v37 = vld [vmem:[#allocation7 + $0x5a8] sm:$0xff] }
 0x5ee   :  { %2326 = vmatpush.msra.mxu0 %v1881_v40  ;;  %2372 = vmatpush.msra.mxu2 %v1882_v41  ;;  %v1867_v40 = vld [vmem:[#allocation7 + $0x30] sm:$0xff]  ;;  %v1868_v41 = vld [vmem:[#allocation7 + $0x38] sm:$0xff] }
 0x5ef   :  { %2205 = vmatpush.msra.mxu3 %v2054_v9  ;;  %v2118_v9 = vld [vmem:[%s3009_s6 + $0x8] sm:$0xff]  ;;  %s2704_s6 = smov [#allocation8]  }
 0x5f0   :  { %2327 = vmatpush.msra.mxu0 %v1873_v42  ;;  %2373 = vmatpush.msra.mxu2 %v1874_v28  ;;  %v2005_v42 = vld [vmem:[#allocation7 + $0x480] sm:$0xff]  ;;  %v2006_v28 = vld [vmem:[#allocation7 + $0x488] sm:$0xff]  ;;  %s2533_s5 = sshll.u32 %s2704_s6, 4  ;;  %s2534_s5 = int_to_ptr.vmem [resolvable:$true] %s2533_s5 }
 0x5f1   :  { %2206 = vmatpush.msra.mxu3 %v2046_v6  ;;  %2165 = vmatpush.msra.mxu1 %v2005_v42  ;;  %v2098_v6 = vld [vmem:[#allocation7 + $0x768] sm:$0xff] }
 0x5f2   :  { %2328 = vmatpush.msra.mxu0 %v1865_v43  ;;  %2374 = vmatpush.msra.mxu2 %v1866_v44  ;;  %v1997_v43 = vld [vmem:[#allocation7 + $0x440] sm:$0xff]  ;;  %v1998_v44 = vld [vmem:[#allocation7 + $0x448] sm:$0xff] }
 0x5f3   :  { %2329 = vmatmul.f32.vlgmr.msra.gmra.mxu0 %v2930_v17  ;;  %2375 = vmatmul.f32.vlgmr.msra.gmra.mxu2 %v2930_v17  ;;  %v2026_v42 = vld [vmem:[#allocation7 + $0x528] sm:$0xff] }
 0x5f4   :  { %2405 = vmatpush.msrb.mxu0 %v1987_v45  ;;  %2451 = vmatpush.msrb.mxu2 %v1988_v46  ;;  %v1989_v45 = vld [vmem:[#allocation7 + $0x400] sm:$0xff]  ;;  %v1990_v46 = vld [vmem:[#allocation7 + $0x408] sm:$0xff] }
 0x5f5   :  { %2207 = vmatpush.msra.mxu3 %v2038_v18  ;;  %2166 = vmatpush.msra.mxu1 %v1997_v43  ;;  %v2082_v18 = vld [vmem:[#allocation7 + $0x6e8] sm:$0xff] }
 0x5f6   :  { %2406 = vmatpush.msrb.mxu0 %v1979_v47  ;;  %2452 = vmatpush.msrb.mxu2 %v1980_v24  ;;  %v2111_v47 = vld [vmem:[#allocation7 + $0x7d0] sm:$0xff]  ;;  %v2112_v24 = vld [vmem:[#allocation7 + $0x7d8] sm:$0xff]  ;;  %v2018_v43 = vld [vmem:[#allocation7 + $0x4e8] sm:$0xff] }
 0x5f7   :  { %2208 = vmatpush.msra.mxu3 %v2030_v31  ;;  %2167 = vmatpush.msra.mxu1 %v1989_v45  ;;  %v2065_v31 = vld [vmem:[#allocation7 + $0x660] sm:$0xff]  ;;  %v2010_v45 = vld [vmem:[#allocation7 + $0x4a8] sm:$0xff] }
 0x5f8   :  { %2407 = vmatpush.msrb.mxu0 %v1971_v51  ;;  %2453 = vmatpush.msrb.mxu2 %v1972_v52  ;;  %v2095_v51 = vld [vmem:[#allocation7 + $0x750] sm:$0xff]  ;;  %v2096_v52 = vld [vmem:[#allocation7 + $0x758] sm:$0xff] }
 0x5f9   :  { %2209 = vmatpush.msra.mxu3 %v2022_v11  ;;  %2244 = vmatpush.msrb.mxu1 %v2111_v47  ;;  %v2049_v11 = vld [vmem:[#allocation7 + $0x5e0] sm:$0xff]  ;;  %v2002_v47 = vld [vmem:[#allocation7 + $0x468] sm:$0xff] }
 0x5fa   :  { %2408 = vmatpush.msrb.mxu0 %v1963_v57  ;;  %2454 = vmatpush.msrb.mxu2 %v1964_v58  ;;  %v2080_v57 = vld [vmem:[#allocation7 + $0x6d8] sm:$0xff]  ;;  %v2071_v58 = vld [vmem:[#allocation7 + $0x690] sm:$0xff] }
 0x5fb   :  { %2332 = vmatmul.f32.gmra.mxu0 %v2936_v22  ;;  %2378 = vmatmul.f32.gmra.mxu2 %v2936_v22 }
 0x5fc   :  { %2409 = vmatpush.msrb.mxu0 %v1955_v63  ;;  %2455 = vmatpush.msrb.mxu2 %v1956_v0  ;;  %v2064_v63 = vld [vmem:[#allocation7 + $0x658] sm:$0xff]  ;;  %v2055_v0 = vld [vmem:[#allocation7 + $0x610] sm:$0xff] }
 0x5fd   :  { %2210 = vmatpush.msra.mxu3 %v2014_v38  ;;  %2245 = vmatpush.msrb.mxu1 %v2103_v49  ;;  %v2033_v38 = vld [vmem:[#allocation7 + $0x560] sm:$0xff]  ;;  %v1994_v49 = vld [vmem:[#allocation7 + $0x428] sm:$0xff] }
 0x5fe   :  { %2410 = vmatpush.msrb.mxu0 %v1947_v39  ;;  %2456 = vmatpush.msrb.mxu2 %v1948_v60  ;;  %v2056_v39 = vld [vmem:[#allocation7 + $0x618] sm:$0xff]  ;;  %v2047_v60 = vld [vmem:[#allocation7 + $0x5d0] sm:$0xff] }
 0x5ff   :  { %2211 = vmatpush.msra.mxu3 %v2006_v28  ;;  %2246 = vmatpush.msrb.mxu1 %v2095_v51  ;;  %v2017_v28 = vld [vmem:[#allocation7 + $0x4e0] sm:$0xff]  ;;  %v2116_v51 = vld [vmem:[#allocation7 + $0x7f8] sm:$0xff] }
 0x600   :  { %2411 = vmatpush.msrb.mxu0 %v1939_v4  ;;  %2457 = vmatpush.msrb.mxu2 %v1940_v5  ;;  %v2031_v4 = vld [vmem:[#allocation7 + $0x550] sm:$0xff]  ;;  %v2032_v5 = vld [vmem:[#allocation7 + $0x558] sm:$0xff] }
 0x601   :  { %2212 = vmatpush.msra.mxu3 %v1998_v44  ;;  %2126 = vperm.xlu1 %2589, %v2118_v9   ;;  %v2009_v44 = vld [vmem:[#allocation7 + $0x4a0] sm:$0xff]  ;;  %v1996_v9 = vld [vmem:[#allocation7 + $0x438] sm:$0xff] }
 0x602   :  { %2412 = vmatpush.msrb.mxu0 %v1931_v12  ;;  %2458 = vmatpush.msrb.mxu2 %v1932_v13  ;;  %v2015_v12 = vld [vmem:[#allocation7 + $0x4d0] sm:$0xff]  ;;  %v2016_v13 = vld [vmem:[#allocation7 + $0x4d8] sm:$0xff] }
 0x603   :  { %2213 = vmatpush.msra.mxu3 %v1990_v46  ;;  %v2001_v46 = vld [vmem:[#allocation7 + $0x460] sm:$0xff] }
 0x604   :  { %2413 = vmatpush.msrb.mxu0 %v1923_v15  ;;  %2459 = vmatpush.msrb.mxu2 %v1924_v1  ;;  %v1999_v15 = vld [vmem:[#allocation7 + $0x450] sm:$0xff]  ;;  %v2000_v1 = vld [vmem:[#allocation7 + $0x458] sm:$0xff] }
 0x605   :  { %2290 = vmatpush.msrb.mxu3 %v2112_v24  ;;  %v1993_v24 = vld [vmem:[#allocation7 + $0x420] sm:$0xff] }
 0x606   :  { %2414 = vmatpush.msrb.mxu0 %v1915_v61  ;;  %2460 = vmatpush.msrb.mxu2 %v1916_v53  ;;  %v2113_v61 = vld [vmem:[#allocation7 + $0x7e0] sm:$0xff]  ;;  %v2114_v53 = vld [vmem:[#allocation7 + $0x7e8] sm:$0xff] }
 0x607   :  { %2291 = vmatpush.msrb.mxu3 %v2104_v50  ;;  %v2115_v50 = vld [vmem:[#allocation7 + $0x7f0] sm:$0xff] }
 0x608   :  { %2415 = vmatpush.msrb.mxu0 %v1907_v54  ;;  %2461 = vmatpush.msrb.mxu2 %v1908_v14  ;;  %v2105_v54 = vld [vmem:[#allocation7 + $0x7a0] sm:$0xff]  ;;  %v2106_v14 = vld [vmem:[#allocation7 + $0x7a8] sm:$0xff] }
 0x609   :  { %2292 = vmatpush.msrb.mxu3 %v2096_v52  ;;  %v2107_v52 = vld [vmem:[#allocation7 + $0x7b0] sm:$0xff] }
 0x60a   :  { %2416 = vmatpush.msrb.mxu0 %v1899_v23  ;;  %2462 = vmatpush.msrb.mxu2 %v1900_v8  ;;  %v2089_v23 = vld [vmem:[#allocation7 + $0x720] sm:$0xff]  ;;  %v2090_v8 = vld [vmem:[#allocation7 + $0x728] sm:$0xff] }
 0x60b   :  { %2293 = vmatpush.msrb.mxu3 %v2088_v55  ;;  %v2099_v55 = vld [vmem:[#allocation7 + $0x770] sm:$0xff] }
 0x60c   :  { %2417 = vmatpush.msrb.mxu0 %v1891_v27  ;;  %2463 = vmatpush.msrb.mxu2 %v1892_v29  ;;  %v2073_v29 = vld [vmem:[#allocation7 + $0x6a0] sm:$0xff] }
 0x60d   :  { %2294 = vmatpush.msrb.mxu3 %v2080_v57  ;;  %v2091_v57 = vld [vmem:[#allocation7 + $0x730] sm:$0xff] }
 0x60e   :  { %2418 = vmatpush.msrb.mxu0 %v1883_v32  ;;  %2464 = vmatpush.msrb.mxu2 %v1884_v33  ;;  %v2066_v32 = vld [vmem:[#allocation7 + $0x668] sm:$0xff]  ;;  %v2057_v33 = vld [vmem:[#allocation7 + $0x620] sm:$0xff] }
 0x60f   :  { %2295 = vmatpush.msrb.mxu3 %v2072_v59  ;;  %v2083_v59 = vld [vmem:[#allocation7 + $0x6f0] sm:$0xff] }
 0x610   :  { %2419 = vmatpush.msrb.mxu0 %v1875_v25  ;;  %2465 = vmatpush.msrb.mxu2 %v1876_v36  ;;  %v2050_v25 = vld [vmem:[#allocation7 + $0x5e8] sm:$0xff]  ;;  %v2041_v36 = vld [vmem:[#allocation7 + $0x5a0] sm:$0xff] }
 0x611   :  { %2296 = vmatpush.msrb.mxu3 %v2064_v63  ;;  %v2075_v63 = vld [vmem:[#allocation7 + $0x6b0] sm:$0xff] }
 0x612   :  { %2420 = vmatpush.msrb.mxu0 %v1867_v40  ;;  %2466 = vmatpush.msrb.mxu2 %v1868_v41  ;;  %v2034_v40 = vld [vmem:[#allocation7 + $0x568] sm:$0xff]  ;;  %v2025_v41 = vld [vmem:[#allocation7 + $0x520] sm:$0xff] }
 0x613   :  { %2421 = vmatmul.f32.vlgmr.msrb.gmra.mxu0 %v2930_v17  ;;  %2467 = vmatmul.f32.vlgmr.msrb.gmra.mxu2 %v2930_v17  ;;  %v2087_v17 = vld [vmem:[#allocation7 + $0x710] sm:$0xff] }
 0x614   :  { %2247 = vmatpush.msrb.mxu1 %v2087_v17  ;;  %2297 = vmatpush.msrb.mxu3 %v2056_v39  ;;  %v2108_v17 = vld [vmem:[#allocation7 + $0x7b8] sm:$0xff]  ;;  %v2067_v39 = vld [vmem:[#allocation7 + $0x670] sm:$0xff] }
 0x616   :  { %2248 = vmatpush.msrb.mxu1 %v2079_v56  ;;  %v2100_v56 = vld [vmem:[#allocation7 + $0x778] sm:$0xff] }
 0x618   :  { %2249 = vmatpush.msrb.mxu1 %v2071_v58  ;;  %v2092_v58 = vld [vmem:[#allocation7 + $0x738] sm:$0xff] }
 0x61a   :  { %2250 = vmatpush.msrb.mxu1 %v2063_v62  ;;  %v2084_v62 = vld [vmem:[#allocation7 + $0x6f8] sm:$0xff] }
 0x61b   :  { %2424 = vmatmul.f32.gmra.mxu0 %v2936_v22  ;;  %2470 = vmatmul.f32.gmra.mxu2 %v2936_v22  ;;  %v2048_v22 = vld [vmem:[#allocation7 + $0x5d8] sm:$0xff] }
 0x61c   :  { %2251 = vmatpush.msrb.mxu1 %v2055_v0  ;;  %2298 = vmatpush.msrb.mxu3 %v2048_v22  ;;  %v2076_v0 = vld [vmem:[#allocation7 + $0x6b8] sm:$0xff]  ;;  %v2059_v22 = vld [vmem:[#allocation7 + $0x630] sm:$0xff] }
 0x61e   :  { %2252 = vmatpush.msrb.mxu1 %v2047_v60  ;;  %2299 = vmatpush.msrb.mxu3 %v2040_v3  ;;  %v2068_v60 = vld [vmem:[#allocation7 + $0x678] sm:$0xff]  ;;  %v2051_v3 = vld [vmem:[#allocation7 + $0x5f0] sm:$0xff] }
 0x620   :  { %2253 = vmatpush.msrb.mxu1 %v2039_v2  ;;  %2300 = vmatpush.msrb.mxu3 %v2032_v5  ;;  %v2060_v2 = vld [vmem:[#allocation7 + $0x638] sm:$0xff]  ;;  %v2043_v5 = vld [vmem:[#allocation7 + $0x5b0] sm:$0xff] }
 0x622   :  { %2254 = vmatpush.msrb.mxu1 %v2031_v4  ;;  %2301 = vmatpush.msrb.mxu3 %v2024_v10  ;;  %v2052_v4 = vld [vmem:[#allocation7 + $0x5f8] sm:$0xff]  ;;  %v2035_v10 = vld [vmem:[#allocation7 + $0x570] sm:$0xff] }
 0x624   :  { %2255 = vmatpush.msrb.mxu1 %v2023_v7  ;;  %2302 = vmatpush.msrb.mxu3 %v2016_v13  ;;  %v2044_v7 = vld [vmem:[#allocation7 + $0x5b8] sm:$0xff]  ;;  %v2027_v13 = vld [vmem:[#allocation7 + $0x530] sm:$0xff] }
 0x626   :  { %2256 = vmatpush.msrb.mxu1 %v2015_v12  ;;  %2303 = vmatpush.msrb.mxu3 %v2008_v48  ;;  %v2036_v12 = vld [vmem:[#allocation7 + $0x578] sm:$0xff]  ;;  %v2019_v48 = vld [vmem:[#allocation7 + $0x4f0] sm:$0xff] }
 0x628   :  { %2257 = vmatpush.msrb.mxu1 %v2007_v35  ;;  %2304 = vmatpush.msrb.mxu3 %v2000_v1  ;;  %v2028_v35 = vld [vmem:[#allocation7 + $0x538] sm:$0xff]  ;;  %v2011_v1 = vld [vmem:[#allocation7 + $0x4b0] sm:$0xff] }
 0x62a   :  { %2258 = vmatpush.msrb.mxu1 %v1999_v15  ;;  %2305 = vmatpush.msrb.mxu3 %v1992_v19  ;;  %v2020_v15 = vld [vmem:[#allocation7 + $0x4f8] sm:$0xff]  ;;  %v2003_v19 = vld [vmem:[#allocation7 + $0x470] sm:$0xff] }
 0x62c   :  { %2259 = vmatpush.msrb.mxu1 %v1991_v16  ;;  %v2012_v16 = vld [vmem:[#allocation7 + $0x4b8] sm:$0xff] }
 0x65a   :  { %v2954_v20 = vpop.f32.mrf.mxu3 }
 0x65b   :  { %2168 = vmatmul.f32.vlgmr.msra.gmra.mxu1 %v2954_v20  ;;  %2214 = vmatmul.f32.vlgmr.msra.gmra.mxu3 %v2954_v20 }
 0x65c   :  { %2336 = vmatpush.msra.mxu1 %v2113_v61  ;;  %2382 = vmatpush.msra.mxu3 %v2114_v53  ;;  %v2004_v61 = vld [vmem:[#allocation7 + $0x478] sm:$0xff]  ;;  %v1995_v53 = vld [vmem:[#allocation7 + $0x430] sm:$0xff] }
 0x65e   :  { %2337 = vmatpush.msra.mxu1 %v2105_v54  ;;  %2383 = vmatpush.msra.mxu3 %v2106_v14  ;;  %v2146_v54 = vpop.f32.mrf.mxu0  ;;  %v2192_v14 = vpop.f32.mrf.mxu2 }
 0x660   :  { %2338 = vmatpush.msra.mxu1 %v2097_v21  ;;  %2384 = vmatpush.msra.mxu3 %v2098_v6  ;;  %v2977_v21 = vpop.permute.xlu0 %2121 }
 0x661   :  { %v2147_v6 = vadd.f32 %v2146_v54, %v2977_v21 }
 0x662   :  { %2339 = vmatpush.msra.mxu1 %v2089_v23  ;;  %2385 = vmatpush.msra.mxu3 %v2090_v8  ;;  %v2961_v27 = vpop.f32.mrf.mxu3 }
 0x663   :  { %2171 = vmatmul.f32.gmra.mxu1 %v2961_v27  ;;  %2217 = vmatmul.f32.gmra.mxu3 %v2961_v27 }
 0x664   :  { %2340 = vmatpush.msra.mxu1 %v2081_v26  ;;  %2386 = vmatpush.msra.mxu3 %v2082_v18 }
 0x666   :  { %2341 = vmatpush.msra.mxu1 %v2073_v29  ;;  %2387 = vmatpush.msra.mxu3 %v2074_v30  ;;  %v2149_v23 = vpop.f32.mrf.mxu0  ;;  %v2193_v30 = vadd.f32 %v2192_v14, %v2977_v21 }
 0x668   :  { %2342 = vmatpush.msra.mxu1 %v2065_v31  ;;  %2388 = vmatpush.msra.mxu3 %v2066_v32  ;;  %v2195_v31 = vpop.f32.mrf.mxu2 }
 0x66a   :  { %2343 = vmatpush.msra.mxu1 %v2057_v33  ;;  %2389 = vmatpush.msra.mxu3 %v2058_v34 }
 0x66b   :  { %2260 = vmatmul.f32.vlgmr.msrb.gmra.mxu1 %v2954_v20  ;;  %2306 = vmatmul.f32.vlgmr.msrb.gmra.mxu3 %v2954_v20 }
 0x66c   :  { %2344 = vmatpush.msra.mxu1 %v2049_v11  ;;  %2390 = vmatpush.msra.mxu3 %v2050_v25 }
 0x66e   :  { %2345 = vmatpush.msra.mxu1 %v2041_v36  ;;  %2391 = vmatpush.msra.mxu3 %v2042_v37  ;;  %v2238_v34 = vpop.f32.mrf.mxu0 }
 0x670   :  { %2346 = vmatpush.msra.mxu1 %v2033_v38  ;;  %2392 = vmatpush.msra.mxu3 %v2034_v40  ;;  %v2239_v40 = vadd.f32 %v2238_v34, %v2977_v21 }
 0x672   :  { %2347 = vmatpush.msra.mxu1 %v2025_v41  ;;  %2393 = vmatpush.msra.mxu3 %v2026_v42  ;;  %v2284_v41 = vpop.f32.mrf.mxu2 }
 0x673   :  { %2263 = vmatmul.f32.gmra.mxu1 %v2961_v27  ;;  %2309 = vmatmul.f32.gmra.mxu3 %v2961_v27  ;;  %v2980_v18 = vpop.permute.xlu1 %2126 }
 0x674   :  { %2348 = vmatpush.msra.mxu1 %v2017_v28  ;;  %2394 = vmatpush.msra.mxu3 %v2018_v43  ;;  %v2196_v36 = vadd.f32 %v2195_v31, %v2980_v18 }
 0x676   :  { %2349 = vmatpush.msra.mxu1 %v2009_v44  ;;  %2395 = vmatpush.msra.mxu3 %v2010_v45  ;;  %v2241_v45 = vpop.f32.mrf.mxu0 }
 0x678   :  { %2350 = vmatpush.msra.mxu1 %v2001_v46  ;;  %2396 = vmatpush.msra.mxu3 %v2002_v47  ;;  %v2285_v47 = vadd.f32 %v2284_v41, %v2977_v21 }
 0x67a   :  { %2351 = vmatpush.msra.mxu1 %v1993_v24  ;;  %2397 = vmatpush.msra.mxu3 %v1994_v49 }
 0x67b   :  { %2352 = vmatmul.f32.vlgmr.msra.gmra.mxu1 %v2954_v20  ;;  %2398 = vmatmul.f32.vlgmr.msra.gmra.mxu3 %v2954_v20 }
 0x67c   :  { %2428 = vmatpush.msrb.mxu1 %v2115_v50  ;;  %2474 = vmatpush.msrb.mxu3 %v2116_v51  ;;  %v2242_v50 = vadd.f32 %v2241_v45, %v2980_v18 }
 0x67e   :  { %2429 = vmatpush.msrb.mxu1 %v2107_v52  ;;  %2475 = vmatpush.msrb.mxu3 %v2108_v17  ;;  %v2287_v52 = vpop.f32.mrf.mxu2 }
 0x680   :  { %2430 = vmatpush.msrb.mxu1 %v2099_v55  ;;  %2476 = vmatpush.msrb.mxu3 %v2100_v56 }
 0x682   :  { %2431 = vmatpush.msrb.mxu1 %v2091_v57  ;;  %2477 = vmatpush.msrb.mxu3 %v2092_v58  ;;  %v2330_v57 = vpop.f32.mrf.mxu0  ;;  %v2288_v58 = vadd.f32 %v2287_v52, %v2980_v18 }
 0x683   :  { %2355 = vmatmul.f32.gmra.mxu1 %v2961_v27  ;;  %2401 = vmatmul.f32.gmra.mxu3 %v2961_v27 }
 0x684   :  { %2432 = vmatpush.msrb.mxu1 %v2083_v59  ;;  %2478 = vmatpush.msrb.mxu3 %v2084_v62 }
 0x686   :  { %2433 = vmatpush.msrb.mxu1 %v2075_v63  ;;  %2479 = vmatpush.msrb.mxu3 %v2076_v0  ;;  %v2331_v63 = vadd.f32 %v2330_v57, %v2977_v21 }
 0x688   :  { %2434 = vmatpush.msrb.mxu1 %v2067_v39  ;;  %2480 = vmatpush.msrb.mxu3 %v2068_v60 }
 0x68a   :  { %2435 = vmatpush.msrb.mxu1 %v2059_v22  ;;  %2481 = vmatpush.msrb.mxu3 %v2060_v2  ;;  %v2376_v22 = vpop.f32.mrf.mxu2 }
 0x68c   :  { %2436 = vmatpush.msrb.mxu1 %v2051_v3  ;;  %2482 = vmatpush.msrb.mxu3 %v2052_v4  ;;  %v2377_v3 = vadd.f32 %v2376_v22, %v2977_v21  ;;  %v2333_v4 = vpop.f32.mrf.mxu0 }
 0x68e   :  { %2437 = vmatpush.msrb.mxu1 %v2043_v5  ;;  %2483 = vmatpush.msrb.mxu3 %v2044_v7 }
 0x690   :  { %2438 = vmatpush.msrb.mxu1 %v2035_v10  ;;  %2484 = vmatpush.msrb.mxu3 %v2036_v12  ;;  %v2334_v10 = vadd.f32 %v2333_v4, %v2980_v18 }
 0x692   :  { %2439 = vmatpush.msrb.mxu1 %v2027_v13  ;;  %2485 = vmatpush.msrb.mxu3 %v2028_v35 }
 0x694   :  { %2440 = vmatpush.msrb.mxu1 %v2019_v48  ;;  %2486 = vmatpush.msrb.mxu3 %v2020_v15  ;;  %v2379_v15 = vpop.f32.mrf.mxu2 }
 0x696   :  { %2441 = vmatpush.msrb.mxu1 %v2011_v1  ;;  %2487 = vmatpush.msrb.mxu3 %v2012_v16  ;;  %v2380_v1 = vadd.f32 %v2379_v15, %v2980_v18 }
 0x698   :  { %2442 = vmatpush.msrb.mxu1 %v2003_v19  ;;  %2488 = vmatpush.msrb.mxu3 %v2004_v61 }
 0x69a   :  { %2443 = vmatpush.msrb.mxu1 %v1995_v53  ;;  %2489 = vmatpush.msrb.mxu3 %v1996_v9  ;;  %v2422_v53 = vpop.f32.mrf.mxu0 }
 0x69b   :  { %2444 = vmatmul.f32.vlgmr.msrb.gmra.mxu1 %v2954_v20  ;;  %2490 = vmatmul.f32.vlgmr.msrb.gmra.mxu3 %v2954_v20  ;;  %v2150_v20 = vadd.f32 %v2149_v23, %v2980_v18  ;;  %v2423_v9 = vadd.f32 %v2422_v53, %v2977_v21 }
 0x6a3   :  { %2447 = vmatmul.f32.gmra.mxu1 %v2961_v27  ;;  %2493 = vmatmul.f32.gmra.mxu3 %v2961_v27 }
 0x6d8   :  { %v2169_v8 = vpop.f32.mrf.mxu1 }
 0x6d9   :  { %v2170_v26 = vadd.f32 %v2169_v8, %v2147_v6  ;;  %v2468_v6 = vpop.f32.mrf.mxu2  ;;  %v2425_v8 = vpop.f32.mrf.mxu0 }
 0x6db   :  { %v2497_v29 = vmax.f32 %v2170_v26, 0.0  ;;  %v2469_v26 = vadd.f32 %v2468_v6, %v2977_v21 }
 0x6dd   :  { %2513 = vst [vmem:[#allocation8] sm:$0xff] %v2497_v29 }
 0x6de   :  { %v2215_v32 = vpop.f32.mrf.mxu3 }
 0x6df   :  { %v2216_v27 = vadd.f32 %v2215_v32, %v2193_v30  ;;  %v2426_v30 = vadd.f32 %v2425_v8, %v2980_v18 }
 0x6e0   :  { %v2172_v33 = vpop.f32.mrf.mxu1 }
 0x6e1   :  { %v2498_v11 = vmax.f32 %v2216_v27, 0.0  ;;  %v2173_v25 = vadd.f32 %v2172_v33, %v2150_v20  ;;  %v2471_v33 = vpop.f32.mrf.mxu2 }
 0x6e3   :  { %2514 = vst [vmem:[#allocation8 + $0x8] sm:$0xff] %v2498_v11  ;;  %v2505_v37 = vmax.f32 %v2173_v25, 0.0  ;;  %v2472_v11 = vadd.f32 %v2471_v33, %v2980_v18 }
 0x6e5   :  { %2521 = vst [vmem:[#allocation8 + $0x40] sm:$0xff] %v2505_v37 }
 0x6e6   :  { %v2218_v38 = vpop.f32.mrf.mxu3 }
 0x6e7   :  { %v2219_v42 = vadd.f32 %v2218_v38, %v2196_v36 }
 0x6e8   :  { %v2261_v28 = vpop.f32.mrf.mxu1 }
 0x6e9   :  { %v2262_v43 = vadd.f32 %v2261_v28, %v2239_v40  ;;  %v2506_v44 = vmax.f32 %v2219_v42, 0.0 }
 0x6eb   :  { %v2499_v46 = vmax.f32 %v2262_v43, 0.0  ;;  %2522 = vst [vmem:[#allocation8 + $0x48] sm:$0xff] %v2506_v44 }
 0x6ed   :  { %2515 = vst [vmem:[#allocation8 + $0x10] sm:$0xff] %v2499_v46 }
 0x6ee   :  { %v2307_v24 = vpop.f32.mrf.mxu3 }
 0x6ef   :  { %v2308_v49 = vadd.f32 %v2307_v24, %v2285_v47 }
 0x6f0   :  { %v2264_v51 = vpop.f32.mrf.mxu1 }
 0x6f1   :  { %v2500_v17 = vmax.f32 %v2308_v49, 0.0  ;;  %v2265_v55 = vadd.f32 %v2264_v51, %v2242_v50 }
 0x6f3   :  { %2516 = vst [vmem:[#allocation8 + $0x18] sm:$0xff] %v2500_v17  ;;  %v2507_v56 = vmax.f32 %v2265_v55, 0.0 }
 0x6f5   :  { %2523 = vst [vmem:[#allocation8 + $0x50] sm:$0xff] %v2507_v56 }
 0x6f6   :  { %v2310_v59 = vpop.f32.mrf.mxu3 }
 0x6f7   :  { %v2311_v62 = vadd.f32 %v2310_v59, %v2288_v58 }
 0x6f8   :  { %v2353_v39 = vpop.f32.mrf.mxu1 }
 0x6f9   :  { %v2508_v0 = vmax.f32 %v2311_v62, 0.0  ;;  %v2354_v60 = vadd.f32 %v2353_v39, %v2331_v63 }
 0x6fb   :  { %2524 = vst [vmem:[#allocation8 + $0x58] sm:$0xff] %v2508_v0  ;;  %v2501_v2 = vmax.f32 %v2354_v60, 0.0 }
 0x6fd   :  { %2517 = vst [vmem:[#allocation8 + $0x20] sm:$0xff] %v2501_v2 }
 0x6fe   :  { %v2399_v5 = vpop.f32.mrf.mxu3 }
 0x6ff   :  { %v2400_v7 = vadd.f32 %v2399_v5, %v2377_v3 }
 0x700   :  { %v2356_v12 = vpop.f32.mrf.mxu1 }
 0x701   :  { %v2502_v13 = vmax.f32 %v2400_v7, 0.0  ;;  %v2357_v35 = vadd.f32 %v2356_v12, %v2334_v10 }
 0x703   :  { %2518 = vst [vmem:[#allocation8 + $0x28] sm:$0xff] %v2502_v13  ;;  %v2509_v48 = vmax.f32 %v2357_v35, 0.0 }
 0x705   :  { %2525 = vst [vmem:[#allocation8 + $0x60] sm:$0xff] %v2509_v48 }
 0x706   :  { %v2402_v16 = vpop.f32.mrf.mxu3 }
 0x707   :  { %v2403_v19 = vadd.f32 %v2402_v16, %v2380_v1 }
 0x709   :  { %v2510_v61 = vmax.f32 %v2403_v19, 0.0 }
 0x70b   :  { %2526 = vst [vmem:[#allocation8 + $0x68] sm:$0xff] %v2510_v61 }
 0x718   :  { %v2445_v54 = vpop.f32.mrf.mxu1 }
 0x719   :  { %v2446_v14 = vadd.f32 %v2445_v54, %v2423_v9 }
 0x71b   :  { %v2503_v23 = vmax.f32 %v2446_v14, 0.0 }
 0x71d   :  { %2519 = vst [vmem:[#allocation8 + $0x30] sm:$0xff] %v2503_v23 }
 0x71e   :  { %v2491_v29 = vpop.f32.mrf.mxu3 }
 0x71f   :  { %v2492_v31 = vadd.f32 %v2491_v29, %v2469_v26 }
 0x720   :  { %v2448_v20 = vpop.f32.mrf.mxu1 }
 0x721   :  { %v2504_v32 = vmax.f32 %v2492_v31, 0.0  ;;  %v2449_v27 = vadd.f32 %v2448_v20, %v2426_v30 }
 0x723   :  { %2520 = vst [vmem:[#allocation8 + $0x38] sm:$0xff] %v2504_v32  ;;  %v2511_v34 = vmax.f32 %v2449_v27, 0.0 }
 0x725   :  { %2527 = vst [vmem:[#allocation8 + $0x70] sm:$0xff] %v2511_v34 }
 0x726   :  { %v2494_v25 = vpop.f32.mrf.mxu3 }
 0x727   :  { %v2495_v21 = vadd.f32 %v2494_v25, %v2472_v11 }
 0x729   :  { %v2512_v36 = vmax.f32 %v2495_v21, 0.0 }
 0x72b   :  { %2528 = vst [vmem:[#allocation8 + $0x78] sm:$0xff] %v2512_v36 }
 0x72c   :  { %2541 = dma.vmem_to_hbm [thread:$0]  %s2534_s5, 2048, %s2536_s21, [#allocation4], %s2701_s17, %s2701_s17, %s2702_s18  }
 0x72d   :  { %2694 = dma.done.wait [#allocation4], 2048  }
 0x72e   :  { %2695 = vsyncadd [#allocation4], 4294965248 }
 0x72f   :  { %2546 = vsyncpa [#allocation3], 1 }
 0x730   :  { %2547 = vsyncpa [#allocation6], 1 }
 0x731   :  { %2548 = vsyncpa [#allocation4], 1 }

</bundles_post_ra>
